<compile_context>
chip_gen: v6e
topology: v6e:2x2x1
jax: 0.10.0
libtpu: 0.0.40
codegen_flags: <defaults>
</compile_context>

<pallas_src>
import functools
import math

import jax
import jax.numpy as jnp
from jax.experimental import pallas as pl
from jax.experimental.pallas import tpu as pltpu

H = 256          # hidden size (bert-base uses 768)
NH = 2           # attention heads (head_dim kept at 128 for lane-aligned slices)
HD = H // NH     # head dim
I = 1024         # FFN intermediate size (4*H, like BERT)
LAYERS = 2       # config.num_hidden_layers = 2 in the module
LN_EPS = 1e-12   # BERT LayerNorm eps
QA_PAD = 128     # qa_outputs produces 2 logits; padded to 128 lanes for a dense store

PAD, CLS, SEP, BOS = 0, 1, 2, 3


# ----------------------------- kernel --------------------------------------- #

def _layernorm(x, g, b):
    mu = jnp.mean(x, axis=-1, keepdims=True)
    var = jnp.mean((x - mu) ** 2, axis=-1, keepdims=True)
    return (x - mu) * jax.lax.rsqrt(var + LN_EPS) * g + b


def fused_forward_kernel(B, S,
                         x_ref, pe_ref, mask_ref, eg_ref, eb_ref,
                         wqkv_ref, bqkv_ref, wo_ref, bo_ref, ln1g_ref, ln1b_ref,
                         w1_ref, b1_ref, w2_ref, b2_ref, ln2g_ref, ln2b_ref,
                         qa_w_ref, qa_b_ref,
                         out_ref, h_ref):
    """One grid step == one BERT layer.  `h_ref` (VMEM scratch, f32) carries the hidden
    state across layers.  Embedding LN on layer 0, QA head on the last layer."""
    l = pl.program_id(0)
    inv_sqrt_d = 1.0 / math.sqrt(HD)

    # --- embeddings: inputs_embeds + position + token_type(0), then LayerNorm (f32) ---
    @pl.when(l == 0)
    def _():
        emb = x_ref[...].reshape(B, S, H) + pe_ref[...][None, :, :]
        h_ref[...] = _layernorm(emb, eg_ref[...], eb_ref[...]).reshape(B * S, H)

    h = h_ref[...]                                      # (B*S, H) f32
    h_bf = h.astype(jnp.bfloat16)

    # Fused QKV projection: one (B*S, H) x (H, 3H) matmul; cast to bf16 immediately.
    qkv = (jnp.dot(h_bf, wqkv_ref[...], preferred_element_type=jnp.float32)
           + bqkv_ref[...]).astype(jnp.bfloat16)        # (B*S, 3H) bf16

    # All heads in one batched dot_general.  Heads are 128-lane-aligned slices of qkv;
    # stacking them is vreg-tile reordering only (no intra-vreg shuffles).
    def split_heads(base):
        return jnp.stack(
            [qkv[:, base + hh * HD: base + (hh + 1) * HD].reshape(B, S, HD)
             for hh in range(NH)], axis=1).reshape(B * NH, S, HD)

    q = split_heads(0)
    k = split_heads(H)
    v = split_heads(2 * H)

    s = jax.lax.dot_general(q, k, (((2,), (2,)), ((0,), (0,))),
                            preferred_element_type=jnp.float32) * inv_sqrt_d
    s = s.reshape(B, NH, S, S) + mask_ref[...][:, None, :, :]    # (B,1,S) -> (B,1,1,S)
    s = s - jnp.max(s, axis=-1, keepdims=True)
    e = jnp.exp(s)
    p = e * pl.reciprocal(jnp.sum(e, axis=-1, keepdims=True), approx=True)
    p = p.reshape(B * NH, S, S).astype(jnp.bfloat16)
    ctx = jax.lax.dot_general(p, v, (((2,), (1,)), ((0,), (0,))),
                              preferred_element_type=jnp.float32)  # (B*NH, S, HD)

    # Merge heads back to (B*S, H): lane-aligned 128-wide pieces, register concatenate.
    ctx = ctx.reshape(B, NH, S, HD)
    ctx_flat = jnp.concatenate(
        [ctx[:, hh].reshape(B * S, HD) for hh in range(NH)],
        axis=-1).astype(jnp.bfloat16)                   # (B*S, H) bf16

    attn = jnp.dot(ctx_flat, wo_ref[...],
                   preferred_element_type=jnp.float32) + bo_ref[...]
    h1 = _layernorm(h + attn, ln1g_ref[...], ln1b_ref[...])

    # TODO(synk): HF BERT uses exact erf-GELU; tanh-approx GELU used here.
    inter = jax.nn.gelu(
        jnp.dot(h1.astype(jnp.bfloat16), w1_ref[...],
                preferred_element_type=jnp.float32) + b1_ref[...],
        approximate=True).astype(jnp.bfloat16)          # cast as produced
    ffn = jnp.dot(inter, w2_ref[...],
                  preferred_element_type=jnp.float32) + b2_ref[...]
    h_new = _layernorm(h1 + ffn, ln2g_ref[...], ln2b_ref[...])
    h_ref[...] = h_new

    # QA head on the last layer: (H, 2) weight zero-padded to (H, 128) -> lane-dense store.
    # Column 0 = start logits, column 1 = end logits (sliced in the wrapper).
    @pl.when(l == pl.num_programs(0) - 1)
    def _():
        out_ref[...] = jnp.dot(h_new.astype(jnp.bfloat16), qa_w_ref[...],
                               preferred_element_type=jnp.float32) + qa_b_ref[...]


# ----------------------------- wrapper -------------------------------------- #

def run_fused_bert(x_flat, pe, mask_bias, params, B, S):
    def const_spec(shape):
        n = len(shape)
        return pl.BlockSpec(shape, lambda l, n=n: (0,) * n)

    def layer_spec(shape):
        # Stacked (LAYERS, ...) array; one layer slice per grid step (leading dim squeezed).
        n = len(shape)
        return pl.BlockSpec((None,) + tuple(shape[1:]),
                            lambda l, n=n: (l,) + (0,) * (n - 1))

    const_arrays = [x_flat, pe, mask_bias, params["emb_ln_g"], params["emb_ln_b"]]
    layer_arrays = [params["wqkv"], params["bqkv"], params["wo"], params["bo"],
                    params["ln1g"], params["ln1b"],
                    params["w1"], params["b1"], params["w2"], params["b2"],
                    params["ln2g"], params["ln2b"]]
    qa_arrays = [params["qa_w_pad"], params["qa_b_pad"]]

    in_arrays = const_arrays + layer_arrays + qa_arrays
    in_specs = ([const_spec(a.shape) for a in const_arrays]
                + [layer_spec(a.shape) for a in layer_arrays]
                + [const_spec(a.shape) for a in qa_arrays])

    return pl.pallas_call(
        functools.partial(fused_forward_kernel, B, S),
        out_shape=jax.ShapeDtypeStruct((B * S, QA_PAD), jnp.float32),
        grid=(LAYERS,),
        in_specs=in_specs,
        out_specs=pl.BlockSpec((B * S, QA_PAD), lambda l: (0, 0)),
        scratch_shapes=[pltpu.VMEM((B * S, H), jnp.float32)],   # carried hidden state
        compiler_params=pltpu.CompilerParams(
            dimension_semantics=("arbitrary",),                 # layers carry state
            vmem_limit_bytes=32 * 1024 * 1024),
    )(*in_arrays)


# ------------------- sequence assembly (vectorized, jit-able) ---------------- #

def build_sequences(video_emb, lang_emb, conv_lens, emotion_pos, cause_pos, special_emb):
    """Vectorized replacement for the host-side per-example assembly:
    [CLS] v0 l0 ... v_{u-1} l_{u-1} [SEP] v_emo l_emo [SEP] v_cause l_cause [BOS] PAD*
    Returns (inputs_embeds (B,S,H) f32, attention_mask (B,S))."""
    B, U, _ = video_emb.shape
    S = 2 * U + 8
    t = jnp.arange(S)[None, :]                      # (1, S)
    u2 = 2 * conv_lens[:, None]                     # (B, 1)
    epos = emotion_pos[:, None]
    cpos = cause_pos[:, None]

    in_inter = (t >= 1) & (t <= u2)                 # interleaved video/language region
    j = t - 1
    utt = j // 2
    inter_is_video = (j % 2) == 0
    off = t - u2    # 1:SEP 2:v_emo 3:l_emo 4:SEP 5:v_cause 6:l_cause 7:BOS >=8:PAD

    sel = jnp.where(t == 0, 0,
          jnp.where(in_inter, jnp.where(inter_is_video, 1, 2),
          jnp.where((off == 2) | (off == 5), 1,
          jnp.where((off == 3) | (off == 6), 2, 0))))
    special_id = jnp.where(t == 0, CLS,
                 jnp.where((off == 1) | (off == 4), SEP,
                 jnp.where(off == 7, BOS, PAD)))
    utt_idx = jnp.where(in_inter, utt,
              jnp.where((off == 2) | (off == 3), epos,
              jnp.where((off == 5) | (off == 6), cpos, 0)))

    gather = jax.vmap(lambda e, idx: e[idx])
    gv = gather(video_emb, utt_idx)                 # (B, S, H)
    gl = gather(lang_emb, utt_idx)                  # (B, S, H)
    gs = special_emb[special_id]                    # (B, S, H)

    x = jnp.where(sel[..., None] == 1, gv,
        jnp.where(sel[..., None] == 2, gl, gs))
    attention_mask = (t < u2 + 8).astype(jnp.float32)   # (B, S)
    return x, attention_mask


# --------------------------- forward (glue + kernel) ------------------------- #

def cause_predictor_forward(video_emb, lang_emb, conv_lens, emotion_pos, cause_pos,
                            params):
    """Mirrors CausePredictor.forward: build [CLS] v0 l0 ... [SEP] v_emo l_emo [SEP]
    v_cause l_cause [BOS] sequences, pad with PAD embedding, run the 2-layer BERT
    QA head, return start_logits (B, S)."""
    B, U, _ = video_emb.shape
    S = 2 * U + 8

    x, attention_mask = build_sequences(video_emb, lang_emb, conv_lens,
                                        emotion_pos, cause_pos,
                                        params["special_emb"])
    mask_bias = ((1.0 - attention_mask) * -1e9).reshape(B, 1, S)

    # position + token_type(0) embedding, passed ONCE as (S, H) f32 (broadcast in-kernel).
    pe = params["pos_emb"][:S] + params["tok_emb"][0:1]          # (S, H) f32
    x_flat = x.reshape(B * S, H)                                 # (B*S, H) f32

    logits = run_fused_bert(x_flat, pe, mask_bias, params, B, S)  # (B*S, 128)
    start_logits = logits[:, 0].reshape(B, S)
    # NOTE: padded positions are returned unmasked (same as the PyTorch module);
    # downstream argmax should apply attention_mask.
    return start_logits


def init_params(key):
    keys = jax.random.split(key, 64)
    kiter = iter(keys)

    def nrm(shape):
        return jax.random.normal(next(kiter), shape, jnp.float32) * 0.02

    params = {}
    sp = nrm((4, H))
    params["special_emb"] = sp.at[PAD].set(0.0)      # nn.Embedding(4, H, padding_idx=0)
    params["pos_emb"] = nrm((512, H))
    params["tok_emb"] = nrm((2, H))
    params["emb_ln_g"] = jnp.ones((1, H), jnp.float32)
    params["emb_ln_b"] = jnp.zeros((1, H), jnp.float32)

    wqkv, wo, w1, w2 = [], [], [], []
    for _ in range(LAYERS):
        wq, wk, wv = nrm((H, H)), nrm((H, H)), nrm((H, H))
        wqkv.append(jnp.concatenate([wq, wk, wv], axis=1))       # fused QKV
        wo.append(nrm((H, H)))
        w1.append(nrm((H, I)))
        w2.append(nrm((I, H)))
    params["wqkv"] = jnp.stack(wqkv).astype(jnp.bfloat16)        # (L, H, 3H)
    params["bqkv"] = jnp.zeros((LAYERS, 1, 3 * H), jnp.float32)
    params["wo"]   = jnp.stack(wo).astype(jnp.bfloat16)          # (L, H, H)
    params["bo"]   = jnp.zeros((LAYERS, 1, H), jnp.float32)
    params["ln1g"] = jnp.ones((LAYERS, 1, H), jnp.float32)
    params["ln1b"] = jnp.zeros((LAYERS, 1, H), jnp.float32)
    params["w1"]   = jnp.stack(w1).astype(jnp.bfloat16)          # (L, H, I)
    params["b1"]   = jnp.zeros((LAYERS, 1, I), jnp.float32)
    params["w2"]   = jnp.stack(w2).astype(jnp.bfloat16)          # (L, I, H)
    params["b2"]   = jnp.zeros((LAYERS, 1, H), jnp.float32)
    params["ln2g"] = jnp.ones((LAYERS, 1, H), jnp.float32)
    params["ln2b"] = jnp.zeros((LAYERS, 1, H), jnp.float32)

    qa_w = nrm((H, 2))                               # qa_outputs: Linear(H, 2)
    params["qa_w_pad"] = jnp.pad(qa_w, ((0, 0), (0, QA_PAD - 2))).astype(jnp.bfloat16)
    params["qa_b_pad"] = jnp.zeros((1, QA_PAD), jnp.float32)
    return params


if __name__ == "__main__":
    key = jax.random.PRNGKey(0)
    pkey, vkey, lkey = jax.random.split(key, 3)
    params = init_params(pkey)

    B, U = 2, 4                                      # 2 conversations, up to 4 utterances
    # Per-utterance LanguageBind embeddings (stand-ins for the frozen encoder outputs).
    video_emb = jax.random.normal(vkey, (B, U, H), jnp.float32)
    lang_emb = jax.random.normal(lkey, (B, U, H), jnp.float32)
    conv_lens = jnp.array([4, 3], jnp.int32)     # second conversation shorter -> PAD + mask
    emotion_pos = jnp.array([1, 0], jnp.int32)
    cause_pos = jnp.array([2, 1], jnp.int32)

    start_logits = jax.jit(cause_predictor_forward)(
        video_emb, lang_emb, conv_lens, emotion_pos, cause_pos, params)
    jax.block_until_ready(start_logits)

    assert start_logits.shape == (B, 2 * U + 8)
    assert bool(jnp.all(jnp.isfinite(start_logits)))
    print("KERNEL_OK")
</pallas_src>

<mosaic_0001>
module attributes {stable_mosaic.version = 11 : i64} {
  func.func @fused_forward_kernel(%arg0: i32, %arg1: memref<32x256xf32, #tpu.memory_space<vmem>>, %arg2: memref<16x256xf32, #tpu.memory_space<vmem>>, %arg3: memref<2x1x16xf32, #tpu.memory_space<vmem>>, %arg4: memref<1x256xf32, #tpu.memory_space<vmem>>, %arg5: memref<1x256xf32, #tpu.memory_space<vmem>>, %arg6: memref<1x256x768xbf16, #tpu.memory_space<vmem>>, %arg7: memref<1x1x768xf32, #tpu.memory_space<vmem>>, %arg8: memref<1x256x256xbf16, #tpu.memory_space<vmem>>, %arg9: memref<1x1x256xf32, #tpu.memory_space<vmem>>, %arg10: memref<1x1x256xf32, #tpu.memory_space<vmem>>, %arg11: memref<1x1x256xf32, #tpu.memory_space<vmem>>, %arg12: memref<1x256x1024xbf16, #tpu.memory_space<vmem>>, %arg13: memref<1x1x1024xf32, #tpu.memory_space<vmem>>, %arg14: memref<1x1024x256xbf16, #tpu.memory_space<vmem>>, %arg15: memref<1x1x256xf32, #tpu.memory_space<vmem>>, %arg16: memref<1x1x256xf32, #tpu.memory_space<vmem>>, %arg17: memref<1x1x256xf32, #tpu.memory_space<vmem>>, %arg18: memref<256x128xbf16, #tpu.memory_space<vmem>>, %arg19: memref<1x128xf32, #tpu.memory_space<vmem>>, %arg20: memref<32x128xf32, #tpu.memory_space<vmem>>, %arg21: memref<32x256xf32, #tpu.memory_space<vmem>>) attributes {dimension_semantics = [#tpu.dimension_semantics<arbitrary>], iteration_bounds = array<i64: 2>, scalar_prefetch = 0 : i64, scratch_operands = 1 : i64, tpu.core_type = #tpu.core_type<tc>, window_params = [{pipeline_mode = #tpu.pipeline_mode<synchronous>, transform_indices = @transform_0, window_bounds = array<i64: 32, 256>}, {pipeline_mode = #tpu.pipeline_mode<synchronous>, transform_indices = @transform_1, window_bounds = array<i64: 16, 256>}, {pipeline_mode = #tpu.pipeline_mode<synchronous>, transform_indices = @transform_2, window_bounds = array<i64: 2, 1, 16>}, {pipeline_mode = #tpu.pipeline_mode<synchronous>, transform_indices = @transform_3, window_bounds = array<i64: 1, 256>}, {pipeline_mode = #tpu.pipeline_mode<synchronous>, transform_indices = @transform_4, window_bounds = array<i64: 1, 256>}, {transform_indices = @transform_5, window_bounds = array<i64: 1, 256, 768>}, {transform_indices = @transform_6, window_bounds = array<i64: 1, 1, 768>}, {transform_indices = @transform_7, window_bounds = array<i64: 1, 256, 256>}, {transform_indices = @transform_8, window_bounds = array<i64: 1, 1, 256>}, {transform_indices = @transform_9, window_bounds = array<i64: 1, 1, 256>}, {transform_indices = @transform_10, window_bounds = array<i64: 1, 1, 256>}, {transform_indices = @transform_11, window_bounds = array<i64: 1, 256, 1024>}, {transform_indices = @transform_12, window_bounds = array<i64: 1, 1, 1024>}, {transform_indices = @transform_13, window_bounds = array<i64: 1, 1024, 256>}, {transform_indices = @transform_14, window_bounds = array<i64: 1, 1, 256>}, {transform_indices = @transform_15, window_bounds = array<i64: 1, 1, 256>}, {transform_indices = @transform_16, window_bounds = array<i64: 1, 1, 256>}, {pipeline_mode = #tpu.pipeline_mode<synchronous>, transform_indices = @transform_17, window_bounds = array<i64: 256, 128>}, {pipeline_mode = #tpu.pipeline_mode<synchronous>, transform_indices = @transform_18, window_bounds = array<i64: 1, 128>}, {pipeline_mode = #tpu.pipeline_mode<synchronous>, transform_indices = @transform_19, window_bounds = array<i64: 32, 128>}]} {
    %c0_i32 = arith.constant 0 : i32
    %0 = arith.cmpi eq, %arg0, %c0_i32 : i32
    %1 = arith.extui %0 : i1 to i32
    %c0_i32_0 = arith.constant 0 : i32
    %2 = arith.cmpi ne, %1, %c0_i32_0 : i32
    scf.if %2 {
      %c0_66 = arith.constant 0 : index
      %c0_67 = arith.constant 0 : index
      %161 = vector.load %arg1[%c0_66, %c0_67] : memref<32x256xf32, #tpu.memory_space<vmem>>, vector<32x256xf32>
      %162 = vector.shape_cast %161 : vector<32x256xf32> to vector<2x16x256xf32>
      %c0_68 = arith.constant 0 : index
      %c0_69 = arith.constant 0 : index
      %163 = vector.load %arg2[%c0_68, %c0_69] : memref<16x256xf32, #tpu.memory_space<vmem>>, vector<16x256xf32>
      %164 = vector.shape_cast %163 : vector<16x256xf32> to vector<1x16x256xf32>
      %165 = vector.broadcast %164 : vector<1x16x256xf32> to vector<2x16x256xf32>
      %166 = arith.addf %162, %165 : vector<2x16x256xf32>
      %c0_70 = arith.constant 0 : index
      %c0_71 = arith.constant 0 : index
      %167 = vector.load %arg4[%c0_70, %c0_71] : memref<1x256xf32, #tpu.memory_space<vmem>>, vector<1x256xf32>
      %c0_72 = arith.constant 0 : index
      %c0_73 = arith.constant 0 : index
      %168 = vector.load %arg5[%c0_72, %c0_73] : memref<1x256xf32, #tpu.memory_space<vmem>>, vector<1x256xf32>
      %cst_74 = arith.constant dense<0.000000e+00> : vector<2x16xf32>
      %169 = vector.multi_reduction <add>, %166, %cst_74 [2] : vector<2x16x256xf32> to vector<2x16xf32>
      %170 = vector.shape_cast %169 : vector<2x16xf32> to vector<2x16x1xf32>
      %cst_75 = arith.constant 2.560000e+02 : f32
      %171 = vector.broadcast %cst_75 : f32 to vector<2x16x1xf32>
      %172 = arith.divf %170, %171 : vector<2x16x1xf32>
      %173 = vector.broadcast %172 : vector<2x16x1xf32> to vector<2x16x256xf32>
      %174 = arith.subf %166, %173 : vector<2x16x256xf32>
      %175 = arith.mulf %174, %174 : vector<2x16x256xf32>
      %cst_76 = arith.constant dense<0.000000e+00> : vector<2x16xf32>
      %176 = vector.multi_reduction <add>, %175, %cst_76 [2] : vector<2x16x256xf32> to vector<2x16xf32>
      %177 = vector.shape_cast %176 : vector<2x16xf32> to vector<2x16x1xf32>
      %cst_77 = arith.constant 2.560000e+02 : f32
      %178 = vector.broadcast %cst_77 : f32 to vector<2x16x1xf32>
      %179 = arith.divf %177, %178 : vector<2x16x1xf32>
      %180 = vector.broadcast %172 : vector<2x16x1xf32> to vector<2x16x256xf32>
      %181 = arith.subf %166, %180 : vector<2x16x256xf32>
      %cst_78 = arith.constant 9.99999996E-13 : f32
      %182 = vector.broadcast %cst_78 : f32 to vector<2x16x1xf32>
      %183 = arith.addf %179, %182 : vector<2x16x1xf32>
      %184 = math.rsqrt %183 : vector<2x16x1xf32>
      %185 = vector.broadcast %184 : vector<2x16x1xf32> to vector<2x16x256xf32>
      %186 = arith.mulf %181, %185 : vector<2x16x256xf32>
      %187 = vector.shape_cast %167 : vector<1x256xf32> to vector<1x1x256xf32>
      %188 = vector.broadcast %187 : vector<1x1x256xf32> to vector<2x16x256xf32>
      %189 = arith.mulf %186, %188 : vector<2x16x256xf32>
      %190 = vector.shape_cast %168 : vector<1x256xf32> to vector<1x1x256xf32>
      %191 = vector.broadcast %190 : vector<1x1x256xf32> to vector<2x16x256xf32>
      %192 = arith.addf %189, %191 : vector<2x16x256xf32>
      %193 = vector.shape_cast %192 : vector<2x16x256xf32> to vector<32x256xf32>
      %c0_79 = arith.constant 0 : index
      %c0_80 = arith.constant 0 : index
      %194 = vector.load %arg21[%c0_79, %c0_80] : memref<32x256xf32, #tpu.memory_space<vmem>>, vector<32x256xf32>
      tpu.vector_store %arg21[%c0_79, %c0_80], %193 {strides = array<i32>} : memref<32x256xf32, #tpu.memory_space<vmem>>, vector<32x256xf32>,
    } else {
    }
    %c0 = arith.constant 0 : index
    %c0_1 = arith.constant 0 : index
    %3 = vector.load %arg21[%c0, %c0_1] : memref<32x256xf32, #tpu.memory_space<vmem>>, vector<32x256xf32>
    %4 = arith.truncf %3 : vector<32x256xf32> to vector<32x256xbf16>
    %c0_2 = arith.constant 0 : index
    %c0_3 = arith.constant 0 : index
    %c0_4 = arith.constant 0 : index
    %5 = vector.load %arg6[%c0_2, %c0_3, %c0_4] : memref<1x256x768xbf16, #tpu.memory_space<vmem>>, vector<1x256x768xbf16>
    %6 = vector.shape_cast %5 : vector<1x256x768xbf16> to vector<256x768xbf16>
    %cst = arith.constant dense<0.000000e+00> : vector<32x768xf32>
    %7 = tpu.matmul %4, %6, %cst {dimension_numbers = #tpu.dot_dimension_numbers<[1], [0], [0], [1], [0, 0, 1, 1], [], []>} : vector<32x256xbf16>, vector<256x768xbf16>, vector<32x768xf32> -> vector<32x768xf32>
    %c0_5 = arith.constant 0 : index
    %c0_6 = arith.constant 0 : index
    %c0_7 = arith.constant 0 : index
    %8 = vector.load %arg7[%c0_5, %c0_6, %c0_7] : memref<1x1x768xf32, #tpu.memory_space<vmem>>, vector<1x1x768xf32>
    %9 = vector.shape_cast %8 : vector<1x1x768xf32> to vector<1x768xf32>
    %10 = vector.broadcast %9 : vector<1x768xf32> to vector<32x768xf32>
    %11 = arith.addf %7, %10 : vector<32x768xf32>
    %12 = arith.truncf %11 : vector<32x768xf32> to vector<32x768xbf16>
    %13 = vector.extract_strided_slice %12 {offsets = [0, 0], sizes = [32, 128], strides = [1, 1]} : vector<32x768xbf16> to vector<32x128xbf16>
    %14 = vector.shape_cast %13 : vector<32x128xbf16> to vector<2x16x128xbf16>
    %15 = vector.extract_strided_slice %12 {offsets = [0, 128], sizes = [32, 128], strides = [1, 1]} : vector<32x768xbf16> to vector<32x128xbf16>
    %16 = vector.shape_cast %15 : vector<32x128xbf16> to vector<2x16x128xbf16>
    %17 = vector.shape_cast %14 : vector<2x16x128xbf16> to vector<2x1x16x128xbf16>
    %18 = vector.shape_cast %16 : vector<2x16x128xbf16> to vector<2x1x16x128xbf16>
    %19 = tpu.concatenate %17, %18 in 1 : vector<2x1x16x128xbf16>, vector<2x1x16x128xbf16> -> vector<2x2x16x128xbf16>
    %20 = vector.shape_cast %19 : vector<2x2x16x128xbf16> to vector<4x16x128xbf16>
    %21 = vector.extract_strided_slice %12 {offsets = [0, 256], sizes = [32, 128], strides = [1, 1]} : vector<32x768xbf16> to vector<32x128xbf16>
    %22 = vector.shape_cast %21 : vector<32x128xbf16> to vector<2x16x128xbf16>
    %23 = vector.extract_strided_slice %12 {offsets = [0, 384], sizes = [32, 128], strides = [1, 1]} : vector<32x768xbf16> to vector<32x128xbf16>
    %24 = vector.shape_cast %23 : vector<32x128xbf16> to vector<2x16x128xbf16>
    %25 = vector.shape_cast %22 : vector<2x16x128xbf16> to vector<2x1x16x128xbf16>
    %26 = vector.shape_cast %24 : vector<2x16x128xbf16> to vector<2x1x16x128xbf16>
    %27 = tpu.concatenate %25, %26 in 1 : vector<2x1x16x128xbf16>, vector<2x1x16x128xbf16> -> vector<2x2x16x128xbf16>
    %28 = vector.shape_cast %27 : vector<2x2x16x128xbf16> to vector<4x16x128xbf16>
    %29 = vector.extract_strided_slice %12 {offsets = [0, 512], sizes = [32, 128], strides = [1, 1]} : vector<32x768xbf16> to vector<32x128xbf16>
    %30 = vector.shape_cast %29 : vector<32x128xbf16> to vector<2x16x128xbf16>
    %31 = vector.extract_strided_slice %12 {offsets = [0, 640], sizes = [32, 128], strides = [1, 1]} : vector<32x768xbf16> to vector<32x128xbf16>
    %32 = vector.shape_cast %31 : vector<32x128xbf16> to vector<2x16x128xbf16>
    %33 = vector.shape_cast %30 : vector<2x16x128xbf16> to vector<2x1x16x128xbf16>
    %34 = vector.shape_cast %32 : vector<2x16x128xbf16> to vector<2x1x16x128xbf16>
    %35 = tpu.concatenate %33, %34 in 1 : vector<2x1x16x128xbf16>, vector<2x1x16x128xbf16> -> vector<2x2x16x128xbf16>
    %36 = vector.shape_cast %35 : vector<2x2x16x128xbf16> to vector<4x16x128xbf16>
    %cst_8 = arith.constant dense<0.000000e+00> : vector<4x16x16xf32>
    %37 = tpu.matmul %20, %28, %cst_8 {dimension_numbers = #tpu.dot_dimension_numbers<[2], [2], [1], [1], [0, 0, 0, 1, 1, 1], [0], [0]>} : vector<4x16x128xbf16>, vector<4x16x128xbf16>, vector<4x16x16xf32> -> vector<4x16x16xf32>
    %cst_9 = arith.constant 0.0883883461 : f32
    %38 = vector.broadcast %cst_9 : f32 to vector<4x16x16xf32>
    %39 = arith.mulf %37, %38 : vector<4x16x16xf32>
    %40 = vector.shape_cast %39 : vector<4x16x16xf32> to vector<2x2x16x16xf32>
    %c0_10 = arith.constant 0 : index
    %c0_11 = arith.constant 0 : index
    %c0_12 = arith.constant 0 : index
    %41 = vector.load %arg3[%c0_10, %c0_11, %c0_12] : memref<2x1x16xf32, #tpu.memory_space<vmem>>, vector<2x1x16xf32>
    %42 = vector.shape_cast %41 : vector<2x1x16xf32> to vector<2x1x1x16xf32>
    %43 = vector.broadcast %42 : vector<2x1x1x16xf32> to vector<2x2x16x16xf32>
    %44 = arith.addf %40, %43 : vector<2x2x16x16xf32>
    %cst_13 = arith.constant dense<0xFF800000> : vector<2x2x16xf32>
    %45 = vector.multi_reduction <maximumf>, %44, %cst_13 [3] : vector<2x2x16x16xf32> to vector<2x2x16xf32>
    %46 = vector.shape_cast %45 : vector<2x2x16xf32> to vector<2x2x16x1xf32>
    %47 = vector.broadcast %46 : vector<2x2x16x1xf32> to vector<2x2x16x16xf32>
    %48 = arith.subf %44, %47 : vector<2x2x16x16xf32>
    %49 = math.exp %48 : vector<2x2x16x16xf32>
    %cst_14 = arith.constant dense<0.000000e+00> : vector<2x2x16xf32>
    %50 = vector.multi_reduction <add>, %49, %cst_14 [3] : vector<2x2x16x16xf32> to vector<2x2x16xf32>
    %51 = vector.shape_cast %50 : vector<2x2x16xf32> to vector<2x2x16x1xf32>
    %52 = tpu.reciprocal %51 {approx = true} : vector<2x2x16x1xf32> -> vector<2x2x16x1xf32>
    %53 = vector.broadcast %52 : vector<2x2x16x1xf32> to vector<2x2x16x16xf32>
    %54 = arith.mulf %49, %53 : vector<2x2x16x16xf32>
    %55 = vector.shape_cast %54 : vector<2x2x16x16xf32> to vector<4x16x16xf32>
    %56 = arith.truncf %55 : vector<4x16x16xf32> to vector<4x16x16xbf16>
    %cst_15 = arith.constant dense<0.000000e+00> : vector<4x16x128xf32>
    %57 = tpu.matmul %56, %36, %cst_15 {dimension_numbers = #tpu.dot_dimension_numbers<[2], [1], [1], [2], [0, 0, 0, 1, 1, 2], [0], [0]>} : vector<4x16x16xbf16>, vector<4x16x128xbf16>, vector<4x16x128xf32> -> vector<4x16x128xf32>
    %58 = vector.shape_cast %57 : vector<4x16x128xf32> to vector<2x2x16x128xf32>
    %59 = vector.extract_strided_slice %58 {offsets = [0, 0, 0, 0], sizes = [2, 1, 16, 128], strides = [1, 1, 1, 1]} : vector<2x2x16x128xf32> to vector<2x1x16x128xf32>
    %60 = vector.shape_cast %59 : vector<2x1x16x128xf32> to vector<2x16x128xf32>
    %61 = vector.shape_cast %60 : vector<2x16x128xf32> to vector<32x128xf32>
    %62 = vector.extract_strided_slice %58 {offsets = [0, 1, 0, 0], sizes = [2, 1, 16, 128], strides = [1, 1, 1, 1]} : vector<2x2x16x128xf32> to vector<2x1x16x128xf32>
    %63 = vector.shape_cast %62 : vector<2x1x16x128xf32> to vector<2x16x128xf32>
    %64 = vector.shape_cast %63 : vector<2x16x128xf32> to vector<32x128xf32>
    %65 = tpu.concatenate %61, %64 in 1 : vector<32x128xf32>, vector<32x128xf32> -> vector<32x256xf32>
    %66 = arith.truncf %65 : vector<32x256xf32> to vector<32x256xbf16>
    %c0_16 = arith.constant 0 : index
    %c0_17 = arith.constant 0 : index
    %c0_18 = arith.constant 0 : index
    %67 = vector.load %arg8[%c0_16, %c0_17, %c0_18] : memref<1x256x256xbf16, #tpu.memory_space<vmem>>, vector<1x256x256xbf16>
    %68 = vector.shape_cast %67 : vector<1x256x256xbf16> to vector<256x256xbf16>
    %cst_19 = arith.constant dense<0.000000e+00> : vector<32x256xf32>
    %69 = tpu.matmul %66, %68, %cst_19 {dimension_numbers = #tpu.dot_dimension_numbers<[1], [0], [0], [1], [0, 0, 1, 1], [], []>} : vector<32x256xbf16>, vector<256x256xbf16>, vector<32x256xf32> -> vector<32x256xf32>
    %c0_20 = arith.constant 0 : index
    %c0_21 = arith.constant 0 : index
    %c0_22 = arith.constant 0 : index
    %70 = vector.load %arg9[%c0_20, %c0_21, %c0_22] : memref<1x1x256xf32, #tpu.memory_space<vmem>>, vector<1x1x256xf32>
    %71 = vector.shape_cast %70 : vector<1x1x256xf32> to vector<1x256xf32>
    %72 = vector.broadcast %71 : vector<1x256xf32> to vector<32x256xf32>
    %73 = arith.addf %69, %72 : vector<32x256xf32>
    %74 = arith.addf %3, %73 : vector<32x256xf32>
    %c0_23 = arith.constant 0 : index
    %c0_24 = arith.constant 0 : index
    %c0_25 = arith.constant 0 : index
    %75 = vector.load %arg10[%c0_23, %c0_24, %c0_25] : memref<1x1x256xf32, #tpu.memory_space<vmem>>, vector<1x1x256xf32>
    %76 = vector.shape_cast %75 : vector<1x1x256xf32> to vector<1x256xf32>
    %c0_26 = arith.constant 0 : index
    %c0_27 = arith.constant 0 : index
    %c0_28 = arith.constant 0 : index
    %77 = vector.load %arg11[%c0_26, %c0_27, %c0_28] : memref<1x1x256xf32, #tpu.memory_space<vmem>>, vector<1x1x256xf32>
    %78 = vector.shape_cast %77 : vector<1x1x256xf32> to vector<1x256xf32>
    %cst_29 = arith.constant dense<0.000000e+00> : vector<32xf32>
    %79 = vector.multi_reduction <add>, %74, %cst_29 [1] : vector<32x256xf32> to vector<32xf32>
    %80 = vector.shape_cast %79 : vector<32xf32> to vector<32x1xf32>
    %cst_30 = arith.constant 2.560000e+02 : f32
    %81 = vector.broadcast %cst_30 : f32 to vector<32x1xf32>
    %82 = arith.divf %80, %81 : vector<32x1xf32>
    %83 = vector.broadcast %82 : vector<32x1xf32> to vector<32x256xf32>
    %84 = arith.subf %74, %83 : vector<32x256xf32>
    %85 = arith.mulf %84, %84 : vector<32x256xf32>
    %cst_31 = arith.constant dense<0.000000e+00> : vector<32xf32>
    %86 = vector.multi_reduction <add>, %85, %cst_31 [1] : vector<32x256xf32> to vector<32xf32>
    %87 = vector.shape_cast %86 : vector<32xf32> to vector<32x1xf32>
    %cst_32 = arith.constant 2.560000e+02 : f32
    %88 = vector.broadcast %cst_32 : f32 to vector<32x1xf32>
    %89 = arith.divf %87, %88 : vector<32x1xf32>
    %90 = vector.broadcast %82 : vector<32x1xf32> to vector<32x256xf32>
    %91 = arith.subf %74, %90 : vector<32x256xf32>
    %cst_33 = arith.constant 9.99999996E-13 : f32
    %92 = vector.broadcast %cst_33 : f32 to vector<32x1xf32>
    %93 = arith.addf %89, %92 : vector<32x1xf32>
    %94 = math.rsqrt %93 : vector<32x1xf32>
    %95 = vector.broadcast %94 : vector<32x1xf32> to vector<32x256xf32>
    %96 = arith.mulf %91, %95 : vector<32x256xf32>
    %97 = vector.broadcast %76 : vector<1x256xf32> to vector<32x256xf32>
    %98 = arith.mulf %96, %97 : vector<32x256xf32>
    %99 = vector.broadcast %78 : vector<1x256xf32> to vector<32x256xf32>
    %100 = arith.addf %98, %99 : vector<32x256xf32>
    %101 = arith.truncf %100 : vector<32x256xf32> to vector<32x256xbf16>
    %c0_34 = arith.constant 0 : index
    %c0_35 = arith.constant 0 : index
    %c0_36 = arith.constant 0 : index
    %102 = vector.load %arg12[%c0_34, %c0_35, %c0_36] : memref<1x256x1024xbf16, #tpu.memory_space<vmem>>, vector<1x256x1024xbf16>
    %103 = vector.shape_cast %102 : vector<1x256x1024xbf16> to vector<256x1024xbf16>
    %cst_37 = arith.constant dense<0.000000e+00> : vector<32x1024xf32>
    %104 = tpu.matmul %101, %103, %cst_37 {dimension_numbers = #tpu.dot_dimension_numbers<[1], [0], [0], [1], [0, 0, 1, 1], [], []>} : vector<32x256xbf16>, vector<256x1024xbf16>, vector<32x1024xf32> -> vector<32x1024xf32>
    %c0_38 = arith.constant 0 : index
    %c0_39 = arith.constant 0 : index
    %c0_40 = arith.constant 0 : index
    %105 = vector.load %arg13[%c0_38, %c0_39, %c0_40] : memref<1x1x1024xf32, #tpu.memory_space<vmem>>, vector<1x1x1024xf32>
    %106 = vector.shape_cast %105 : vector<1x1x1024xf32> to vector<1x1024xf32>
    %107 = vector.broadcast %106 : vector<1x1024xf32> to vector<32x1024xf32>
    %108 = arith.addf %104, %107 : vector<32x1024xf32>
    %109 = arith.mulf %108, %108 : vector<32x1024xf32>
    %110 = arith.mulf %108, %109 : vector<32x1024xf32>
    %cst_41 = arith.constant 4.471500e-02 : f32
    %111 = vector.broadcast %cst_41 : f32 to vector<32x1024xf32>
    %112 = arith.mulf %111, %110 : vector<32x1024xf32>
    %113 = arith.addf %108, %112 : vector<32x1024xf32>
    %cst_42 = arith.constant 0.797884583 : f32
    %114 = vector.broadcast %cst_42 : f32 to vector<32x1024xf32>
    %115 = arith.mulf %114, %113 : vector<32x1024xf32>
    %116 = math.tanh %115 : vector<32x1024xf32>
    %cst_43 = arith.constant 1.000000e+00 : f32
    %117 = vector.broadcast %cst_43 : f32 to vector<32x1024xf32>
    %118 = arith.addf %117, %116 : vector<32x1024xf32>
    %cst_44 = arith.constant 5.000000e-01 : f32
    %119 = vector.broadcast %cst_44 : f32 to vector<32x1024xf32>
    %120 = arith.mulf %119, %118 : vector<32x1024xf32>
    %121 = arith.mulf %108, %120 : vector<32x1024xf32>
    %122 = arith.truncf %121 : vector<32x1024xf32> to vector<32x1024xbf16>
    %c0_45 = arith.constant 0 : index
    %c0_46 = arith.constant 0 : index
    %c0_47 = arith.constant 0 : index
    %123 = vector.load %arg14[%c0_45, %c0_46, %c0_47] : memref<1x1024x256xbf16, #tpu.memory_space<vmem>>, vector<1x1024x256xbf16>
    %124 = vector.shape_cast %123 : vector<1x1024x256xbf16> to vector<1024x256xbf16>
    %cst_48 = arith.constant dense<0.000000e+00> : vector<32x256xf32>
    %125 = tpu.matmul %122, %124, %cst_48 {dimension_numbers = #tpu.dot_dimension_numbers<[1], [0], [0], [1], [0, 0, 1, 1], [], []>} : vector<32x1024xbf16>, vector<1024x256xbf16>, vector<32x256xf32> -> vector<32x256xf32>
    %c0_49 = arith.constant 0 : index
    %c0_50 = arith.constant 0 : index
    %c0_51 = arith.constant 0 : index
    %126 = vector.load %arg15[%c0_49, %c0_50, %c0_51] : memref<1x1x256xf32, #tpu.memory_space<vmem>>, vector<1x1x256xf32>
    %127 = vector.shape_cast %126 : vector<1x1x256xf32> to vector<1x256xf32>
    %128 = vector.broadcast %127 : vector<1x256xf32> to vector<32x256xf32>
    %129 = arith.addf %125, %128 : vector<32x256xf32>
    %130 = arith.addf %100, %129 : vector<32x256xf32>
    %c0_52 = arith.constant 0 : index
    %c0_53 = arith.constant 0 : index
    %c0_54 = arith.constant 0 : index
    %131 = vector.load %arg16[%c0_52, %c0_53, %c0_54] : memref<1x1x256xf32, #tpu.memory_space<vmem>>, vector<1x1x256xf32>
    %132 = vector.shape_cast %131 : vector<1x1x256xf32> to vector<1x256xf32>
    %c0_55 = arith.constant 0 : index
    %c0_56 = arith.constant 0 : index
    %c0_57 = arith.constant 0 : index
    %133 = vector.load %arg17[%c0_55, %c0_56, %c0_57] : memref<1x1x256xf32, #tpu.memory_space<vmem>>, vector<1x1x256xf32>
    %134 = vector.shape_cast %133 : vector<1x1x256xf32> to vector<1x256xf32>
    %cst_58 = arith.constant dense<0.000000e+00> : vector<32xf32>
    %135 = vector.multi_reduction <add>, %130, %cst_58 [1] : vector<32x256xf32> to vector<32xf32>
    %136 = vector.shape_cast %135 : vector<32xf32> to vector<32x1xf32>
    %cst_59 = arith.constant 2.560000e+02 : f32
    %137 = vector.broadcast %cst_59 : f32 to vector<32x1xf32>
    %138 = arith.divf %136, %137 : vector<32x1xf32>
    %139 = vector.broadcast %138 : vector<32x1xf32> to vector<32x256xf32>
    %140 = arith.subf %130, %139 : vector<32x256xf32>
    %141 = arith.mulf %140, %140 : vector<32x256xf32>
    %cst_60 = arith.constant dense<0.000000e+00> : vector<32xf32>
    %142 = vector.multi_reduction <add>, %141, %cst_60 [1] : vector<32x256xf32> to vector<32xf32>
    %143 = vector.shape_cast %142 : vector<32xf32> to vector<32x1xf32>
    %cst_61 = arith.constant 2.560000e+02 : f32
    %144 = vector.broadcast %cst_61 : f32 to vector<32x1xf32>
    %145 = arith.divf %143, %144 : vector<32x1xf32>
    %146 = vector.broadcast %138 : vector<32x1xf32> to vector<32x256xf32>
    %147 = arith.subf %130, %146 : vector<32x256xf32>
    %cst_62 = arith.constant 9.99999996E-13 : f32
    %148 = vector.broadcast %cst_62 : f32 to vector<32x1xf32>
    %149 = arith.addf %145, %148 : vector<32x1xf32>
    %150 = math.rsqrt %149 : vector<32x1xf32>
    %151 = vector.broadcast %150 : vector<32x1xf32> to vector<32x256xf32>
    %152 = arith.mulf %147, %151 : vector<32x256xf32>
    %153 = vector.broadcast %132 : vector<1x256xf32> to vector<32x256xf32>
    %154 = arith.mulf %152, %153 : vector<32x256xf32>
    %155 = vector.broadcast %134 : vector<1x256xf32> to vector<32x256xf32>
    %156 = arith.addf %154, %155 : vector<32x256xf32>
    %c0_63 = arith.constant 0 : index
    %c0_64 = arith.constant 0 : index
    %157 = vector.load %arg21[%c0_63, %c0_64] : memref<32x256xf32, #tpu.memory_space<vmem>>, vector<32x256xf32>
    tpu.vector_store %arg21[%c0_63, %c0_64], %156 {strides = array<i32>} : memref<32x256xf32, #tpu.memory_space<vmem>>, vector<32x256xf32>,
    %c1_i32 = arith.constant 1 : i32
    %158 = arith.cmpi eq, %arg0, %c1_i32 : i32
    %159 = arith.extui %158 : i1 to i32
    %c0_i32_65 = arith.constant 0 : i32
    %160 = arith.cmpi ne, %159, %c0_i32_65 : i32
    scf.if %160 {
      %161 = arith.truncf %156 : vector<32x256xf32> to vector<32x256xbf16>
      %c0_66 = arith.constant 0 : index
      %c0_67 = arith.constant 0 : index
      %162 = vector.load %arg18[%c0_66, %c0_67] : memref<256x128xbf16, #tpu.memory_space<vmem>>, vector<256x128xbf16>
      %cst_68 = arith.constant dense<0.000000e+00> : vector<32x128xf32>
      %163 = tpu.matmul %161, %162, %cst_68 {dimension_numbers = #tpu.dot_dimension_numbers<[1], [0], [0], [1], [0, 0, 1, 1], [], []>} : vector<32x256xbf16>, vector<256x128xbf16>, vector<32x128xf32> -> vector<32x128xf32>
      %c0_69 = arith.constant 0 : index
      %c0_70 = arith.constant 0 : index
      %164 = vector.load %arg19[%c0_69, %c0_70] : memref<1x128xf32, #tpu.memory_space<vmem>>, vector<1x128xf32>
      %165 = vector.broadcast %164 : vector<1x128xf32> to vector<32x128xf32>
      %166 = arith.addf %163, %165 : vector<32x128xf32>
      %c0_71 = arith.constant 0 : index
      %c0_72 = arith.constant 0 : index
      %167 = vector.load %arg20[%c0_71, %c0_72] : memref<32x128xf32, #tpu.memory_space<vmem>>, vector<32x128xf32>
      tpu.vector_store %arg20[%c0_71, %c0_72], %166 {strides = array<i32>} : memref<32x128xf32, #tpu.memory_space<vmem>>, vector<32x128xf32>,
    } else {
    }
    return
  }
  func.func @transform_0(%arg0: i32) -> (i32, i32) {
    %c0_i32 = arith.constant 0 : i32
    %c0_i32_0 = arith.constant 0 : i32
    %c0_i32_1 = arith.constant 0 : i32
    return %c0_i32, %c0_i32_0 : i32, i32
  }
  func.func @transform_1(%arg0: i32) -> (i32, i32) {
    %c0_i32 = arith.constant 0 : i32
    %c0_i32_0 = arith.constant 0 : i32
    %c0_i32_1 = arith.constant 0 : i32
    return %c0_i32, %c0_i32_0 : i32, i32
  }
  func.func @transform_2(%arg0: i32) -> (i32, i32, i32) {
    %c0_i32 = arith.constant 0 : i32
    %c0_i32_0 = arith.constant 0 : i32
    %c0_i32_1 = arith.constant 0 : i32
    %c0_i32_2 = arith.constant 0 : i32
    return %c0_i32, %c0_i32_0, %c0_i32_1 : i32, i32, i32
  }
  func.func @transform_3(%arg0: i32) -> (i32, i32) {
    %c0_i32 = arith.constant 0 : i32
    %c0_i32_0 = arith.constant 0 : i32
    %c0_i32_1 = arith.constant 0 : i32
    return %c0_i32, %c0_i32_0 : i32, i32
  }
  func.func @transform_4(%arg0: i32) -> (i32, i32) {
    %c0_i32 = arith.constant 0 : i32
    %c0_i32_0 = arith.constant 0 : i32
    %c0_i32_1 = arith.constant 0 : i32
    return %c0_i32, %c0_i32_0 : i32, i32
  }
  func.func @transform_5(%arg0: i32) -> (i32, i32, i32) {
    %c0_i32 = arith.constant 0 : i32
    %c0_i32_0 = arith.constant 0 : i32
    %c0_i32_1 = arith.constant 0 : i32
    return %arg0, %c0_i32, %c0_i32_0 : i32, i32, i32
  }
  func.func @transform_6(%arg0: i32) -> (i32, i32, i32) {
    %c0_i32 = arith.constant 0 : i32
    %c0_i32_0 = arith.constant 0 : i32
    %c0_i32_1 = arith.constant 0 : i32
    return %arg0, %c0_i32, %c0_i32_0 : i32, i32, i32
  }
  func.func @transform_7(%arg0: i32) -> (i32, i32, i32) {
    %c0_i32 = arith.constant 0 : i32
    %c0_i32_0 = arith.constant 0 : i32
    %c0_i32_1 = arith.constant 0 : i32
    return %arg0, %c0_i32, %c0_i32_0 : i32, i32, i32
  }
  func.func @transform_8(%arg0: i32) -> (i32, i32, i32) {
    %c0_i32 = arith.constant 0 : i32
    %c0_i32_0 = arith.constant 0 : i32
    %c0_i32_1 = arith.constant 0 : i32
    return %arg0, %c0_i32, %c0_i32_0 : i32, i32, i32
  }
  func.func @transform_9(%arg0: i32) -> (i32, i32, i32) {
    %c0_i32 = arith.constant 0 : i32
    %c0_i32_0 = arith.constant 0 : i32
    %c0_i32_1 = arith.constant 0 : i32
    return %arg0, %c0_i32, %c0_i32_0 : i32, i32, i32
  }
  func.func @transform_10(%arg0: i32) -> (i32, i32, i32) {
    %c0_i32 = arith.constant 0 : i32
    %c0_i32_0 = arith.constant 0 : i32
    %c0_i32_1 = arith.constant 0 : i32
    return %arg0, %c0_i32, %c0_i32_0 : i32, i32, i32
  }
  func.func @transform_11(%arg0: i32) -> (i32, i32, i32) {
    %c0_i32 = arith.constant 0 : i32
    %c0_i32_0 = arith.constant 0 : i32
    %c0_i32_1 = arith.constant 0 : i32
    return %arg0, %c0_i32, %c0_i32_0 : i32, i32, i32
  }
  func.func @transform_12(%arg0: i32) -> (i32, i32, i32) {
    %c0_i32 = arith.constant 0 : i32
    %c0_i32_0 = arith.constant 0 : i32
    %c0_i32_1 = arith.constant 0 : i32
    return %arg0, %c0_i32, %c0_i32_0 : i32, i32, i32
  }
  func.func @transform_13(%arg0: i32) -> (i32, i32, i32) {
    %c0_i32 = arith.constant 0 : i32
    %c0_i32_0 = arith.constant 0 : i32
    %c0_i32_1 = arith.constant 0 : i32
    return %arg0, %c0_i32, %c0_i32_0 : i32, i32, i32
  }
  func.func @transform_14(%arg0: i32) -> (i32, i32, i32) {
    %c0_i32 = arith.constant 0 : i32
    %c0_i32_0 = arith.constant 0 : i32
    %c0_i32_1 = arith.constant 0 : i32
    return %arg0, %c0_i32, %c0_i32_0 : i32, i32, i32
  }
  func.func @transform_15(%arg0: i32) -> (i32, i32, i32) {
    %c0_i32 = arith.constant 0 : i32
    %c0_i32_0 = arith.constant 0 : i32
    %c0_i32_1 = arith.constant 0 : i32
    return %arg0, %c0_i32, %c0_i32_0 : i32, i32, i32
  }
  func.func @transform_16(%arg0: i32) -> (i32, i32, i32) {
    %c0_i32 = arith.constant 0 : i32
    %c0_i32_0 = arith.constant 0 : i32
    %c0_i32_1 = arith.constant 0 : i32
    return %arg0, %c0_i32, %c0_i32_0 : i32, i32, i32
  }
  func.func @transform_17(%arg0: i32) -> (i32, i32) {
    %c0_i32 = arith.constant 0 : i32
    %c0_i32_0 = arith.constant 0 : i32
    %c0_i32_1 = arith.constant 0 : i32
    return %c0_i32, %c0_i32_0 : i32, i32
  }
  func.func @transform_18(%arg0: i32) -> (i32, i32) {
    %c0_i32 = arith.constant 0 : i32
    %c0_i32_0 = arith.constant 0 : i32
    %c0_i32_1 = arith.constant 0 : i32
    return %c0_i32, %c0_i32_0 : i32, i32
  }
  func.func @transform_19(%arg0: i32) -> (i32, i32) {
    %c0_i32 = arith.constant 0 : i32
    %c0_i32_0 = arith.constant 0 : i32
    %c0_i32_1 = arith.constant 0 : i32
    return %c0_i32, %c0_i32_0 : i32, i32
  }
}

</mosaic_0001>

<bundles_post_ra>
// kernel: squeeze.1
= control target key start
LH: loop header
LB: loop body
LE: loop exit
PB: predicated region body
PF: predicated region fallthrough
CT: control target
= control target key end

     0   :  { %s77_s0 = inlined_call_operand.vmem [shape: f32[32], index: 0, kind: input, shape index: {}]   ;;  %s78_s1 = inlined_call_operand.hbm [shape: f32[2,16], index: 1, kind: output, shape index: {}]  }
   0x1   :  { %v6_v0 = vld [vmem:[%s77_s0] sm:$0x1] }
   0x2   :  { %2 = vsyncpa [#allocation1], 0  ;;  %7 = vst [vmem:[#allocation3] sm:$0x1] %v6_v0  ;;  %vm9_vm0 = vcmask 130048   ;;  %s59_s0 = smov 112  }
   0x3   :  { %s60_s8 = smov [#allocation0]  }
   0x4   :  { %s29_s9 = sshll.u32 %s60_s8, 4  ;;  %s30_s9 = int_to_ptr.vmem [resolvable:$true] %s29_s9 }
   0x5   :  { %s37_s10 = scalar_lea.vmem %s30_s9, 32  ;;  %p42_p1 = scmp.lt.s32.totalorder %s30_s9, %s30_s9 }
   0x6   :  { %p38_p0 = scmp.ne.s32.totalorder %s30_s9, %s37_s10  ;;  %p43_p2 = scmp.lt.s32.totalorder %s37_s10, %s37_s10 }
   0x8   :  { %p44_p3 = por %p43_p2, %p42_p1 }
   0x9   :  { %v11_v1 = vld [vmem:[#allocation3] sm:$0x1]  }
   0xa   :  { %v8_v2 = vld [vmem:[#allocation3] sm:$0x1]   ;;  %12 = vrot.lane.b32.xlu0 %v11_v1, %s59_s0  ;;  %p45_p4 = pnand %p44_p3, %p38_p0 }
   0xb   :  { %10 = vst.msk [vmem:[#allocation2] sm:$0x1] %vm9_vm0, %v8_v2  }
  0x7c   :  { %v13_v3 = vpop.permute.xlu0 %12  }
  0x7d   :  { %16 = vst.msk [vmem:[#allocation2 + $0x1] sm:$0x1] %vm9_vm0, %v13_v3  }
  0x84   :  { %v21_v4 = vld [vmem:[#allocation2] sm:$0x3] }
  0x85   :  { %24 = vst [vmem:[#allocation0] sm:$0x3] %v21_v4 }
  0x86   :  { %48 = shalt.err (!%p45_p4)
}
  0x87   :  { %32 = dma.vmem_to_hbm [thread:$0]  %s30_s9, 32, %s78_s1, [#allocation1]  }
  0x88   :  { %57 = dma.done.wait [#allocation1], 32  }
  0x89   :  { %58 = vsyncadd [#allocation1], 4294967264 }
  0x8a   :  { %34 = vsyncpa [#allocation1], 1 }

// kernel: cause_predictor_forward.1
= control target key start
LH: loop header
LB: loop body
LE: loop exit
PB: predicated region body
PF: predicated region fallthrough
CT: control target
= control target key end

     0   :  { %s8180_s0 = inlined_call_operand.vmem [shape: f32[32,256], index: 0, kind: input, shape index: {}]   ;;  %s8181_s1 = inlined_call_operand.vmem [shape: f32[16,256], index: 1, kind: input, shape index: {}]   ;;  %s8182_s2 = inlined_call_operand.vmem [shape: f32[2,1,16], index: 2, kind: input, shape index: {}]   ;;  %s8183_s3 = inlined_call_operand.vmem [shape: f32[1,256], index: 3, kind: input, shape index: {}]   ;;  %s8184_s4 = inlined_call_operand.vmem [shape: f32[1,256], index: 4, kind: input, shape index: {}]   ;;  %s8185_s5 = inlined_call_operand.hbm [shape: bf16[2,256,768], index: 5, kind: input, shape index: {}]   ;;  %s8186_s6 = inlined_call_operand.vmem [shape: f32[2,1,768], index: 6, kind: input, shape index: {}]   ;;  %s8187_s7 = inlined_call_operand.vmem [shape: bf16[2,256,256], index: 7, kind: input, shape index: {}]   ;;  %s8188_s8 = inlined_call_operand.vmem [shape: f32[2,1,256], index: 8, kind: input, shape index: {}]   ;;  %s8189_s9 = inlined_call_operand.vmem [shape: f32[2,1,256], index: 9, kind: input, shape index: {}]   ;;  %s8190_s10 = inlined_call_operand.vmem [shape: f32[2,1,256], index: 10, kind: input, shape index: {}]   ;;  %s8191_s11 = inlined_call_operand.hbm [shape: bf16[2,256,1024], index: 11, kind: input, shape index: {}]   ;;  %s8192_s12 = inlined_call_operand.vmem [shape: f32[2,1,1024], index: 12, kind: input, shape index: {}]   ;;  %s8193_s13 = inlined_call_operand.hbm [shape: bf16[2,1024,256], index: 13, kind: input, shape index: {}]   ;;  %s8194_s14 = inlined_call_operand.vmem [shape: f32[2,1,256], index: 14, kind: input, shape index: {}]   ;;  %s8195_s15 = inlined_call_operand.vmem [shape: f32[2,1,256], index: 15, kind: input, shape index: {}]   ;;  %s8196_s16 = inlined_call_operand.vmem [shape: f32[2,1,256], index: 16, kind: input, shape index: {}]   ;;  %s8197_s17 = inlined_call_operand.vmem [shape: bf16[256,128], index: 17, kind: input, shape index: {}]   ;;  %s8198_s18 = inlined_call_operand.vmem [shape: f32[1,128], index: 18, kind: input, shape index: {}]   ;;  %s8199_s19 = inlined_call_operand.vmem [shape: f32[32,128], index: 19, kind: output, shape index: {}]  }
   0x1   :  { %8212 = sst [smem:[#allocation14_spill]] %s8180_s0 }
   0x2   :  { %8213 = sst [smem:[#allocation15_spill]] %s8181_s1 }
   0x3   :  { %8214 = sst [smem:[#allocation16_spill]] %s8182_s2 }
   0x4   :  { %8215 = sst [smem:[#allocation17_spill]] %s8183_s3 }
   0x5   :  { %8216 = sst [smem:[#allocation18_spill]] %s8184_s4 }
   0x6   :  { %8217 = sst [smem:[#allocation19_spill]] %s8185_s5 }
   0x7   :  { %8218 = sst [smem:[#allocation20_spill]] %s8186_s6 }
   0x8   :  { %8219 = sst [smem:[#allocation21_spill]] %s8187_s7 }
   0x9   :  { %8220 = sst [smem:[#allocation22_spill]] %s8191_s11 }
   0xa   :  { %8221 = sst [smem:[#allocation23_spill]] %s8193_s13 }
   0xb   :  { %8222 = sst [smem:[#allocation24_spill]] %s8195_s15 }
   0xc   :  { %8223 = sst [smem:[#allocation25_spill]] %s8196_s16 }
   0xd   :  { %8224 = sst [smem:[#allocation26_spill]] %s8197_s17 }
   0xe   :  { %8225 = sst [smem:[#allocation27_spill]] %s8198_s18 }
   0xf   :  { %8226 = sst [smem:[#allocation28_spill]] %s8199_s19 }
  0x10   :  { %24 = vsyncpa [#allocation4], 0 }
  0x11   :  { %26 = vsyncpa [#allocation4 + $0x1], 0 }
  0x12   :  { %27 = vsyncpa [#allocation6], 0 }
  0x13   :  { %29 = vsyncpa [#allocation6 + $0x1], 0  ;;  %s6803_s0 = smov 0   ;;  %s6805_s30 = smov 0  }
  0x14   :  { %s6807_s20 = smov 0   ;;  %s6809_s21 = smov 0  }
  0x15 LB: > { %8227 = sst [smem:[#allocation10_spill]] %s6682_s30  ;;  %s6822_s1 = sadd.s32 4294967295, %s6690_s21   ;;  %s6690_s21 = sphi %s6809_s21, %s8259_s21   ;;  %s6686_s20 = sphi %s6807_s20, %s8262_s20   ;;  %s6682_s30 = sphi %s6805_s30, %s8261_s30   ;;  %s6678_s0 = sphi %s6803_s0, %s8260_s0  }
  0x16   : > { %8228 = sst [smem:[#allocation11_spill]] %s6686_s20  ;;  %s6825_s22 = sadd.s32 1, %s6690_s21  }
  0x17   : > { %8229 = sst [smem:[#allocation12_spill]] %s6825_s22  ;;  %s144_s2 = ssub.s32 %s6690_s21, %s6825_s22 }
  0x18   : > { %s147_s23 = sadd.s32 1, %s6686_s20  ;;  %p145_p0 = scmp.eq.s32.totalorder %s144_s2, 0 }
  0x19   : > { %p154_p1 = scmp.ne.s32.totalorder %s6686_s20, %s6682_s30  ;;  %p155_p2 = scmp.eq.s32.totalorder %s6690_s21, 0 }
  0x1a   : > { %p160_p3 = scmp.ne.s32.totalorder %s6682_s30, %s6678_s0  ;;  %p161_p5 = scmp.eq.s32.totalorder %s6822_s1, 0 }
  0x1b   : > { %s6835_s24 = scalar_select %p145_p0, %s6686_s20, %s147_s23  }
  0x1c   : > { %p156_p4 = por %p155_p2, %p154_p1  ;;  %p5999_p6 = scmp.lt.s32.totalorder %s6690_s21, 2 }
  0x1d   : > { %8230 = sst [smem:[#allocation13_spill]] %s6835_s24  ;;  %p6839_p7 = por %p161_p5, %p160_p3 }
  0x1e   : > { %s6844_s3 = sand.u32 1, %s6686_s20   ;;  %p6846_p8 = pnand %p5999_p6, %p156_p4 }
  0x1f   : > { %s8231_s25 = scalar_select %p6839_p7, 1, 0 }
  0x20   : > { %s611_s27 = sand.u32 1, %s6690_s21   ;;  %s8207_s28 = sshll.u32 %s6844_s3, 10 }
  0x21   : > { %s8208_s29 = sshll.u32 %s6690_s21, 14  ;;  %s615_s0 = scalar_lea.vmem [#allocation5], %s8207_s28 }
  0x22   : > { %s622_s2 = sshll.u32 %s615_s0, 4  ;;  %s8233_s11 = sld [smem:[#allocation22_spill]]  ;;  %s6862_s2 = int_to_ptr.vmem [resolvable:$true] %s622_s2 }
  0x23   : > { %s6864_s20 = scalar_lea.sflag [#allocation6], %s611_s27  ;;  %p6870_p10 = pneg %p6846_p8 }
  0x28   : > { %s6860_s22 = scalar_lea.hbm %s8233_s11, %s8208_s29  ;;  %s6573_s23 = scalar_lea.hbm %s8233_s11, 32768 }
  0x29   : > { %s6568_s19 = scalar_lea.hbm %s6860_s22, 16384  ;;  %p6574_p13 = scmp.lt.s32.totalorder %s6860_s22, %s8233_s11 }
  0x2a   : > { %p6569_p9 = scmp.ne.s32.totalorder %s6860_s22, %s6568_s19  ;;  %p6575_p0 = scmp.lt.s32.totalorder %s6573_s23, %s6568_s19 }
  0x2c   : > { %p6571_p11 = pnand %p6870_p10, %p6569_p9  ;;  %p6576_p1 = por %p6575_p0, %p6574_p13 }
  0x2e   : > { %p6572_p12 = pneg %p6571_p11 }
  0x30   : > { %p6577_p2 = pnand %p6576_p1, %p6572_p12 }
  0x32   : > { %6580 = shalt.err (!%p6577_p2)
}
  0x33   : > { %s6581_s27 = scalar_lea.vmem %s6862_s2, 16384  ;;  %s6692_s17 = smov [#allocation5]  }
  0x34   : > { %p6582_p3 = scmp.ne.s32.totalorder %s6862_s2, %s6581_s27  ;;  %s6586_s24 = sshll.u32 %s6692_s17, 4  ;;  %s6587_s24 = int_to_ptr.vmem [resolvable:$false] %s6586_s24 }
  0x35   : > { %s6588_s0 = scalar_lea.vmem %s6587_s24, 32768  ;;  %p6589_p6 = scmp.lt.s32.totalorder %s6862_s2, %s6587_s24 }
  0x36   : > { %p6584_p4 = pnand %p6582_p3, %p6870_p10  ;;  %p6590_p9 = scmp.lt.s32.totalorder %s6588_s0, %s6581_s27 }
  0x38   : > { %p6585_p5 = pneg %p6584_p4  ;;  %p6591_p11 = por %p6590_p9, %p6589_p6 }
  0x3a   : > { %p6592_p7 = pnand %p6591_p11, %p6585_p5 }
  0x3c   : > { %6595 = shalt.err (!%p6592_p7)
}
  0x3d   : > { %s6693_s19 = smov 512   ;;  %s6694_s17 = smov 32  }
  0x3e   : > { %5995 = dma.hbm_to_vmem [thread:$0]  (!%p6846_p8), %s6860_s22, 16384, %s6862_s2, %s6864_s20, %s6693_s19, %s6693_s19, %s6694_s17  }
  0x3f   : > { %s8235_s28 = sshll.u32 %s6690_s21, 14  ;;  %s8236_s13 = sld [smem:[#allocation23_spill]] }
  0x40   : > { %s8237_s24 = sshll.u32 %s6844_s3, 10  ;;  %p5445_p7 = scmp.ge.s32.totalorder %s6690_s21, 1 }
  0x41   : > { %s643_s0 = scalar_lea.vmem [#allocation7], %s8237_s24  ;;  %p679_p12 = scmp.lt.s32.totalorder %s6690_s21, 3 }
  0x42   : > { %s650_s11 = sshll.u32 %s643_s0, 4  ;;  %s5979_s4 = smul.u32 768, %s6844_s3  ;;  %s6903_s11 = int_to_ptr.vmem [resolvable:$true] %s650_s11 }
  0x43   : > { %p6907_p13 = pnand %p5445_p7, %p679_p12  ;;  %s5980_s22 = smul.u32 12288, %s6690_s21 }
  0x44   : > { %s8239_s5 = sld [smem:[#allocation19_spill]]  ;;  %s555_s23 = scalar_lea.sflag [#allocation4], %s6844_s3 }
  0x45   : > { %s6898_s27 = scalar_lea.hbm %s8236_s13, %s8235_s28  ;;  %s558_s28 = scalar_lea.vmem [#allocation3], %s5979_s4 }
  0x46   : > { %s8238_s16 = scalar_select %p6907_p13, 1, 0 }
  0x47   : > { %s565_s29 = sshll.u32 %s558_s28, 4  ;;  %s6917_s29 = int_to_ptr.vmem [resolvable:$true] %s565_s29 }
  0x4a   : > { %s6915_s17 = scalar_lea.hbm %s8239_s5, %s5980_s22  ;;  %s6601_s15 = scalar_lea.hbm %s8239_s5, 24576 }
  0x4b   : > { %s6596_s24 = scalar_lea.hbm %s6915_s17, 12288  ;;  %p6602_p3 = scmp.lt.s32.totalorder %s6915_s17, %s8239_s5 }
  0x4c   : > { %p6597_p0 = scmp.ne.s32.totalorder %s6915_s17, %s6596_s24  ;;  %p6603_p4 = scmp.lt.s32.totalorder %s6601_s15, %s6596_s24 }
  0x4e   : > { %p6599_p1 = pnand %p6597_p0, %p6870_p10  ;;  %p6604_p5 = por %p6603_p4, %p6602_p3 }
  0x50   : > { %p6600_p2 = pneg %p6599_p1 }
  0x52   : > { %p6605_p6 = pnand %p6604_p5, %p6600_p2 }
  0x54   : > { %6608 = shalt.err (!%p6605_p6)
}
  0x55   : > { %s6609_s4 = scalar_lea.vmem %s6917_s29, 12288  ;;  %s6695_s19 = smov [#allocation3]  }
  0x56   : > { %p6610_p9 = scmp.ne.s32.totalorder %s6917_s29, %s6609_s4  ;;  %s6614_s28 = sshll.u32 %s6695_s19, 4  ;;  %s6615_s28 = int_to_ptr.vmem [resolvable:$false] %s6614_s28 }
  0x57   : > { %s6616_s0 = scalar_lea.vmem %s6615_s28, 24576  ;;  %p6617_p12 = scmp.lt.s32.totalorder %s6917_s29, %s6615_s28 }
  0x58   : > { %p6612_p11 = pnand %p6610_p9, %p6870_p10  ;;  %p6618_p0 = scmp.lt.s32.totalorder %s6616_s0, %s6609_s4 }
  0x5a   : > { %p6613_p7 = pneg %p6612_p11  ;;  %p6619_p1 = por %p6618_p0, %p6617_p12 }
  0x5c   : > { %p6620_p13 = pnand %p6619_p1, %p6613_p7 }
  0x5e   : > { %6623 = shalt.err (!%p6620_p13)
}
  0x5f   : > { %s6696_s15 = smov 384   ;;  %s6697_s24 = smov 24  }
  0x60   : > { %5992 = dma.hbm_to_vmem [thread:$0]  (!%p6846_p8), %s6915_s17, 12288, %s6917_s29, %s555_s23, %s6696_s15, %s6696_s15, %s6697_s24  }
  0x61   : > { %s6624_s21 = scalar_lea.hbm %s6898_s27, 16384  ;;  %s6629_s4 = scalar_lea.hbm %s8236_s13, 32768 }
  0x62   : > { %p6625_p2 = scmp.ne.s32.totalorder %s6898_s27, %s6624_s21  ;;  %p6630_p13 = scmp.lt.s32.totalorder %s6898_s27, %s8236_s13 }
  0x63   : > { %p6631_p5 = scmp.lt.s32.totalorder %s6629_s4, %s6624_s21 }
  0x64   : > { %p6627_p3 = pnand %p6625_p2, %p6870_p10 }
  0x65   : > { %p6632_p6 = por %p6631_p5, %p6630_p13 }
  0x66   : > { %p6628_p4 = pneg %p6627_p3 }
  0x68   : > { %p6633_p9 = pnand %p6632_p6, %p6628_p4 }
  0x6a   : > { %6636 = shalt.err (!%p6633_p9)
}
  0x6b   : > { %s6637_s3 = scalar_lea.vmem %s6903_s11, 16384  ;;  %s6698_s17 = smov [#allocation7]  }
  0x6c   : > { %p6638_p11 = scmp.ne.s32.totalorder %s6903_s11, %s6637_s3  ;;  %s6642_s29 = sshll.u32 %s6698_s17, 4  ;;  %s6643_s29 = int_to_ptr.vmem [resolvable:$false] %s6642_s29 }
  0x6d   : > { %s6644_s23 = scalar_lea.vmem %s6643_s29, 32768  ;;  %p6645_p0 = scmp.lt.s32.totalorder %s6903_s11, %s6643_s29 }
  0x6e   : > { %p6640_p7 = pnand %p6638_p11, %p6870_p10  ;;  %p6646_p1 = scmp.lt.s32.totalorder %s6644_s23, %s6637_s3 }
  0x70   : > { %p6641_p12 = pneg %p6640_p7  ;;  %p6647_p2 = por %p6646_p1, %p6645_p0 }
  0x72   : > { %p6648_p3 = pnand %p6647_p2, %p6641_p12 }
  0x74   : > { %6651 = shalt.err (!%p6648_p3)
}
  0x75   : > { %s6699_s0 = smov 128   ;;  %s6700_s15 = smov 8  }
  0x76   : > { %5998 = dma.hbm_to_vmem [thread:$0]  (!%p6846_p8), %s6898_s27, 16384, %s6903_s11, %s6864_s20, %s6699_s0, %s6699_s0, %s6700_s15  }
  0x77   : > { %p8240_p10 = scmp.ne.s32.totalorder %s8238_s16, 0 }
  0x78   : > { %s685_s18 = sand.u32 (!%p8240_p10), 1, %s6682_s30   ;;  %p8241_p4 = scmp.ne.s32.totalorder (!%p8240_p10), %s8231_s25, 0 }
  0x79   : > { %683 = sbr.rel (%p8240_p10) target bundleno = 3047 (0xbe7), region = 96  ;;  %s686_s21 = scalar_lea.sflag (!%p8240_p10), [#allocation4], %s685_s18 }
  0x7a   : > { %s5981_s24 = smul.u32 (!%p8240_p10), 768, %s685_s18 }
  0x7c   : > { %s6966_s2 = scalar_lea.vmem (!%p8240_p10), [#allocation3], %s5981_s24 }
  0x7e   : > { %6669 = dma.done.wait (%p8241_p4), %s686_s21, 12288  }
  0x7f   : > { %6671 = vsyncadd (%p8241_p4), %s686_s21, 4294955008  ;;  %s694_s22 = sand.u32 1, %s6822_s1   ;;  %s5446_s26 = sshll.u32 %s685_s18, 10 }
  0x80   : > { %s695_s11 = scalar_lea.sflag [#allocation6], %s694_s22  ;;  %s6973_s20 = scalar_lea.vmem [#allocation5], %s5446_s26 }
  0x81   : > { %6673 = dma.done.wait (%p8241_p4), %s695_s11, 32768  }
  0x82   : > { %6675 = vsyncadd (%p8241_p4), %s695_s11, 4294934528  ;;  %p804_p8 = scmp.lt.s32.totalorder %s6822_s1, 1  ;;  %s8242_s7 = sld [smem:[#allocation21_spill]] }
  0x83   : > { %s8243_s6 = sld [smem:[#allocation20_spill]]  ;;  %s7022_s11 = scalar_lea.vmem [#allocation7], %s5446_s26 }
  0x84   : > { %s805_s16 = scalar_select %p804_p8, %s6822_s1, 1 }
  0x85   : > { %s8244_s18 = sld [smem:[#allocation24_spill]]  ;;  %p5457_p13 = scmp.ne.s32.totalorder %s6822_s1, 0 }
  0x86   : > { %s5982_s27 = smul.u32 6, %s805_s16  ;;  %s5870_s4 = sshll.u32 %s805_s16, 8 }
  0x87   : > { %s6986_s17 = sshll.u32 %s805_s16, 1  ;;  %s5453_s28 = sshll.u32 %s805_s16, 3 }
  0x88   : > { %s6984_s3 = scalar_lea.vmem %s8242_s7, %s5870_s4  ;;  %s824_s19 = scalar_lea.vmem %s8190_s10, %s6986_s17 }
  0x89   : > { %s6991_s25 = scalar_lea.vmem %s8243_s6, %s5982_s27  ;;  %s832_s5 = scalar_lea.vmem %s8194_s14, %s6986_s17 }
  0x8a   : > { %s7012_s6 = scalar_lea.vmem %s8192_s12, %s5453_s28  ;;  %s8245_s22 = sld [smem:[#allocation25_spill]] }
  0x8b   : > { %s836_s13 = scalar_lea.vmem %s8244_s18, %s6986_s17  ;;  %s8246_s29 = sld [smem:[#allocation14_spill]] (!%p5457_p13) }
  0x8c   : > { %845 = sbr.rel (%p5457_p13) target bundleno = 468 (0x1d4), region = 112  ;;  %s8247_s18 = sld [smem:[#allocation15_spill]] (!%p5457_p13) }
  0x8d   : > { %s8248_s7 = sld [smem:[#allocation17_spill]] (!%p5457_p13) }
  0x8e   : > { %s8249_s27 = sld [smem:[#allocation18_spill]] (!%p5457_p13) }
  0x90   : > { %s840_s30 = scalar_lea.vmem %s8245_s22, %s6986_s17 }
  0x91   : > { %v846_v0 = vld [vmem:[%s8246_s29] sm:$0xff]  ;;  %v847_v1 = vld [vmem:[%s8246_s29 + $0x8] sm:$0xff]  ;;  %v848_v10 = vld [vmem:[%s8246_s29 + $0x10] sm:$0xff]  ;;  %v934_v58 = vlaneseq }
  0x92   : > { %v854_v2 = vld [vmem:[%s8247_s18] sm:$0xff]  ;;  %v855_v3 = vld [vmem:[%s8247_s18 + $0x8] sm:$0xff]  ;;  %v849_v11 = vld [vmem:[%s8246_s29 + $0x18] sm:$0xff] }
  0x93   : > { %v858_v4 = vadd.f32 %v854_v2, %v846_v0  ;;  %v850_v5 = vld [vmem:[%s8246_s29 + $0x20] sm:$0xff]  ;;  %v851_v6 = vld [vmem:[%s8246_s29 + $0x28] sm:$0xff]  ;;  %v859_v7 = vadd.f32 %v855_v3, %v847_v1  ;;  %v856_v12 = vld [vmem:[%s8247_s18 + $0x10] sm:$0xff]  ;;  %v935_v0 = vshrl.u32 %v934_v58, 7 }
  0x94   : > { %v862_v8 = vadd.f32 %v854_v2, %v850_v5  ;;  %v863_v9 = vadd.f32 %v855_v3, %v851_v6  ;;  %v857_v13 = vld [vmem:[%s8247_s18 + $0x18] sm:$0xff]  ;;  %v860_v14 = vadd.f32 %v856_v12, %v848_v10  ;;  %v852_v15 = vld [vmem:[%s8246_s29 + $0x30] sm:$0xff]  ;;  %v867_v5 = vld [vmem:[%s8249_s27] sm:$0x3] }
  0x95   : > { %v853_v16 = vld [vmem:[%s8246_s29 + $0x38] sm:$0xff]  ;;  %v868_v17 = vadd.f32 %v859_v7, %v858_v4  ;;  %v861_v19 = vadd.f32 %v857_v13, %v849_v11  ;;  %v864_v20 = vadd.f32 %v856_v12, %v852_v15  ;;  %v936_v2 = vsub.s32 0, %v935_v0 }
  0x96   : > { %v874_v18 = vadd.f32 %v863_v9, %v862_v8  ;;  %v865_v21 = vadd.f32 %v857_v13, %v853_v16  ;;  %v940_v3 = vsub.s32 1, %v935_v0 }
  0x97   : > { %869 = vadd.xlane.f32.xlu0 %v868_v17  ;;  %v871_v22 = vadd.f32 %v861_v19, %v860_v14 }
  0x98   : > { %875 = vadd.xlane.f32.xlu1 %v874_v18  ;;  %v877_v23 = vadd.f32 %v865_v21, %v864_v20  ;;  %v960_v10 = vrot.slane %v867_v5, %v940_v3 }
  0x9b   : > { %872 = vadd.xlane.f32.xlu0 %v871_v22 }
  0x9c   : > { %878 = vadd.xlane.f32.xlu1 %v877_v23 }
 0x120   : > { %v870_v24 = vpop.xlane.xlu0 %869 }
 0x121   : > { %v876_v25 = vpop.xlane.xlu1 %875  ;;  %v881_v26 = vmul.f32 0.00390625, %v870_v24 }
 0x122   : > { %v883_v27 = vmul.f32 0.00390625, %v876_v25 }
 0x123   : > { %v885_v28 = vsub.f32 %v858_v4, %v881_v26  ;;  %v886_v29 = vsub.f32 %v859_v7, %v881_v26  ;;  %v866_v4 = vld [vmem:[%s8248_s7] sm:$0x3] }
 0x124   : > { %v7061_v30 = vsub.f32 %v862_v8, %v883_v27  ;;  %v7063_v31 = vsub.f32 %v863_v9, %v883_v27  ;;  %v873_v32 = vpop.xlane.xlu0 %872  ;;  %v937_v6 = vrot.slane %v866_v4, %v936_v2  ;;  %v941_v7 = vrot.slane %v866_v4, %v940_v3 }
 0x125   : > { %v879_v33 = vpop.xlane.xlu1 %878  ;;  %v882_v34 = vmul.f32 0.00390625, %v873_v32  ;;  %v893_v36 = vmul.f32 %v885_v28, %v885_v28  ;;  %v894_v37 = vmul.f32 %v886_v29, %v886_v29  ;;  %v956_v9 = vrot.slane %v867_v5, %v936_v2 }
 0x126   : > { %v884_v35 = vmul.f32 0.00390625, %v879_v33  ;;  %v897_v38 = vmul.f32 %v7061_v30, %v7061_v30  ;;  %v898_v39 = vmul.f32 %v7063_v31, %v7063_v31 }
 0x127   : > { %v887_v40 = vsub.f32 %v860_v14, %v882_v34  ;;  %v888_v41 = vsub.f32 %v861_v19, %v882_v34  ;;  %v901_v44 = vadd.f32 %v894_v37, %v893_v36 }
 0x128   : > { %v891_v42 = vsub.f32 %v864_v20, %v884_v35  ;;  %v892_v43 = vsub.f32 %v865_v21, %v884_v35  ;;  %v907_v49 = vadd.f32 %v898_v39, %v897_v38 }
 0x129   : > { %v895_v45 = vmul.f32 %v887_v40, %v887_v40  ;;  %v896_v46 = vmul.f32 %v888_v41, %v888_v41  ;;  %902 = vadd.xlane.f32.xlu0 %v901_v44 }
 0x12a   : > { %v899_v47 = vmul.f32 %v891_v42, %v891_v42  ;;  %v900_v48 = vmul.f32 %v892_v43, %v892_v43 }
 0x12b   : > { %v904_v50 = vadd.f32 %v896_v46, %v895_v45 }
 0x12c   : > { %v910_v51 = vadd.f32 %v900_v48, %v899_v47 }
 0x12d   : > { %905 = vadd.xlane.f32.xlu1 %v904_v50  ;;  %908 = vadd.xlane.f32.xlu0 %v907_v49 }
 0x131   : > { %911 = vadd.xlane.f32.xlu1 %v910_v51 }
 0x1b2   : > { %v903_v52 = vpop.xlane.xlu0 %902 }
 0x1b3   : > { %v913_v53 = vmul.f32 0.00390625, %v903_v52 }
 0x1b5   : > { %v917_v54 = vadd.f32 1e-12, %v913_v53 }
 0x1b6   : > { %v906_v55 = vpop.xlane.xlu1 %905  ;;  %v909_v57 = vpop.xlane.xlu0 %908 }
 0x1b7   : > { %v914_v56 = vmul.f32 0.00390625, %v906_v55  ;;  %6040 = vrsqrt.f32 %v917_v54  ;;  %v915_v59 = vmul.f32 0.00390625, %v909_v57 }
 0x1b9   : > { %v918_v60 = vadd.f32 1e-12, %v914_v56  ;;  %v919_v61 = vadd.f32 1e-12, %v915_v59 }
 0x1ba   : > { %v912_v62 = vpop.xlane.xlu1 %911 }
 0x1bb   : > { %6042 = vrsqrt.f32 %v918_v60  ;;  %v916_v63 = vmul.f32 0.00390625, %v912_v62 }
 0x1bc   : > { %6044 = vrsqrt.f32 %v919_v61 }
 0x1bd   : > { %v920_v1 = vadd.f32 1e-12, %v916_v63 }
 0x1bf   : > { %6046 = vrsqrt.f32 %v920_v1 }
 0x1c4   : > { %v6041_v8 = vpop.eup %6040 }
 0x1c5   : > { %v925_v11 = vmul.f32 %v6041_v8, %v885_v28  ;;  %v926_v12 = vmul.f32 %v6041_v8, %v886_v29 }
 0x1c7   : > { %v944_v14 = vmul.f32 %v937_v6, %v925_v11  ;;  %v945_v15 = vmul.f32 %v941_v7, %v926_v12 }
 0x1c8   : > { %v6043_v13 = vpop.eup %6042 }
 0x1c9   : > { %v6045_v16 = vpop.eup %6044  ;;  %v927_v17 = vmul.f32 %v6043_v13, %v887_v40  ;;  %v928_v18 = vmul.f32 %v6043_v13, %v888_v41  ;;  %v963_v19 = vadd.f32 %v956_v9, %v944_v14  ;;  %v964_v20 = vadd.f32 %v960_v10, %v945_v15 }
 0x1ca   : > { %v929_v21 = vmul.f32 %v6045_v16, %v7061_v30  ;;  %v930_v22 = vmul.f32 %v6045_v16, %v7063_v31 }
 0x1cb   : > { %v946_v23 = vmul.f32 %v937_v6, %v927_v17  ;;  %v947_v24 = vmul.f32 %v941_v7, %v928_v18  ;;  %971 = vst [vmem:[#allocation2 + $0x30] sm:$0xff] %v963_v19  ;;  %972 = vst [vmem:[#allocation2] sm:$0xff] %v964_v20 }
 0x1cc   : > { %v6047_v25 = vpop.eup %6046  ;;  %v948_v26 = vmul.f32 %v937_v6, %v929_v21  ;;  %v949_v27 = vmul.f32 %v941_v7, %v930_v22 }
 0x1cd   : > { %v965_v28 = vadd.f32 %v956_v9, %v946_v23  ;;  %v966_v29 = vadd.f32 %v960_v10, %v947_v24  ;;  %v931_v32 = vmul.f32 %v6047_v25, %v891_v42  ;;  %v932_v33 = vmul.f32 %v6047_v25, %v892_v43 }
 0x1ce   : > { %v967_v34 = vadd.f32 %v956_v9, %v948_v26  ;;  %v968_v35 = vadd.f32 %v960_v10, %v949_v27 }
 0x1cf   : > { %973 = vst [vmem:[#allocation2 + $0x18] sm:$0xff] %v965_v28  ;;  %974 = vst [vmem:[#allocation2 + $0x10] sm:$0xff] %v966_v29  ;;  %v950_v36 = vmul.f32 %v937_v6, %v931_v32  ;;  %v951_v37 = vmul.f32 %v941_v7, %v932_v33 }
 0x1d0   : > { %975 = vst [vmem:[#allocation2 + $0x8] sm:$0xff] %v967_v34  ;;  %976 = vst [vmem:[#allocation2 + $0x20] sm:$0xff] %v968_v35 }
 0x1d1   : > { %v969_v30 = vadd.f32 %v956_v9, %v950_v36  ;;  %v970_v31 = vadd.f32 %v960_v10, %v951_v37 }
 0x1d3   : > { %977 = vst [vmem:[#allocation2 + $0x28] sm:$0xff] %v969_v30  ;;  %978 = vst [vmem:[#allocation2 + $0x38] sm:$0xff] %v970_v31 }
 0x1d4 PF: > { %v6048_v38 = vld [vmem:[%s6966_s2 + $0x15c] ss:$24 sps:$4 sm:$0xff]   ;;  %v6050_v39 = vld [vmem:[%s6966_s2 + $0x158] ss:$24 sps:$4 sm:$0xff]   ;;  %v6051_v40 = vld [vmem:[%s6966_s2 + $0x12c] ss:$24 sps:$4 sm:$0xff]   ;;  %s8251_s24 = scalar_lea.vmem %s8188_s8, %s6986_s17  ;;  %s8252_s4 = scalar_lea.vmem %s8189_s9, %s6986_s17 }
 0x1d5   : > { %1652 = vmatprep.subr.bf16.mxu1 %v6048_v38  ;;  %v6053_v41 = vld [vmem:[%s6966_s2 + $0x128] ss:$24 sps:$4 sm:$0xff]   ;;  %v6054_v42 = vld [vmem:[%s6966_s2 + $0x154] ss:$24 sps:$4 sm:$0xff]   ;;  %v6060_v45 = vld [vmem:[%s6966_s2 + $0x124] ss:$24 sps:$4 sm:$0xff]  }
 0x1d6   : > { %1653 = vmatpush1.bf16.msra.mxu1 %v6050_v39  ;;  %v6056_v43 = vld [vmem:[%s6966_s2 + $0x150] ss:$24 sps:$4 sm:$0xff]   ;;  %v6057_v44 = vld [vmem:[%s6966_s2 + $0xfc] ss:$24 sps:$4 sm:$0xff]   ;;  %1599 = vmatprep.subr.bf16.mxu0 %v6054_v42  ;;  %v6062_v46 = vld [vmem:[%s6966_s2 + $0x120] ss:$24 sps:$4 sm:$0xff]  }
 0x1d7   : > { %1654 = vmatprep.subr.bf16.mxu1 %v6051_v40  ;;  %1600 = vmatpush1.bf16.msra.mxu0 %v6056_v43  ;;  %v6059_v47 = vld [vmem:[%s6966_s2 + $0xf8] ss:$24 sps:$4 sm:$0xff]   ;;  %v6063_v48 = vld [vmem:[%s6966_s2 + $0xcc] ss:$24 sps:$4 sm:$0xff]   ;;  %v6065_v51 = vld [vmem:[%s6966_s2 + $0xc8] ss:$24 sps:$4 sm:$0xff]  }
 0x1d8   : > { %1601 = vmatprep.subr.bf16.mxu0 %v6060_v45  ;;  %v6066_v49 = vld [vmem:[%s6966_s2 + $0xf4] ss:$24 sps:$4 sm:$0xff]   ;;  %v6068_v50 = vld [vmem:[%s6966_s2 + $0xf0] ss:$24 sps:$4 sm:$0xff]   ;;  %v6072_v52 = vld [vmem:[%s6966_s2 + $0xc4] ss:$24 sps:$4 sm:$0xff]  }
 0x1d9   : > { %v6069_v53 = vld [vmem:[%s6966_s2 + $0x9c] ss:$24 sps:$4 sm:$0xff]   ;;  %v6074_v54 = vld [vmem:[%s6966_s2 + $0xc0] ss:$24 sps:$4 sm:$0xff]   ;;  %v6075_v57 = vld [vmem:[%s6966_s2 + $0x6c] ss:$24 sps:$4 sm:$0xff]  }
 0x1da   : > { %1655 = vmatpush1.bf16.msra.mxu1 %v6053_v41  ;;  %v6071_v55 = vld [vmem:[%s6966_s2 + $0x98] ss:$24 sps:$4 sm:$0xff]   ;;  %v6078_v56 = vld [vmem:[%s6966_s2 + $0x94] ss:$24 sps:$4 sm:$0xff]   ;;  %v6077_v59 = vld [vmem:[%s6966_s2 + $0x68] ss:$24 sps:$4 sm:$0xff]  }
 0x1db   : > { %1656 = vmatprep.subr.bf16.mxu1 %v6057_v44  ;;  %1602 = vmatpush1.bf16.msra.mxu0 %v6062_v46  ;;  %v6080_v58 = vld [vmem:[%s6966_s2 + $0x90] ss:$24 sps:$4 sm:$0xff]   ;;  %v6084_v60 = vld [vmem:[%s6966_s2 + $0x64] ss:$24 sps:$4 sm:$0xff]   ;;  %v6086_v62 = vld [vmem:[%s6966_s2 + $0x60] ss:$24 sps:$4 sm:$0xff]  }
 0x1dc   : > { %1603 = vmatprep.subr.bf16.mxu0 %v6066_v49  ;;  %v6081_v61 = vld [vmem:[%s6966_s2 + $0x3c] ss:$24 sps:$4 sm:$0xff]   ;;  %v6083_v63 = vld [vmem:[%s6966_s2 + $0x38] ss:$24 sps:$4 sm:$0xff]   ;;  %v6087_v1 = vld [vmem:[%s6966_s2 + $0xc] ss:$24 sps:$4 sm:$0xff]  }
 0x1dd   : > { %v6090_v0 = vld [vmem:[%s6966_s2 + $0x34] ss:$24 sps:$4 sm:$0xff]   ;;  %v6092_v2 = vld [vmem:[%s6966_s2 + $0x30] ss:$24 sps:$4 sm:$0xff]   ;;  %v6096_v4 = vld [vmem:[%s6966_s2 + $0x4] ss:$24 sps:$4 sm:$0xff]  }
 0x1de   : > { %1657 = vmatpush1.bf16.msra.mxu1 %v6059_v47  ;;  %v6089_v3 = vld [vmem:[%s6966_s2 + $0x8] ss:$24 sps:$4 sm:$0xff]   ;;  %v6093_v5 = vld [vmem:[%s6966_s2 + $0x2dc] ss:$24 sps:$4 sm:$0xff]   ;;  %v6095_v7 = vld [vmem:[%s6966_s2 + $0x2d8] ss:$24 sps:$4 sm:$0xff]  }
 0x1df   : > { %1658 = vmatprep.subr.bf16.mxu1 %v6063_v48  ;;  %1604 = vmatpush1.bf16.msra.mxu0 %v6068_v50  ;;  %v6098_v6 = vld [vmem:[%s6966_s2] ss:$24 sps:$4 sm:$0xff]   ;;  %v6102_v8 = vld [vmem:[%s6966_s2 + $0x2d4] ss:$24 sps:$4 sm:$0xff]   ;;  %v6104_v10 = vld [vmem:[%s6966_s2 + $0x2d0] ss:$24 sps:$4 sm:$0xff]  }
 0x1e0   : > { %1605 = vmatprep.subr.bf16.mxu0 %v6072_v52  ;;  %v6099_v9 = vld [vmem:[%s6966_s2 + $0x2ac] ss:$24 sps:$4 sm:$0xff]   ;;  %v6101_v11 = vld [vmem:[%s6966_s2 + $0x2a8] ss:$24 sps:$4 sm:$0xff]   ;;  %v6105_v13 = vld [vmem:[%s6966_s2 + $0x27c] ss:$24 sps:$4 sm:$0xff]  }
 0x1e1   : > { %v6108_v12 = vld [vmem:[%s6966_s2 + $0x2a4] ss:$24 sps:$4 sm:$0xff]   ;;  %v6110_v14 = vld [vmem:[%s6966_s2 + $0x2a0] ss:$24 sps:$4 sm:$0xff]   ;;  %v6114_v16 = vld [vmem:[%s6966_s2 + $0x274] ss:$24 sps:$4 sm:$0xff]  }
 0x1e2   : > { %1659 = vmatpush1.bf16.msra.mxu1 %v6065_v51  ;;  %v6107_v15 = vld [vmem:[%s6966_s2 + $0x278] ss:$24 sps:$4 sm:$0xff]   ;;  %v6111_v17 = vld [vmem:[%s6966_s2 + $0x24c] ss:$24 sps:$4 sm:$0xff]   ;;  %v6113_v22 = vld [vmem:[%s6966_s2 + $0x248] ss:$24 sps:$4 sm:$0xff]   ;;  %v1089_v51 = vlaneseq }
 0x1e3   : > { %1660 = vmatprep.subr.bf16.mxu1 %v6069_v53  ;;  %1606 = vmatpush1.bf16.msra.mxu0 %v6074_v54  ;;  %v980_v18 = vld [vmem:[#allocation2] sm:$0xff]  ;;  %v982_v19 = vld [vmem:[#allocation2 + $0x10] sm:$0xff]  ;;  %v981_v40 = vld [vmem:[#allocation2 + $0x18] sm:$0xff]  ;;  %v6701_v50 = vmov 0.0   ;;  %vm6702_vm0 = vmmov 0   ;;  %s8250_s15 = sld [smem:[#allocation16_spill]] }
 0x1e4   : > { %1607 = vmatprep.subr.bf16.mxu0 %v6078_v56  ;;  %v6116_v20 = vld [vmem:[%s6966_s2 + $0x270] ss:$24 sps:$4 sm:$0xff]   ;;  %v988_v21 = vpack.c.bf16 %v982_v19, %v980_v18  ;;  %v6120_v23 = vld [vmem:[%s6966_s2 + $0x244] ss:$24 sps:$4 sm:$0xff]   ;;  %v6122_v26 = vld [vmem:[%s6966_s2 + $0x240] ss:$24 sps:$4 sm:$0xff]  }
 0x1e5   : > { %v6117_v24 = vld [vmem:[%s6966_s2 + $0x21c] ss:$24 sps:$4 sm:$0xff]   ;;  %v6119_v25 = vld [vmem:[%s6966_s2 + $0x218] ss:$24 sps:$4 sm:$0xff]   ;;  %v6123_v28 = vld [vmem:[%s6966_s2 + $0x1ec] ss:$24 sps:$4 sm:$0xff]  }
 0x1e6   : > { %1661 = vmatpush1.bf16.msra.mxu1 %v6071_v55  ;;  %1684 = vmatprep.mubr.bf16.mxu1 %v988_v21  ;;  %v6126_v27 = vld [vmem:[%s6966_s2 + $0x214] ss:$24 sps:$4 sm:$0xff]   ;;  %v6128_v29 = vld [vmem:[%s6966_s2 + $0x210] ss:$24 sps:$4 sm:$0xff]   ;;  %v6132_v33 = vld [vmem:[%s6966_s2 + $0x1e4] ss:$24 sps:$4 sm:$0xff]  }
 0x1e7   : > { %1662 = vmatprep.subr.bf16.mxu1 %v6075_v57  ;;  %1608 = vmatpush1.bf16.msra.mxu0 %v6080_v58  ;;  %v6125_v32 = vld [vmem:[%s6966_s2 + $0x1e8] ss:$24 sps:$4 sm:$0xff]   ;;  %v6129_v34 = vld [vmem:[%s6966_s2 + $0x1bc] ss:$24 sps:$4 sm:$0xff]   ;;  %v6131_v36 = vld [vmem:[%s6966_s2 + $0x1b8] ss:$24 sps:$4 sm:$0xff]  }
 0x1e8   : > { %1609 = vmatprep.subr.bf16.mxu0 %v6084_v60  ;;  %1631 = vmatprep.mubr.bf16.mxu0 %v988_v21  ;;  %v6134_v35 = vld [vmem:[%s6966_s2 + $0x1e0] ss:$24 sps:$4 sm:$0xff]   ;;  %v6138_v37 = vld [vmem:[%s6966_s2 + $0x1b4] ss:$24 sps:$4 sm:$0xff]   ;;  %v6140_v31 = vld [vmem:[%s6966_s2 + $0x1b0] ss:$24 sps:$4 sm:$0xff]  }
 0x1e9   : > { %v6135_v30 = vld [vmem:[%s6966_s2 + $0x18c] ss:$24 sps:$4 sm:$0xff]   ;;  %v6137_v38 = vld [vmem:[%s6966_s2 + $0x188] ss:$24 sps:$4 sm:$0xff]   ;;  %v979_v39 = vld [vmem:[#allocation2 + $0x30] sm:$0xff]  ;;  %v7156_v52 = vshrl.u32 %v1089_v51, 7 }
 0x1ea   : > { %1663 = vmatpush1.bf16.msra.mxu1 %v6077_v59  ;;  %v6141_v41 = vld [vmem:[%s6966_s2 + $0x184] ss:$24 sps:$4 sm:$0xff]   ;;  %v6143_v44 = vld [vmem:[%s6966_s2 + $0x180] ss:$24 sps:$4 sm:$0xff]   ;;  %v7141_v45 = vpack.c.bf16 %v981_v40, %v979_v39  ;;  %v983_v47 = vld [vmem:[#allocation2 + $0x8] sm:$0xff]  ;;  %vm1964_vm1 = vcmask 130048  }
 0x1eb   : > { %1664 = vmatprep.subr.bf16.mxu1 %v6081_v61  ;;  %1610 = vmatpush1.bf16.msra.mxu0 %v6086_v62  ;;  %v984_v42 = vld [vmem:[#allocation2 + $0x20] sm:$0xff]  ;;  %v986_v43 = vld [vmem:[#allocation2 + $0x38] sm:$0xff]  ;;  %v985_v48 = vld [vmem:[#allocation2 + $0x28] sm:$0xff]  ;;  %v1099_v53 = vsub.s32 2, %v7156_v52  ;;  %v7166_v58 = vsub.s32 0, %v7156_v52  ;;  %v1103_v62 = vsub.s32 3, %v7156_v52 }
 0x1ec   : > { %1611 = vmatprep.subr.bf16.mxu0 %v6090_v0  ;;  %v7143_v46 = vpack.c.bf16 %v986_v43, %v984_v42  ;;  %v7148_v49 = vpack.c.bf16 %v985_v48, %v983_v47  ;;  %v7160_v54 = vld [vmem:[%s6991_s25] sm:$0x3f]  ;;  %v6149_v40 = vld [vmem:[%s6966_s2 + $0x134] ss:$24 sps:$4 sm:$0xff]   ;;  %v6153_v47 = vld [vmem:[%s6966_s2 + $0xd0] ss:$24 sps:$4 sm:$0xff]  }
 0x1ed   : > { %v1100_v56 = vrot.slane %v7160_v54, %v1099_v53  ;;  %v6146_v39 = vld [vmem:[%s6966_s2 + $0x164] ss:$24 sps:$4 sm:$0xff]   ;;  %v6150_v43 = vld [vmem:[%s6966_s2 + $0x100] ss:$24 sps:$4 sm:$0xff]   ;;  %p5848_p5 = scmp.ne.s32.totalorder %s6822_s1, 1 }
 0x1ee   : > { %1665 = vmatpush1.bf16.msra.mxu1 %v6083_v63  ;;  %v6152_v42 = vld [vmem:[%s6966_s2 + $0x104] ss:$24 sps:$4 sm:$0xff]   ;;  %v6156_v51 = vld [vmem:[%s6966_s2 + $0xa0] ss:$24 sps:$4 sm:$0xff]   ;;  %s8255_s17 = sld [smem:[#allocation26_spill]] (!%p5848_p5) }
 0x1ef   : > { %1666 = vmatprep.subr.bf16.mxu1 %v6087_v1  ;;  %1612 = vmatpush1.bf16.msra.mxu0 %v6092_v2  ;;  %v1092_v2 = vrot.slane %v7160_v54, %v7166_v58  ;;  %v6158_v48 = vld [vmem:[%s6966_s2 + $0xa4] ss:$24 sps:$4 sm:$0xff]   ;;  %s8256_s7 = sld [smem:[#allocation27_spill]] (!%p5848_p5) }
 0x1f0   : > { %1613 = vmatprep.subr.bf16.mxu0 %v6096_v4 }
 0x1f2   : > { %1667 = vmatpush1.bf16.msra.mxu1 %v6089_v3 }
 0x1f3   : > { %1668 = vmatprep.subr.bf16.mxu1 %v6093_v5  ;;  %1614 = vmatpush1.bf16.msra.mxu0 %v6098_v6  ;;  %v1104_v6 = vrot.slane %v7160_v54, %v1103_v62 }
 0x1f4   : > { %1615 = vmatprep.subr.bf16.mxu0 %v6102_v8  ;;  %v7175_v8 = vsub.s32 1, %v7156_v52 }
 0x1f6   : > { %1669 = vmatpush2.bf16.msra.mxu1 %v6095_v7 }
 0x1f7   : > { %1670 = vmatprep.subr.bf16.mxu1 %v6099_v9  ;;  %1616 = vmatpush2.bf16.msra.mxu0 %v6104_v10 }
 0x1f8   : > { %1617 = vmatprep.subr.bf16.mxu0 %v6108_v12 }
 0x1fa   : > { %1671 = vmatpush2.bf16.msra.mxu1 %v6101_v11 }
 0x1fb   : > { %1672 = vmatprep.subr.bf16.mxu1 %v6105_v13  ;;  %1618 = vmatpush2.bf16.msra.mxu0 %v6110_v14 }
 0x1fc   : > { %1619 = vmatprep.subr.bf16.mxu0 %v6114_v16 }
 0x1fe   : > { %1673 = vmatpush2.bf16.msra.mxu1 %v6107_v15  ;;  %v1096_v15 = vrot.slane %v7160_v54, %v7175_v8 }
 0x1ff   : > { %1674 = vmatprep.subr.bf16.mxu1 %v6111_v17  ;;  %1620 = vmatpush2.bf16.msra.mxu0 %v6116_v20 }
 0x200   : > { %1621 = vmatprep.subr.bf16.mxu0 %v6120_v23 }
 0x202   : > { %1675 = vmatpush2.bf16.msra.mxu1 %v6113_v22 }
 0x203   : > { %1676 = vmatprep.subr.bf16.mxu1 %v6117_v24  ;;  %1622 = vmatpush2.bf16.msra.mxu0 %v6122_v26 }
 0x204   : > { %1623 = vmatprep.subr.bf16.mxu0 %v6126_v27 }
 0x206   : > { %1677 = vmatpush2.bf16.msra.mxu1 %v6119_v25 }
 0x207   : > { %1678 = vmatprep.subr.bf16.mxu1 %v6123_v28  ;;  %1624 = vmatpush2.bf16.msra.mxu0 %v6128_v29 }
 0x208   : > { %1625 = vmatprep.subr.bf16.mxu0 %v6132_v33 }
 0x20a   : > { %1679 = vmatpush2.bf16.msra.mxu1 %v6125_v32 }
 0x20b   : > { %1680 = vmatprep.subr.bf16.mxu1 %v6129_v34  ;;  %1626 = vmatpush2.bf16.msra.mxu0 %v6134_v35 }
 0x20c   : > { %1627 = vmatprep.subr.bf16.mxu0 %v6138_v37 }
 0x20e   : > { %1681 = vmatpush2.bf16.msra.mxu1 %v6131_v36 }
 0x20f   : > { %1682 = vmatprep.subr.bf16.mxu1 %v6135_v30  ;;  %1628 = vmatpush2.bf16.msra.mxu0 %v6140_v31 }
 0x210   : > { %1629 = vmatprep.subr.bf16.mxu0 %v6141_v41  ;;  %v6147_v41 = vld [vmem:[%s6966_s2 + $0x130] ss:$24 sps:$4 sm:$0xff]  }
 0x212   : > { %1683 = vmatpush2.bf16.msra.mxu1 %v6137_v38  ;;  %v6144_v38 = vld [vmem:[%s6966_s2 + $0x160] ss:$24 sps:$4 sm:$0xff]  }
 0x213   : > { %1630 = vmatpush2.bf16.msra.mxu0 %v6143_v44  ;;  %5915 = vmatprep.subr.bf16.mxu1 %v6701_v50  ;;  %v6155_v44 = vld [vmem:[%s6966_s2 + $0xd4] ss:$24 sps:$4 sm:$0xff]  }
 0x214   : > { %1705 = vmatprep.subr.bf16.mxu0 %v6146_v39 }
 0x215   : > { %1685 = vmatmul.mubr.bf16.vlgmr.msra.gmra.mxu1 %v7141_v45 }
 0x216   : > { %1694 = vmatprep.mubr.bf16.mxu1 %v7143_v46  ;;  %1632 = vmatmul.mubr.bf16.vlgmr.msra.gmra.mxu0 %v7141_v45 }
 0x217   : > { %1641 = vmatprep.mubr.bf16.mxu0 %v7143_v46  ;;  %1706 = vmatpush1.bf16.msra.mxu0 %v6144_v38 }
 0x218   : > { %1707 = vmatprep.subr.bf16.mxu0 %v6149_v40 }
 0x21b   : > { %1708 = vmatpush1.bf16.msra.mxu0 %v6147_v41 }
 0x21c   : > { %1709 = vmatprep.subr.bf16.mxu0 %v6152_v42 }
 0x21d   : > { %1695 = vmatmul.mubr.bf16.gmra.mxu1 %v7148_v49 }
 0x21e   : > { %1642 = vmatmul.mubr.bf16.gmra.mxu0 %v7148_v49  ;;  %5917 = vmatprep.mubr.msk.bf16.mxu1 %vm6702_vm0, %v6701_v50 }
 0x21f   : > { %1737 = vmatprep.mubr.bf16.mxu0 %v988_v21  ;;  %1710 = vmatpush1.bf16.msra.mxu0 %v6150_v43 }
 0x220   : > { %1711 = vmatprep.subr.bf16.mxu0 %v6155_v44 }
 0x223   : > { %1712 = vmatpush1.bf16.msra.mxu0 %v6153_v47 }
 0x224   : > { %1713 = vmatprep.subr.bf16.mxu0 %v6158_v48 }
 0x227   : > { %1714 = vmatpush1.bf16.msra.mxu0 %v6156_v51 }
 0x2d5   : > { %v1686_v55 = vpop.f32.mrf.mxu1 }
 0x2d6   : > { %v1633_v59 = vpop.f32.mrf.mxu0  ;;  %v1687_v61 = vadd.f32 %v1686_v55, %v1100_v56  ;;  %v6161_v55 = vld [vmem:[%s6966_s2 + $0x74] ss:$24 sps:$4 sm:$0xff]  }
 0x2d7   : > { %v1688_v57 = vpop.f32.mrf.mxu1  ;;  %v1634_v7 = vadd.f32 %v1633_v59, %v1092_v2  ;;  %1715 = vmatprep.subr.bf16.mxu0 %v6161_v55  ;;  %v6162_v59 = vld [vmem:[%s6966_s2 + $0x40] ss:$24 sps:$4 sm:$0xff]  }
 0x2d8   : > { %v1635_v0 = vpop.f32.mrf.mxu0  ;;  %v1689_v13 = vadd.f32 %v1688_v57, %v1104_v6  ;;  %v6164_v57 = vld [vmem:[%s6966_s2 + $0x44] ss:$24 sps:$4 sm:$0xff]  }
 0x2d9   : > { %v1690_v60 = vpop.f32.mrf.mxu1  ;;  %v1636_v22 = vadd.f32 %v1635_v0, %v1096_v15  ;;  %v6168_v0 = vld [vmem:[%s6966_s2 + $0x2e0] ss:$24 sps:$4 sm:$0xff]  }
 0x2da   : > { %v1691_v63 = vadd.f32 %v1690_v60, %v1100_v56  ;;  %v1637_v4 = vpop.f32.mrf.mxu0  ;;  %v6167_v60 = vld [vmem:[%s6966_s2 + $0x14] ss:$24 sps:$4 sm:$0xff]  }
 0x2db   : > { %v1692_v1 = vpop.f32.mrf.mxu1  ;;  %v1638_v9 = vadd.f32 %v1637_v4, %v1092_v2  ;;  %v6174_v4 = vld [vmem:[%s6966_s2 + $0x280] ss:$24 sps:$4 sm:$0xff]  }
 0x2dc   : > { %v1760_v3 = vpack.c.bf16 %v1691_v63, %v1687_v61  ;;  %v1693_v11 = vadd.f32 %v1692_v1, %v1104_v6  ;;  %v1639_v12 = vpop.f32.mrf.mxu0  ;;  %v6165_v61 = vld [vmem:[%s6966_s2 + $0x10] ss:$24 sps:$4 sm:$0xff]   ;;  %v6170_v63 = vld [vmem:[%s6966_s2 + $0x2e4] ss:$24 sps:$4 sm:$0xff]   ;;  %v6173_v1 = vld [vmem:[%s6966_s2 + $0x2b4] ss:$24 sps:$4 sm:$0xff]  }
 0x2dd   : > { %v1696_v5 = vpop.f32.mrf.mxu1  ;;  %v1758_v16 = vpack.c.bf16 %v1638_v9, %v1634_v7  ;;  %v1640_v23 = vadd.f32 %v1639_v12, %v1096_v15  ;;  %v6182_v7 = vld [vmem:[%s6966_s2 + $0x224] ss:$24 sps:$4 sm:$0xff]   ;;  %v6180_v9 = vld [vmem:[%s6966_s2 + $0x220] ss:$24 sps:$4 sm:$0xff]  }
 0x2de   : > { %5916 = vmatpush3.bf16.xpose.msra.mxu1 %v1760_v3  ;;  %v1643_v14 = vpop.f32.mrf.mxu0  ;;  %v1761_v18 = vpack.c.bf16 %v1693_v11, %v1689_v13  ;;  %v1697_v19 = vadd.f32 %v1696_v5, %v1100_v56  ;;  %v6176_v3 = vld [vmem:[%s6966_s2 + $0x284] ss:$24 sps:$4 sm:$0xff]   ;;  %v6179_v5 = vld [vmem:[%s6966_s2 + $0x254] ss:$24 sps:$4 sm:$0xff]   ;;  %v6183_v11 = vld [vmem:[%s6966_s2 + $0x1f0] ss:$24 sps:$4 sm:$0xff]  }
 0x2df   : > { %5921 = vmatprep.subr.bf16.mxu1 %v6701_v50  ;;  %v1698_v10 = vpop.f32.mrf.mxu1  ;;  %v1759_v26 = vpack.c.bf16 %v1640_v23, %v1636_v22  ;;  %v1644_v28 = vadd.f32 %v1643_v14, %v1092_v2  ;;  %v6188_v12 = vld [vmem:[%s6966_s2 + $0x1c4] ss:$24 sps:$4 sm:$0xff]   ;;  %v6186_v13 = vld [vmem:[%s6966_s2 + $0x1c0] ss:$24 sps:$4 sm:$0xff]   ;;  %v6191_v14 = vld [vmem:[%s6966_s2 + $0x194] ss:$24 sps:$4 sm:$0xff]  }
 0x2e0   : > { %v1645_v21 = vpop.f32.mrf.mxu0  ;;  %v1699_v32 = vadd.f32 %v1698_v10, %v1104_v6  ;;  %v6185_v10 = vld [vmem:[%s6966_s2 + $0x1f4] ss:$24 sps:$4 sm:$0xff]  }
 0x2e1   : > { %v1700_v17 = vpop.f32.mrf.mxu1  ;;  %v1646_v37 = vadd.f32 %v1645_v21, %v1096_v15 }
 0x2e2   : > { %v1701_v20 = vadd.f32 %v1700_v17, %v1100_v56  ;;  %v1647_v25 = vpop.f32.mrf.mxu0  ;;  %v6159_v56 = vld [vmem:[%s6966_s2 + $0x70] ss:$24 sps:$4 sm:$0xff]   ;;  %v5554_v17 = vld [vmem:[%s8250_s15] ss:$0 sm:$0xff] }
 0x2e3   : > { %v1702_v27 = vpop.f32.mrf.mxu1  ;;  %v1648_v29 = vadd.f32 %v1647_v25, %v1092_v2  ;;  %1716 = vmatpush1.bf16.msra.mxu0 %v6159_v56  ;;  %v6171_v2 = vld [vmem:[%s6966_s2 + $0x2b0] ss:$24 sps:$4 sm:$0xff]  }
 0x2e4   : > { %v1766_v24 = vpack.c.bf16 %v1701_v20, %v1697_v19  ;;  %v1703_v33 = vadd.f32 %v1702_v27, %v1104_v6  ;;  %v1649_v36 = vpop.f32.mrf.mxu0  ;;  %1717 = vmatprep.subr.bf16.mxu0 %v6164_v57  ;;  %v6177_v6 = vld [vmem:[%s6966_s2 + $0x250] ss:$24 sps:$4 sm:$0xff]  }
 0x2e5   : > { %5918 = vmatmul.mubr.bf16.vlgmr.msra.gmra.mxu1 %v1758_v16  ;;  %v1764_v34 = vpack.c.bf16 %v1648_v29, %v1644_v28  ;;  %v1650_v30 = vadd.f32 %v1649_v36, %v1096_v15  ;;  %v6189_v15 = vld [vmem:[%s6966_s2 + $0x190] ss:$24 sps:$4 sm:$0xff]   ;;  %v5555_v36 = vld [vmem:[%s8250_s15 + $0x1] ss:$0 sm:$0xff] }
 0x2e6   : > { %5922 = vmatpush3.bf16.xpose.msra.mxu1 %v1761_v18  ;;  %5923 = vmatprep.mubr.msk.bf16.mxu1 %vm6702_vm0, %v6701_v50  ;;  %v1767_v35 = vpack.c.bf16 %v1703_v33, %v1699_v32 }
 0x2e7   : > { %5927 = vmatprep.subr.bf16.mxu1 %v6701_v50  ;;  %v1765_v31 = vpack.c.bf16 %v1650_v30, %v1646_v37  ;;  %1718 = vmatpush1.bf16.msra.mxu0 %v6162_v59 }
 0x2e8   : > { %1719 = vmatprep.subr.bf16.mxu0 %v6167_v60 }
 0x2eb   : > { %1720 = vmatpush1.bf16.msra.mxu0 %v6165_v61 }
 0x2ec   : > { %1721 = vmatprep.subr.bf16.mxu0 %v6170_v63 }
 0x2ed   : > { %5924 = vmatmul.mubr.bf16.vlgmr.msra.gmra.mxu1 %v1759_v26 }
 0x2ee   : > { %5928 = vmatpush3.bf16.xpose.msra.mxu1 %v1766_v24  ;;  %5929 = vmatprep.mubr.msk.bf16.mxu1 %vm6702_vm0, %v6701_v50 }
 0x2ef   : > { %5933 = vmatprep.subr.bf16.mxu1 %v6701_v50  ;;  %1722 = vmatpush2.bf16.msra.mxu0 %v6168_v0 }
 0x2f0   : > { %1723 = vmatprep.subr.bf16.mxu0 %v6173_v1 }
 0x2f3   : > { %1724 = vmatpush2.bf16.msra.mxu0 %v6171_v2 }
 0x2f4   : > { %1725 = vmatprep.subr.bf16.mxu0 %v6176_v3 }
 0x2f5   : > { %5930 = vmatmul.mubr.bf16.vlgmr.msra.gmra.mxu1 %v1764_v34 }
 0x2f6   : > { %5934 = vmatpush3.bf16.xpose.msra.mxu1 %v1767_v35  ;;  %5935 = vmatprep.mubr.msk.bf16.mxu1 %vm6702_vm0, %v6701_v50 }
 0x2f7   : > { %5939 = vmatprep.subr.bf16.mxu1 %v6701_v50  ;;  %1726 = vmatpush2.bf16.msra.mxu0 %v6174_v4 }
 0x2f8   : > { %1727 = vmatprep.subr.bf16.mxu0 %v6179_v5 }
 0x2fb   : > { %1728 = vmatpush2.bf16.msra.mxu0 %v6177_v6 }
 0x2fc   : > { %1729 = vmatprep.subr.bf16.mxu0 %v6182_v7 }
 0x2fd   : > { %5936 = vmatmul.mubr.bf16.vlgmr.msra.gmra.mxu1 %v1765_v31 }
 0x2fe   : > { %5941 = vmatprep.mubr.msk.bf16.mxu1 %vm6702_vm0, %v6701_v50 }
 0x2ff   : > { %1730 = vmatpush2.bf16.msra.mxu0 %v6180_v9 }
 0x300   : > { %1731 = vmatprep.subr.bf16.mxu0 %v6185_v10 }
 0x303   : > { %1732 = vmatpush2.bf16.msra.mxu0 %v6183_v11 }
 0x304   : > { %1733 = vmatprep.subr.bf16.mxu0 %v6188_v12 }
 0x307   : > { %1734 = vmatpush2.bf16.msra.mxu0 %v6186_v13 }
 0x308   : > { %1735 = vmatprep.subr.bf16.mxu0 %v6191_v14 }
 0x30b   : > { %1736 = vmatpush2.bf16.msra.mxu0 %v6189_v15 }
 0x30e   : > { %1738 = vmatmul.mubr.bf16.vlgmr.msra.gmra.mxu0 %v7141_v45 }
 0x30f   : > { %1747 = vmatprep.mubr.bf16.mxu0 %v7143_v46 }
 0x316   : > { %1748 = vmatmul.mubr.bf16.gmra.mxu0 %v7148_v49 }
 0x3a5   : > { %v1804_v16 = vpop.f32.mrf.mxu1 }
 0x3a6   : > { %v1934_v18 = vmul.f32 0.088388346, %v1804_v16 }
 0x3a7   : > { %v5919_v19 = vpop.f32.mrf.mxu1 }
 0x3a8   : > { %v1956_v20 = vadd.f32 %v5554_v17, %v1934_v18 }
 0x3a9   : > { %v1807_v21 = vpop.f32.mrf.mxu1 }
 0x3aa   : > { %v1935_v22 = vmul.f32 0.088388346, %v1807_v21  ;;  %v1965_v23 = vsel %vm1964_vm1, %v1956_v20, -inf }
 0x3ab   : > { %1966 = vmax.xlane.f32.xlu0 %v1965_v23  ;;  %v5920_v24 = vpop.f32.mrf.mxu1 }
 0x3ac   : > { %v1957_v45 = vadd.f32 %v5554_v17, %v1935_v22 }
 0x3ad   : > { %v1845_v25 = vpop.f32.mrf.mxu1 }
 0x3ae   : > { %v1936_v46 = vmul.f32 0.088388346, %v1845_v25  ;;  %v1968_v49 = vsel %vm1964_vm1, %v1957_v45, -inf }
 0x3af   : > { %1969 = vmax.xlane.f32.xlu0 %v1968_v49  ;;  %v5925_v26 = vpop.f32.mrf.mxu1 }
 0x3b0   : > { %v1958_v27 = vadd.f32 %v5554_v17, %v1936_v46 }
 0x3b1   : > { %v1848_v28 = vpop.f32.mrf.mxu1 }
 0x3b2   : > { %v1937_v29 = vmul.f32 0.088388346, %v1848_v28  ;;  %v1971_v32 = vsel %vm1964_vm1, %v1958_v27, -inf }
 0x3b3   : > { %1972 = vmax.xlane.f32.xlu1 %v1971_v32  ;;  %v5926_v33 = vpop.f32.mrf.mxu1 }
 0x3b4   : > { %v1959_v34 = vadd.f32 %v5554_v17, %v1937_v29 }
 0x3b5   : > { %v1886_v35 = vpop.f32.mrf.mxu1 }
 0x3b6   : > { %v1938_v37 = vmul.f32 0.088388346, %v1886_v35  ;;  %v1974_v30 = vsel %vm1964_vm1, %v1959_v34, -inf }
 0x3b7   : > { %1975 = vmax.xlane.f32.xlu1 %v1974_v30  ;;  %v5931_v31 = vpop.f32.mrf.mxu1 }
 0x3b8   : > { %v1960_v38 = vadd.f32 %v5555_v36, %v1938_v37 }
 0x3b9   : > { %v1889_v39 = vpop.f32.mrf.mxu1 }
 0x3ba   : > { %v1939_v40 = vmul.f32 0.088388346, %v1889_v39  ;;  %v1977_v41 = vsel %vm1964_vm1, %v1960_v38, -inf }
 0x3bb   : > { %1978 = vmax.xlane.f32.xlu0 %v1977_v41  ;;  %v5932_v42 = vpop.f32.mrf.mxu1 }
 0x3bc   : > { %v1961_v43 = vadd.f32 %v5555_v36, %v1939_v40 }
 0x3bd   : > { %v1927_v44 = vpop.f32.mrf.mxu1 }
 0x3be   : > { %v1940_v47 = vmul.f32 0.088388346, %v1927_v44  ;;  %v1980_v48 = vsel %vm1964_vm1, %v1961_v43, -inf }
 0x3bf   : > { %1981 = vmax.xlane.f32.xlu1 %v1980_v48  ;;  %v5937_v51 = vpop.f32.mrf.mxu1  ;;  %v6192_v48 = vld [vmem:[%s6984_s3 + $0x70] ss:$8 sps:$4 sm:$0xff]  }
 0x3c0   : > { %v1962_v55 = vadd.f32 %v5555_v36, %v1940_v47  ;;  %v6194_v51 = vld [vmem:[%s6984_s3 + $0x74] ss:$8 sps:$4 sm:$0xff]  }
 0x3c1   : > { %v1930_v56 = vpop.f32.mrf.mxu1  ;;  %2441 = vmatprep.subr.bf16.mxu0 %v6194_v51 }
 0x3c2   : > { %v1941_v57 = vmul.f32 0.088388346, %v1930_v56  ;;  %v1983_v59 = vsel %vm1964_vm1, %v1962_v55, -inf  ;;  %2442 = vmatpush1.bf16.msra.mxu0 %v6192_v48  ;;  %v6195_v56 = vld [vmem:[%s6984_s3 + $0x60] ss:$8 sps:$4 sm:$0xff]  }
 0x3c3   : > { %1984 = vmax.xlane.f32.xlu0 %v1983_v59  ;;  %v5938_v60 = vpop.f32.mrf.mxu1  ;;  %v6198_v59 = vld [vmem:[%s6984_s3 + $0x50] ss:$8 sps:$4 sm:$0xff]  }
 0x3c4   : > { %v1963_v61 = vadd.f32 %v5555_v36, %v1941_v57  ;;  %v1107_v36 = vsub.s32 4, %v7156_v52  ;;  %v6200_v57 = vld [vmem:[%s6984_s3 + $0x54] ss:$8 sps:$4 sm:$0xff]   ;;  %v6203_v60 = vld [vmem:[%s6984_s3 + $0x44] ss:$8 sps:$4 sm:$0xff]  }
 0x3c6   : > { %v1986_v63 = vsel %vm1964_vm1, %v1963_v61, -inf  ;;  %v7270_v31 = vrot.slane %v7160_v54, %v1107_v36 }
 0x3c7   : > { %1987 = vmax.xlane.f32.xlu1 %v1986_v63  ;;  %v6206_v63 = vld [vmem:[%s6984_s3 + $0x34] ss:$8 sps:$4 sm:$0xff]  }
 0x434   : > { %v1967_v0 = vpop.xlane.xlu0 %1966 }
 0x435   : > { %v1989_v1 = vsub.f32 %v1956_v20, %v1967_v0  ;;  %v6204_v0 = vld [vmem:[%s6984_s3 + $0x30] ss:$8 sps:$4 sm:$0xff]  }
 0x437   : > { %v1997_v2 = vmul.f32 1.442695, %v1989_v1  ;;  %v6209_v1 = vld [vmem:[%s6984_s3 + $0x24] ss:$8 sps:$4 sm:$0xff]  }
 0x438   : > { %v1970_v3 = vpop.xlane.xlu0 %1969 }
 0x439   : > { %6432 = vpow2.f32 %v1997_v2  ;;  %v1990_v4 = vsub.f32 %v1957_v45, %v1970_v3  ;;  %v6207_v2 = vld [vmem:[%s6984_s3 + $0x20] ss:$8 sps:$4 sm:$0xff]   ;;  %v6212_v3 = vld [vmem:[%s6984_s3 + $0x14] ss:$8 sps:$4 sm:$0xff]  }
 0x43b   : > { %v1999_v5 = vmul.f32 1.442695, %v1990_v4  ;;  %v6210_v4 = vld [vmem:[%s6984_s3 + $0x10] ss:$8 sps:$4 sm:$0xff]  }
 0x43c   : > { %v1973_v6 = vpop.xlane.xlu1 %1972 }
 0x43d   : > { %6434 = vpow2.f32 %v1999_v5  ;;  %v1991_v7 = vsub.f32 %v1958_v27, %v1973_v6  ;;  %v6215_v5 = vld [vmem:[%s6984_s3 + $0x4] ss:$8 sps:$4 sm:$0xff]   ;;  %v6213_v6 = vld [vmem:[%s6984_s3] ss:$8 sps:$4 sm:$0xff]  }
 0x43f   : > { %v2001_v9 = vmul.f32 1.442695, %v1991_v7  ;;  %v6218_v7 = vld [vmem:[%s6984_s3 + $0xf4] ss:$8 sps:$4 sm:$0xff]  }
 0x440   : > { %v1976_v10 = vpop.xlane.xlu1 %1975 }
 0x441   : > { %6436 = vpow2.f32 %v2001_v9  ;;  %v1992_v11 = vsub.f32 %v1959_v34, %v1976_v10  ;;  %v1739_v34 = vpop.f32.mrf.mxu0  ;;  %v6216_v9 = vld [vmem:[%s6984_s3 + $0xf0] ss:$8 sps:$4 sm:$0xff]   ;;  %v6221_v10 = vld [vmem:[%s6984_s3 + $0xe4] ss:$8 sps:$4 sm:$0xff]  }
 0x442   : > { %v1740_v40 = vadd.f32 %v1739_v34, %v7270_v31 }
 0x443   : > { %v2003_v12 = vmul.f32 1.442695, %v1992_v11  ;;  %v7263_v37 = vpop.f32.mrf.mxu0  ;;  %v6219_v11 = vld [vmem:[%s6984_s3 + $0xe0] ss:$8 sps:$4 sm:$0xff]  }
 0x444   : > { %v1979_v13 = vpop.xlane.xlu0 %1978 }
 0x445   : > { %6438 = vpow2.f32 %v2003_v12  ;;  %v1993_v14 = vsub.f32 %v1960_v38, %v1979_v13  ;;  %v1743_v38 = vpop.f32.mrf.mxu0  ;;  %v6224_v12 = vld [vmem:[%s6984_s3 + $0xd4] ss:$8 sps:$4 sm:$0xff]   ;;  %v6222_v13 = vld [vmem:[%s6984_s3 + $0xd0] ss:$8 sps:$4 sm:$0xff]  }
 0x446   : > { %v7240_v15 = vpop.eup %6432  ;;  %v1744_v41 = vadd.f32 %v1743_v38, %v7270_v31 }
 0x447   : > { %v2005_v16 = vmul.f32 1.442695, %v1993_v14  ;;  %v2013_v17 = vsel %vm1964_vm1, %v7240_v15, 0.0  ;;  %v6227_v14 = vld [vmem:[%s6984_s3 + $0xc4] ss:$8 sps:$4 sm:$0xff]  }
 0x448   : > { %v1982_v18 = vpop.xlane.xlu1 %1981  ;;  %2014 = vadd.xlane.f32.xlu0 %v2013_v17 }
 0x449   : > { %6440 = vpow2.f32 %v2005_v16  ;;  %v1994_v19 = vsub.f32 %v1961_v43, %v1982_v18  ;;  %v1762_v43 = vpack.c.bf16 %v1744_v41, %v1740_v40  ;;  %v6225_v16 = vld [vmem:[%s6984_s3 + $0xc0] ss:$8 sps:$4 sm:$0xff]  }
 0x44a   : > { %v7244_v20 = vpop.eup %6434 }
 0x44b   : > { %v2007_v21 = vmul.f32 1.442695, %v1994_v19  ;;  %v2016_v22 = vsel %vm1964_vm1, %v7244_v20, 0.0  ;;  %5940 = vmatpush3.bf16.msra.mxu1 %v1762_v43 }
 0x44c   : > { %v1985_v23 = vpop.xlane.xlu0 %1984  ;;  %2017 = vadd.xlane.f32.xlu1 %v2016_v22  ;;  %5945 = vmatprep.subr.bf16.mxu1 %v6701_v50  ;;  %v1745_v22 = vpop.f32.mrf.mxu0 }
 0x44d   : > { %6442 = vpow2.f32 %v2007_v21  ;;  %v1995_v24 = vsub.f32 %v1962_v55, %v1985_v23  ;;  %v6197_v55 = vld [vmem:[%s6984_s3 + $0x64] ss:$8 sps:$4 sm:$0xff]   ;;  %v1111_v21 = vsub.s32 5, %v7156_v52 }
 0x44e   : > { %v7248_v45 = vpop.eup %6436  ;;  %2443 = vmatprep.subr.bf16.mxu0 %v6197_v55 }
 0x44f   : > { %v2009_v25 = vmul.f32 1.442695, %v1995_v24  ;;  %v2019_v46 = vsel %vm1964_vm1, %v7248_v45, 0.0  ;;  %2444 = vmatpush1.bf16.msra.mxu0 %v6195_v56  ;;  %v1749_v24 = vpop.f32.mrf.mxu0 }
 0x450   : > { %2020 = vadd.xlane.f32.xlu0 %v2019_v46  ;;  %v1988_v49 = vpop.xlane.xlu1 %1987  ;;  %2445 = vmatprep.subr.bf16.mxu0 %v6200_v57 }
 0x451   : > { %6444 = vpow2.f32 %v2009_v25  ;;  %v1996_v26 = vsub.f32 %v1963_v61, %v1988_v49  ;;  %v6201_v61 = vld [vmem:[%s6984_s3 + $0x40] ss:$8 sps:$4 sm:$0xff]   ;;  %v1112_v25 = vrot.slane %v7160_v54, %v1111_v21 }
 0x452   : > { %v7252_v27 = vpop.eup %6438 }
 0x453   : > { %v2011_v28 = vmul.f32 1.442695, %v1996_v26  ;;  %v2022_v29 = vsel %vm1964_vm1, %v7252_v27, 0.0  ;;  %2446 = vmatpush1.bf16.msra.mxu0 %v6198_v59  ;;  %v1751_v26 = vpop.f32.mrf.mxu0 }
 0x454   : > { %2023 = vadd.xlane.f32.xlu1 %v2022_v29  ;;  %2447 = vmatprep.subr.bf16.mxu0 %v6203_v60  ;;  %v1742_v29 = vadd.f32 %v7263_v37, %v1112_v25  ;;  %v1752_v60 = vadd.f32 %v1751_v26, %v1112_v25 }
 0x455   : > { %6446 = vpow2.f32 %v2011_v28  ;;  %v1753_v41 = vpop.f32.mrf.mxu0 }
 0x456   : > { %v7256_v32 = vpop.eup %6440  ;;  %v1754_v37 = vadd.f32 %v1753_v41, %v7270_v31 }
 0x457   : > { %v2025_v33 = vsel %vm1964_vm1, %v7256_v32, 0.0  ;;  %2448 = vmatpush1.bf16.msra.mxu0 %v6201_v61  ;;  %v1755_v57 = vpop.f32.mrf.mxu0 }
 0x458   : > { %2026 = vadd.xlane.f32.xlu0 %v2025_v33  ;;  %2449 = vmatprep.subr.bf16.mxu0 %v6206_v63  ;;  %v1746_v33 = vadd.f32 %v1745_v22, %v1112_v25 }
 0x45a   : > { %v7260_v35 = vpop.eup %6442 }
 0x45b   : > { %v2028_v30 = vsel %vm1964_vm1, %v7260_v35, 0.0  ;;  %2450 = vmatpush1.bf16.msra.mxu0 %v6204_v0 }
 0x45c   : > { %2029 = vadd.xlane.f32.xlu1 %v2028_v30  ;;  %2451 = vmatprep.subr.bf16.mxu0 %v6209_v1 }
 0x45e   : > { %v7272_v39 = vpop.eup %6444 }
 0x45f   : > { %v2031_v42 = vsel %vm1964_vm1, %v7272_v39, 0.0  ;;  %2452 = vmatpush1.bf16.msra.mxu0 %v6207_v2 }
 0x460   : > { %2032 = vadd.xlane.f32.xlu0 %v2031_v42  ;;  %2453 = vmatprep.subr.bf16.mxu0 %v6212_v3  ;;  %v1763_v42 = vpack.c.bf16 %v1746_v33, %v1742_v29 }
 0x462   : > { %v7278_v44 = vpop.eup %6446 }
 0x463   : > { %v2034_v47 = vsel %vm1964_vm1, %v7278_v44, 0.0  ;;  %2454 = vmatpush1.bf16.msra.mxu0 %v6210_v4  ;;  %v6228_v4 = vld [vmem:[%s6984_s3 + $0xb0] ss:$8 sps:$4 sm:$0xff]  }
 0x464   : > { %2035 = vadd.xlane.f32.xlu1 %v2034_v47  ;;  %2455 = vmatprep.subr.bf16.mxu0 %v6215_v5  ;;  %v1750_v47 = vadd.f32 %v1749_v24, %v7270_v31  ;;  %v1756_v31 = vadd.f32 %v1755_v57, %v1112_v25  ;;  %v6230_v5 = vld [vmem:[%s6984_s3 + $0xb4] ss:$8 sps:$4 sm:$0xff]  }
 0x466   : > { %v1768_v55 = vpack.c.bf16 %v1754_v37, %v1750_v47  ;;  %v1769_v63 = vpack.c.bf16 %v1756_v31, %v1752_v60  ;;  %v6544_v37 = vld [vmem:[#allocation2 + $0x30] sm:$0xff] }
 0x467   : > { %2456 = vmatpush1.bf16.msra.mxu0 %v6213_v6  ;;  %v6233_v6 = vld [vmem:[%s6984_s3 + $0xa4] ss:$8 sps:$4 sm:$0xff]   ;;  %v6547_v31 = vld [vmem:[#allocation2 + $0x10] sm:$0xff] }
 0x468   : > { %2457 = vmatprep.subr.bf16.mxu0 %v6218_v7  ;;  %v6231_v7 = vld [vmem:[%s6984_s3 + $0xa0] ss:$8 sps:$4 sm:$0xff]  }
 0x46b   : > { %2458 = vmatpush2.bf16.msra.mxu0 %v6216_v9  ;;  %v6234_v9 = vld [vmem:[%s6984_s3 + $0x90] ss:$8 sps:$4 sm:$0xff]  }
 0x46c   : > { %2459 = vmatprep.subr.bf16.mxu0 %v6221_v10  ;;  %v6237_v10 = vld [vmem:[%s6984_s3 + $0x80] ss:$8 sps:$4 sm:$0xff]  }
 0x46f   : > { %2460 = vmatpush2.bf16.msra.mxu0 %v6219_v11 }
 0x470   : > { %2461 = vmatprep.subr.bf16.mxu0 %v6224_v12 }
 0x473   : > { %2462 = vmatpush2.bf16.msra.mxu0 %v6222_v13 }
 0x474   : > { %2463 = vmatprep.subr.bf16.mxu0 %v6227_v14 }
 0x477   : > { %2464 = vmatpush2.bf16.msra.mxu0 %v6225_v16 }
 0x478   : > { %2465 = vmatprep.subr.bf16.mxu0 %v6230_v5 }
 0x47b   : > { %2466 = vmatpush2.bf16.msra.mxu0 %v6228_v4 }
 0x47c   : > { %2467 = vmatprep.subr.bf16.mxu0 %v6233_v6 }
 0x47f   : > { %2468 = vmatpush2.bf16.msra.mxu0 %v6231_v7 }
 0x4d1   : > { %v2015_v17 = vpop.xlane.xlu0 %2014 }
 0x4d2   : > { %6448 = vrcp.f32 %v2015_v17 }
 0x4d5   : > { %v2018_v18 = vpop.xlane.xlu1 %2017 }
 0x4d6   : > { %6450 = vrcp.f32 %v2018_v18 }
 0x4d9   : > { %v2021_v19 = vpop.xlane.xlu0 %2020 }
 0x4da   : > { %6452 = vrcp.f32 %v2021_v19 }
 0x4dd   : > { %v2024_v23 = vpop.xlane.xlu1 %2023 }
 0x4de   : > { %6454 = vrcp.f32 %v2024_v23 }
 0x4df   : > { %v6449_v46 = vpop.eup %6448 }
 0x4e0   : > { %v2045_v34 = vmul.f32 %v6449_v46, %v7240_v15 }
 0x4e1   : > { %v2027_v49 = vpop.xlane.xlu0 %2026 }
 0x4e2   : > { %6456 = vrcp.f32 %v2027_v49 }
 0x4e3   : > { %v6451_v28 = vpop.eup %6450 }
 0x4e4   : > { %v2046_v30 = vmul.f32 %v6451_v28, %v7244_v20 }
 0x4e5   : > { %v2030_v38 = vpop.xlane.xlu1 %2029 }
 0x4e6   : > { %6458 = vrcp.f32 %v2030_v38  ;;  %v2053_v40 = vpack.c.bf16 %v2046_v30, %v2045_v34  ;;  %v2269_v30 = vld [vmem:[%s8251_s24] sm:$0x3] }
 0x4e7   : > { %v6453_v54 = vpop.eup %6452  ;;  %v2274_v38 = vrot.slane %v2269_v30, %v7166_v58 }
 0x4e8   : > { %5942 = vmatmul.mubr.msk.bf16.vlgmr.msra.gmra.mxu1 %vm1964_vm1, %v2053_v40  ;;  %v2047_v20 = vmul.f32 %v6453_v54, %v7248_v45  ;;  %v2278_v40 = vrot.slane %v2269_v30, %v7175_v8 }
 0x4e9   : > { %5946 = vmatpush3.bf16.msra.mxu1 %v1763_v42  ;;  %v2033_v43 = vpop.xlane.xlu0 %2032  ;;  %5947 = vmatprep.mubr.msk.bf16.mxu1 %vm6702_vm0, %v6701_v50 }
 0x4ea   : > { %5951 = vmatprep.subr.bf16.mxu1 %v6701_v50  ;;  %6460 = vrcp.f32 %v2033_v43 }
 0x4eb   : > { %v6455_v15 = vpop.eup %6454 }
 0x4ec   : > { %v2048_v48 = vmul.f32 %v6455_v15, %v7252_v27 }
 0x4ed   : > { %v2036_v51 = vpop.xlane.xlu1 %2035 }
 0x4ee   : > { %6462 = vrcp.f32 %v2036_v51  ;;  %v2054_v56 = vpack.c.bf16 %v2048_v48, %v2047_v20  ;;  %v6545_v20 = vld [vmem:[#allocation2] sm:$0xff] }
 0x4ef   : > { %v6457_v59 = vpop.eup %6456 }
 0x4f0   : > { %5948 = vmatmul.mubr.msk.bf16.vlgmr.msra.gmra.mxu1 %vm1964_vm1, %v2054_v56  ;;  %v2049_v27 = vmul.f32 %v6457_v59, %v7256_v32  ;;  %v6546_v59 = vld [vmem:[#allocation2 + $0x18] sm:$0xff] }
 0x4f1   : > { %5952 = vmatpush3.bf16.msra.mxu1 %v1768_v55  ;;  %5953 = vmatprep.mubr.msk.bf16.mxu1 %vm6702_vm0, %v6701_v50 }
 0x4f2   : > { %5957 = vmatprep.subr.bf16.mxu1 %v6701_v50 }
 0x4f3   : > { %v6459_v45 = vpop.eup %6458 }
 0x4f4   : > { %v2050_v61 = vmul.f32 %v6459_v45, %v7260_v35 }
 0x4f6   : > { %v2055_v0 = vpack.c.bf16 %v2050_v61, %v2049_v27 }
 0x4f7   : > { %v6461_v1 = vpop.eup %6460 }
 0x4f8   : > { %5954 = vmatmul.mubr.msk.bf16.vlgmr.msra.gmra.mxu1 %vm1964_vm1, %v2055_v0  ;;  %v2051_v3 = vmul.f32 %v6461_v1, %v7272_v39  ;;  %v6239_v39 = vld [vmem:[%s6984_s3 + $0x84] ss:$8 sps:$4 sm:$0xff]  }
 0x4f9   : > { %5958 = vmatpush3.bf16.msra.mxu1 %v1769_v63  ;;  %5959 = vmatprep.mubr.msk.bf16.mxu1 %vm6702_vm0, %v6701_v50  ;;  %v6236_v50 = vld [vmem:[%s6984_s3 + $0x94] ss:$8 sps:$4 sm:$0xff]  }
 0x4fa   : > { %2469 = vmatprep.subr.bf16.mxu0 %v6236_v50  ;;  %v6550_v50 = vld [vmem:[#allocation2 + $0x28] sm:$0xff] }
 0x4fb   : > { %v6463_v2 = vpop.eup %6462  ;;  %2470 = vmatpush2.bf16.msra.mxu0 %v6234_v9 }
 0x4fc   : > { %v2052_v32 = vmul.f32 %v6463_v2, %v7278_v44  ;;  %2471 = vmatprep.subr.bf16.mxu0 %v6239_v39 }
 0x4fe   : > { %v2056_v35 = vpack.c.bf16 %v2052_v32, %v2051_v3  ;;  %v6548_v3 = vld [vmem:[#allocation2 + $0x8] sm:$0xff] }
 0x4ff   : > { %2472 = vmatpush2.bf16.msra.mxu0 %v6237_v10  ;;  %v6551_v10 = vld [vmem:[#allocation2 + $0x38] sm:$0xff] }
 0x500   : > { %5960 = vmatmul.mubr.msk.bf16.vlgmr.msra.gmra.mxu1 %vm1964_vm1, %v2056_v35  ;;  %v6549_v35 = vld [vmem:[#allocation2 + $0x20] sm:$0xff] }
 0x5a8   : > { %v2094_v44 = vpop.f32.mrf.mxu1 }
 0x5aa   : > { %v5943_v11 = vpop.f32.mrf.mxu1 }
 0x5ac   : > { %v2097_v12 = vpop.f32.mrf.mxu1 }
 0x5ad   : > { %v2233_v19 = vpack.c.bf16 %v2097_v12, %v2094_v44  ;;  %v2667_v12 = vld [vmem:[%s6973_s20 + $0x1c0] sm:$0xff] }
 0x5ae   : > { %v5944_v13 = vpop.f32.mrf.mxu1 }
 0x5af   : > { %v2671_v13 = vld [vmem:[%s6973_s20 + $0x1e0] sm:$0xff] }
 0x5b0   : > { %v2138_v14 = vpop.f32.mrf.mxu1 }
 0x5b2   : > { %v5949_v16 = vpop.f32.mrf.mxu1 }
 0x5b3   : > { %v5648_v16 = vcombine.low %v2667_v12, %v2671_v13 }
 0x5b4   : > { %v2141_v17 = vpop.f32.mrf.mxu1 }
 0x5b5   : > { %v2234_v18 = vpack.c.bf16 %v2141_v17, %v2138_v14  ;;  %v2668_v14 = vld [vmem:[%s6973_s20 + $0x1c8] sm:$0xff]  ;;  %v5649_v17 = vcombine.high %v2667_v12, %v2671_v13 }
 0x5b6   : > { %v5950_v22 = vpop.f32.mrf.mxu1  ;;  %v2624_v12 = vld [vmem:[%s6973_s20 + $0x68] sm:$0xff] }
 0x5b7   : > { %2473 = vmatprep.mubr.bf16.mxu0 %v2234_v18  ;;  %v2672_v18 = vld [vmem:[%s6973_s20 + $0x1e8] sm:$0xff]  ;;  %v2663_v22 = vld [vmem:[%s6973_s20 + $0x1a0] sm:$0xff]  ;;  %3421 = vmatprep.subr.bf16.mxu1 %v5649_v17 }
 0x5b8   : > { %v2182_v23 = vpop.f32.mrf.mxu1  ;;  %2474 = vmatmul.mubr.bf16.vlgmr.msra.gmra.mxu0 %v2233_v19  ;;  %v2659_v19 = vld [vmem:[%s6973_s20 + $0x180] sm:$0xff]  ;;  %3422 = vmatpush1.bf16.msra.mxu1 %v5648_v16 }
 0x5b9   : > { %v5640_v30 = vcombine.low %v2659_v19, %v2663_v22 }
 0x5ba   : > { %v5955_v24 = vpop.f32.mrf.mxu1 }
 0x5bb   : > { %v5651_v24 = vcombine.high %v2668_v14, %v2672_v18 }
 0x5bc   : > { %v2185_v25 = vpop.f32.mrf.mxu1 }
 0x5bd   : > { %v2235_v33 = vpack.c.bf16 %v2185_v25, %v2182_v23  ;;  %v5650_v23 = vcombine.low %v2668_v14, %v2672_v18  ;;  %v5641_v25 = vcombine.high %v2659_v19, %v2663_v22  ;;  %3474 = vmatprep.subr.bf16.mxu0 %v5651_v24  ;;  %v2611_v18 = vld [vmem:[%s6973_s20] sm:$0xff]  ;;  %v2612_v22 = vld [vmem:[%s6973_s20 + $0x8] sm:$0xff] }
 0x5be   : > { %v5956_v46 = vpop.f32.mrf.mxu1  ;;  %v2615_v19 = vld [vmem:[%s6973_s20 + $0x20] sm:$0xff] }
 0x5bf   : > { %v2660_v46 = vld [vmem:[%s6973_s20 + $0x188] sm:$0xff]  ;;  %3475 = vmatpush1.bf16.msra.mxu0 %v5650_v23  ;;  %3423 = vmatprep.subr.bf16.mxu1 %v5641_v25 }
 0x5c0   : > { %v2226_v49 = vpop.f32.mrf.mxu1  ;;  %3424 = vmatpush1.bf16.msra.mxu1 %v5640_v30  ;;  %v2616_v23 = vld [vmem:[%s6973_s20 + $0x28] sm:$0xff] }
 0x5c1   : > { %v5594_v30 = vcombine.low %v2612_v22, %v2616_v23 }
 0x5c2   : > { %v5961_v26 = vpop.f32.mrf.mxu1 }
 0x5c3   : > { %v2651_v26 = vld [vmem:[%s6973_s20 + $0x140] sm:$0xff] }
 0x5c4   : > { %v2229_v28 = vpop.f32.mrf.mxu1 }
 0x5c5   : > { %v2236_v29 = vpack.c.bf16 %v2229_v28, %v2226_v49  ;;  %v2664_v49 = vld [vmem:[%s6973_s20 + $0x1a8] sm:$0xff] }
 0x5c6   : > { %v5962_v34 = vpop.f32.mrf.mxu1  ;;  %v5643_v28 = vcombine.high %v2660_v46, %v2664_v49 }
 0x5c7   : > { %2483 = vmatprep.mubr.bf16.mxu0 %v2236_v29  ;;  %v2655_v29 = vld [vmem:[%s6973_s20 + $0x160] sm:$0xff]  ;;  %v2656_v34 = vld [vmem:[%s6973_s20 + $0x168] sm:$0xff] }
 0x5c8   : > { %2484 = vmatmul.mubr.bf16.gmra.mxu0 %v2235_v33  ;;  %v2652_v33 = vld [vmem:[%s6973_s20 + $0x148] sm:$0xff]  ;;  %3476 = vmatprep.subr.bf16.mxu0 %v5643_v28  ;;  %v2735_v28 = vld [vmem:[%s6973_s20 + $0x3e0] sm:$0xff] }
 0x678   : > { %v2475_v41 = vpop.f32.mrf.mxu0 }
 0x679   : > { %v2476_v42 = vadd.f32 %v2475_v41, %v2274_v38  ;;  %v5635_v41 = vcombine.high %v2652_v33, %v2656_v34 }
 0x67a   : > { %v2477_v54 = vpop.f32.mrf.mxu0 }
 0x67b   : > { %v2478_v43 = vadd.f32 %v2477_v54, %v2278_v40  ;;  %v7349_v15 = vadd.f32 %v6544_v37, %v2476_v42  ;;  %v2643_v42 = vld [vmem:[%s6973_s20 + $0x100] sm:$0xff]  ;;  %v5632_v37 = vcombine.low %v2651_v26, %v2655_v29 }
 0x67c   : > { %v2479_v47 = vpop.f32.mrf.mxu0  ;;  %v2647_v54 = vld [vmem:[%s6973_s20 + $0x120] sm:$0xff] }
 0x67d   : > { %v7351_v48 = vadd.f32 %v6545_v20, %v2478_v43  ;;  %v2480_v51 = vadd.f32 %v2479_v47, %v2274_v38  ;;  %v2644_v43 = vld [vmem:[%s6973_s20 + $0x108] sm:$0xff]  ;;  %v5634_v20 = vcombine.low %v2652_v33, %v2656_v34  ;;  %v5592_v34 = vcombine.low %v2611_v18, %v2615_v19 }
 0x67e   : > { %v2481_v55 = vpop.f32.mrf.mxu0  ;;  %v2648_v47 = vld [vmem:[%s6973_s20 + $0x128] sm:$0xff] }
 0x67f   : > { %v2482_v56 = vadd.f32 %v2481_v55, %v2278_v40  ;;  %v2504_v57 = vadd.f32 %v7351_v48, %v7349_v15  ;;  %v7355_v60 = vadd.f32 %v6546_v59, %v2480_v51  ;;  %v5625_v51 = vcombine.high %v2643_v42, %v2647_v54  ;;  %v2636_v59 = vld [vmem:[%s6973_s20 + $0xc8] sm:$0xff] }
 0x680   : > { %v5627_v55 = vcombine.high %v2644_v43, %v2648_v47  ;;  %v2736_v33 = vld [vmem:[%s6973_s20 + $0x3e8] sm:$0xff] }
 0x681   : > { %v7357_v45 = vadd.f32 %v6547_v31, %v2482_v56  ;;  %2505 = vadd.xlane.f32.xlu0 %v2504_v57  ;;  %v2635_v56 = vld [vmem:[%s6973_s20 + $0xc0] sm:$0xff]  ;;  %v2640_v31 = vld [vmem:[%s6973_s20 + $0xe8] sm:$0xff] }
 0x682   : > { %v2639_v57 = vld [vmem:[%s6973_s20 + $0xe0] sm:$0xff] }
 0x683   : > { %v2507_v27 = vadd.f32 %v7357_v45, %v7355_v60 }
 0x685   : > { %2508 = vadd.xlane.f32.xlu1 %v2507_v27  ;;  %v5624_v27 = vcombine.low %v2643_v42, %v2647_v54 }
 0x688   : > { %v2485_v61 = vpop.f32.mrf.mxu0 }
 0x689   : > { %v2486_v63 = vadd.f32 %v2485_v61, %v2274_v38  ;;  %v5626_v61 = vcombine.low %v2644_v43, %v2648_v47 }
 0x68a   : > { %v2487_v0 = vpop.f32.mrf.mxu0 }
 0x68b   : > { %v2488_v1 = vadd.f32 %v2487_v0, %v2278_v40  ;;  %v7361_v32 = vadd.f32 %v6548_v3, %v2486_v63  ;;  %v5617_v63 = vcombine.high %v2635_v56, %v2639_v57  ;;  %v5619_v0 = vcombine.high %v2636_v59, %v2640_v31  ;;  %v2628_v3 = vld [vmem:[%s6973_s20 + $0x88] sm:$0xff] }
 0x68c   : > { %v2489_v2 = vpop.f32.mrf.mxu0 }
 0x68d   : > { %v7363_v4 = vadd.f32 %v6549_v35, %v2488_v1  ;;  %v2490_v5 = vadd.f32 %v2489_v2, %v2274_v38  ;;  %v5642_v38 = vcombine.low %v2660_v46, %v2664_v49  ;;  %v2627_v1 = vld [vmem:[%s6973_s20 + $0x80] sm:$0xff]  ;;  %v2632_v35 = vld [vmem:[%s6973_s20 + $0xa8] sm:$0xff]  ;;  %v5593_v46 = vcombine.high %v2611_v18, %v2615_v19 }
 0x68e   : > { %v2491_v6 = vpop.f32.mrf.mxu0  ;;  %v2631_v2 = vld [vmem:[%s6973_s20 + $0xa0] sm:$0xff]  ;;  %v5610_v14 = vcombine.low %v2628_v3, %v2632_v35  ;;  %v5595_v49 = vcombine.high %v2612_v22, %v2616_v23  ;;  %v2720_v18 = vld [vmem:[%s6973_s20 + $0x368] sm:$0xff] }
 0x68f   : > { %v2492_v7 = vadd.f32 %v2491_v6, %v2278_v40  ;;  %v2510_v9 = vadd.f32 %v7363_v4, %v7361_v32  ;;  %v7367_v39 = vadd.f32 %v6550_v50, %v2490_v5  ;;  %v5633_v40 = vcombine.high %v2651_v26, %v2655_v29  ;;  %3477 = vmatpush1.bf16.msra.mxu0 %v5642_v38  ;;  %v2619_v50 = vld [vmem:[%s6973_s20 + $0x40] sm:$0xff]  ;;  %v2732_v29 = vld [vmem:[%s6973_s20 + $0x3c8] sm:$0xff] }
 0x690   : > { %3478 = vmatprep.subr.bf16.mxu0 %v5635_v41  ;;  %v5616_v5 = vcombine.low %v2635_v56, %v2639_v57  ;;  %v5618_v6 = vcombine.low %v2636_v59, %v2640_v31  ;;  %v5608_v13 = vcombine.low %v2627_v1, %v2631_v2  ;;  %v2731_v26 = vld [vmem:[%s6973_s20 + $0x3c0] sm:$0xff]  ;;  %v5714_v42 = vcombine.low %v2732_v29, %v2736_v33 }
 0x691   : > { %v7369_v44 = vadd.f32 %v6551_v10, %v2492_v7  ;;  %2511 = vadd.xlane.f32.xlu0 %v2510_v9  ;;  %3425 = vmatprep.subr.bf16.mxu1 %v5633_v40  ;;  %v5609_v7 = vcombine.high %v2627_v1, %v2631_v2  ;;  %v5611_v9 = vcombine.high %v2628_v3, %v2632_v35  ;;  %v2623_v10 = vld [vmem:[%s6973_s20 + $0x60] sm:$0xff]  ;;  %v2724_v3 = vld [vmem:[%s6973_s20 + $0x388] sm:$0xff] }
 0x692   : > { %3426 = vmatpush1.bf16.msra.mxu1 %v5632_v37  ;;  %v5601_v16 = vcombine.high %v2619_v50, %v2623_v10  ;;  %v5600_v24 = vcombine.low %v2619_v50, %v2623_v10  ;;  %v5713_v38 = vcombine.high %v2731_v26, %v2735_v28  ;;  %v5715_v40 = vcombine.high %v2732_v29, %v2736_v33  ;;  %v2723_v1 = vld [vmem:[%s6973_s20 + $0x380] sm:$0xff]  ;;  %v2712_v29 = vld [vmem:[%s6973_s20 + $0x328] sm:$0xff] }
 0x693   : > { %v2513_v11 = vadd.f32 %v7369_v44, %v7367_v39  ;;  %3479 = vmatpush1.bf16.msra.mxu0 %v5634_v20  ;;  %3427 = vmatprep.subr.bf16.mxu1 %v5625_v51  ;;  %v5712_v41 = vcombine.low %v2731_v26, %v2735_v28  ;;  %v2727_v2 = vld [vmem:[%s6973_s20 + $0x3a0] sm:$0xff] }
 0x694   : > { %3480 = vmatprep.subr.bf16.mxu0 %v5627_v55  ;;  %v2699_v33 = vld [vmem:[%s6973_s20 + $0x2c0] sm:$0xff] }
 0x695   : > { %2514 = vadd.xlane.f32.xlu1 %v2513_v11  ;;  %v2620_v11 = vld [vmem:[%s6973_s20 + $0x48] sm:$0xff] }
 0x696   : > { %3428 = vmatpush1.bf16.msra.mxu1 %v5624_v27  ;;  %v5603_v17 = vcombine.high %v2620_v11, %v2624_v12  ;;  %v5602_v25 = vcombine.low %v2620_v11, %v2624_v12 }
 0x697   : > { %3481 = vmatpush1.bf16.msra.mxu0 %v5626_v61  ;;  %3429 = vmatprep.subr.bf16.mxu1 %v5617_v63 }
 0x698   : > { %3482 = vmatprep.subr.bf16.mxu0 %v5619_v0 }
 0x69a   : > { %3430 = vmatpush1.bf16.msra.mxu1 %v5616_v5 }
 0x69b   : > { %3483 = vmatpush1.bf16.msra.mxu0 %v5618_v6  ;;  %3431 = vmatprep.subr.bf16.mxu1 %v5609_v7  ;;  %v5705_v7 = vcombine.high %v2723_v1, %v2727_v2 }
 0x69c   : > { %3484 = vmatprep.subr.bf16.mxu0 %v5611_v9  ;;  %v5704_v9 = vcombine.low %v2723_v1, %v2727_v2  ;;  %v2684_v1 = vld [vmem:[%s6973_s20 + $0x248] sm:$0xff] }
 0x69e   : > { %3432 = vmatpush1.bf16.msra.mxu1 %v5608_v13  ;;  %v2715_v13 = vld [vmem:[%s6973_s20 + $0x340] sm:$0xff] }
 0x69f   : > { %3485 = vmatpush1.bf16.msra.mxu0 %v5610_v14  ;;  %3433 = vmatprep.subr.bf16.mxu1 %v5601_v16  ;;  %v2719_v14 = vld [vmem:[%s6973_s20 + $0x360] sm:$0xff]  ;;  %v2716_v16 = vld [vmem:[%s6973_s20 + $0x348] sm:$0xff] }
 0x6a0   : > { %3486 = vmatprep.subr.bf16.mxu0 %v5603_v17  ;;  %v5696_v19 = vcombine.low %v2715_v13, %v2719_v14  ;;  %v5698_v22 = vcombine.low %v2716_v16, %v2720_v18  ;;  %v5699_v23 = vcombine.high %v2716_v16, %v2720_v18  ;;  %v7478_v16 = vld [vmem:[%s6973_s20 + $0x1d0] sm:$0xff] }
 0x6a2   : > { %3434 = vmatpush1.bf16.msra.mxu1 %v5600_v24 }
 0x6a3   : > { %3487 = vmatpush1.bf16.msra.mxu0 %v5602_v25  ;;  %3435 = vmatprep.subr.bf16.mxu1 %v5593_v46  ;;  %v2707_v25 = vld [vmem:[%s6973_s20 + $0x300] sm:$0xff] }
 0x6a4   : > { %3488 = vmatprep.subr.bf16.mxu0 %v5595_v49  ;;  %v2711_v46 = vld [vmem:[%s6973_s20 + $0x320] sm:$0xff]  ;;  %v2708_v49 = vld [vmem:[%s6973_s20 + $0x308] sm:$0xff] }
 0x6a5   : > { %v5688_v26 = vcombine.low %v2707_v25, %v2711_v46  ;;  %v5689_v28 = vcombine.high %v2707_v25, %v2711_v46 }
 0x6a6   : > { %3436 = vmatpush1.bf16.msra.mxu1 %v5592_v34  ;;  %v2703_v34 = vld [vmem:[%s6973_s20 + $0x2e0] sm:$0xff] }
 0x6a7   : > { %3489 = vmatpush1.bf16.msra.mxu0 %v5594_v30  ;;  %3437 = vmatprep.subr.bf16.mxu1 %v5713_v38  ;;  %v5690_v30 = vcombine.low %v2708_v49, %v2712_v29  ;;  %v5691_v38 = vcombine.high %v2708_v49, %v2712_v29  ;;  %v2502_v29 = vld [vmem:[%s8252_s4] sm:$0x3] }
 0x6a8   : > { %3490 = vmatprep.subr.bf16.mxu0 %v5715_v40  ;;  %v2700_v40 = vld [vmem:[%s6973_s20 + $0x2c8] sm:$0xff] }
 0x6aa   : > { %3438 = vmatpush2.bf16.msra.mxu1 %v5712_v41  ;;  %v2704_v41 = vld [vmem:[%s6973_s20 + $0x2e8] sm:$0xff] }
 0x6ab   : > { %3491 = vmatpush2.bf16.msra.mxu0 %v5714_v42  ;;  %3439 = vmatprep.subr.bf16.mxu1 %v5705_v7  ;;  %v5681_v42 = vcombine.high %v2699_v33, %v2703_v34  ;;  %v2675_v7 = vld [vmem:[%s6973_s20 + $0x200] sm:$0xff] }
 0x6ae   : > { %3440 = vmatpush2.bf16.msra.mxu1 %v5704_v9  ;;  %v2676_v9 = vld [vmem:[%s6973_s20 + $0x208] sm:$0xff] }
 0x70a   : > { %v2506_v54 = vpop.xlane.xlu0 %2505 }
 0x70b   : > { %v2517_v43 = vmul.f32 0.00390625, %v2506_v54  ;;  %v5683_v54 = vcombine.high %v2700_v40, %v2704_v41 }
 0x70d   : > { %v7410_v47 = vsub.f32 %v7349_v15, %v2517_v43  ;;  %v7413_v37 = vsub.f32 %v7351_v48, %v2517_v43  ;;  %v5680_v43 = vcombine.low %v2699_v33, %v2703_v34 }
 0x70e   : > { %v2509_v20 = vpop.xlane.xlu1 %2508 }
 0x70f   : > { %v2518_v51 = vmul.f32 0.00390625, %v2509_v20  ;;  %v2529_v55 = vmul.f32 %v7410_v47, %v7410_v47  ;;  %v2530_v56 = vmul.f32 %v7413_v37, %v7413_v37  ;;  %v5682_v20 = vcombine.low %v2700_v40, %v2704_v41  ;;  %v2503_v41 = vld [vmem:[%s824_s19] sm:$0x3] }
 0x711   : > { %v7420_v57 = vsub.f32 %v7355_v60, %v2518_v51  ;;  %v7423_v15 = vsub.f32 %v7357_v45, %v2518_v51  ;;  %v2537_v59 = vadd.f32 %v2530_v56, %v2529_v55  ;;  %v2691_v51 = vld [vmem:[%s6973_s20 + $0x280] sm:$0xff]  ;;  %v2692_v56 = vld [vmem:[%s6973_s20 + $0x288] sm:$0xff] }
 0x712   : > { %v2695_v55 = vld [vmem:[%s6973_s20 + $0x2a0] sm:$0xff] }
 0x713   : > { %2538 = vadd.xlane.f32.xlu0 %v2537_v59  ;;  %v2531_v48 = vmul.f32 %v7420_v57, %v7420_v57  ;;  %v2532_v31 = vmul.f32 %v7423_v15, %v7423_v15  ;;  %v5673_v59 = vcombine.high %v2691_v51, %v2695_v55 }
 0x715   : > { %v2540_v27 = vadd.f32 %v2532_v31, %v2531_v48  ;;  %v2696_v48 = vld [vmem:[%s6973_s20 + $0x2a8] sm:$0xff]  ;;  %v5672_v31 = vcombine.low %v2691_v51, %v2695_v55 }
 0x717   : > { %2541 = vadd.xlane.f32.xlu1 %v2540_v27  ;;  %v5674_v27 = vcombine.low %v2692_v56, %v2696_v48 }
 0x71a   : > { %v2512_v61 = vpop.xlane.xlu0 %2511 }
 0x71b   : > { %v2519_v63 = vmul.f32 0.00390625, %v2512_v61  ;;  %v5675_v61 = vcombine.high %v2692_v56, %v2696_v48 }
 0x71d   : > { %v7430_v0 = vsub.f32 %v7361_v32, %v2519_v63  ;;  %v7433_v60 = vsub.f32 %v7363_v4, %v2519_v63  ;;  %v2728_v32 = vld [vmem:[%s6973_s20 + $0x3a8] sm:$0xff]  ;;  %v2683_v63 = vld [vmem:[%s6973_s20 + $0x240] sm:$0xff] }
 0x71e   : > { %v2515_v45 = vpop.xlane.xlu1 %2514  ;;  %v5706_v50 = vcombine.low %v2724_v3, %v2728_v32  ;;  %v5707_v4 = vcombine.high %v2724_v3, %v2728_v32  ;;  %v2688_v3 = vld [vmem:[%s6973_s20 + $0x268] sm:$0xff]  ;;  %v2679_v32 = vld [vmem:[%s6973_s20 + $0x220] sm:$0xff] }
 0x71f   : > { %v2520_v35 = vmul.f32 0.00390625, %v2515_v45  ;;  %v2533_v5 = vmul.f32 %v7430_v0, %v7430_v0  ;;  %v2534_v6 = vmul.f32 %v7433_v60, %v7433_v60  ;;  %v2687_v45 = vld [vmem:[%s6973_s20 + $0x260] sm:$0xff] }
 0x720   : > { %3492 = vmatprep.subr.bf16.mxu0 %v5707_v4  ;;  %v5665_v2 = vcombine.high %v2683_v63, %v2687_v45  ;;  %v5657_v4 = vcombine.high %v2675_v7, %v2679_v32 }
 0x721   : > { %v7444_v10 = vsub.f32 %v7367_v39, %v2520_v35  ;;  %v7447_v11 = vsub.f32 %v7369_v44, %v2520_v35  ;;  %v2543_v12 = vadd.f32 %v2534_v6, %v2533_v5  ;;  %3493 = vmatpush2.bf16.msra.mxu0 %v5706_v50  ;;  %v5697_v44 = vcombine.high %v2715_v13, %v2719_v14 }
 0x722   : > { %3494 = vmatprep.subr.bf16.mxu0 %v5699_v23  ;;  %v5664_v35 = vcombine.low %v2683_v63, %v2687_v45  ;;  %v5666_v5 = vcombine.low %v2684_v1, %v2688_v3  ;;  %v5667_v6 = vcombine.high %v2684_v1, %v2688_v3  ;;  %v5656_v50 = vcombine.low %v2675_v7, %v2679_v32  ;;  %v2661_v45 = vld [vmem:[%s6973_s20 + $0x190] sm:$0xff] }
 0x723   : > { %2544 = vadd.xlane.f32.xlu0 %v2543_v12  ;;  %v2535_v17 = vmul.f32 %v7444_v10, %v7444_v10  ;;  %v2536_v39 = vmul.f32 %v7447_v11, %v7447_v11  ;;  %3441 = vmatprep.subr.bf16.mxu1 %v5697_v44  ;;  %v2680_v12 = vld [vmem:[%s6973_s20 + $0x228] sm:$0xff]  ;;  %v2665_v3 = vld [vmem:[%s6973_s20 + $0x1b0] sm:$0xff] }
 0x724   : > { %3442 = vmatpush2.bf16.msra.mxu1 %v5696_v19  ;;  %v5658_v13 = vcombine.low %v2676_v9, %v2680_v12  ;;  %v5659_v14 = vcombine.high %v2676_v9, %v2680_v12  ;;  %v2674_v19 = vld [vmem:[%s6973_s20 + $0x1f8] sm:$0xff]  ;;  %v5645_v32 = vcombine.high %v2661_v45, %v2665_v3 }
 0x725   : > { %v2546_v24 = vadd.f32 %v2536_v39, %v2535_v17  ;;  %3495 = vmatpush2.bf16.msra.mxu0 %v5698_v22  ;;  %3443 = vmatprep.subr.bf16.mxu1 %v5689_v28  ;;  %v2673_v17 = vld [vmem:[%s6973_s20 + $0x1f0] sm:$0xff]  ;;  %v2670_v39 = vld [vmem:[%s6973_s20 + $0x1d8] sm:$0xff] }
 0x726   : > { %3496 = vmatprep.subr.bf16.mxu0 %v5691_v38  ;;  %v5652_v44 = vcombine.low %v7478_v16, %v2673_v17  ;;  %v5653_v18 = vcombine.high %v7478_v16, %v2673_v17  ;;  %v5654_v22 = vcombine.low %v2670_v39, %v2674_v19  ;;  %v5655_v23 = vcombine.high %v2670_v39, %v2674_v19  ;;  %v2654_v12 = vld [vmem:[%s6973_s20 + $0x158] sm:$0xff]  ;;  %v2645_v19 = vld [vmem:[%s6973_s20 + $0x110] sm:$0xff] }
 0x727   : > { %2547 = vadd.xlane.f32.xlu1 %v2546_v24  ;;  %v7491_v38 = vrot.slane %v2502_v29, %v7175_v8 }
 0x728   : > { %3444 = vmatpush2.bf16.msra.mxu1 %v5688_v26 }
 0x729   : > { %3497 = vmatpush2.bf16.msra.mxu0 %v5690_v30  ;;  %3445 = vmatprep.subr.bf16.mxu1 %v5681_v42 }
 0x72a   : > { %3498 = vmatprep.subr.bf16.mxu0 %v5683_v54 }
 0x72c   : > { %3446 = vmatpush2.bf16.msra.mxu1 %v5680_v43  ;;  %v7501_v43 = vrot.slane %v2502_v29, %v7166_v58 }
 0x72d   : > { %3499 = vmatpush2.bf16.msra.mxu0 %v5682_v20  ;;  %3447 = vmatprep.subr.bf16.mxu1 %v5673_v59  ;;  %v7505_v59 = vrot.slane %v2503_v41, %v7175_v8 }
 0x72e   : > { %3500 = vmatprep.subr.bf16.mxu0 %v5675_v61 }
 0x730   : > { %3448 = vmatpush2.bf16.msra.mxu1 %v5672_v31 }
 0x731   : > { %3501 = vmatpush2.bf16.msra.mxu0 %v5674_v27  ;;  %3449 = vmatprep.subr.bf16.mxu1 %v5665_v2 }
 0x732   : > { %3502 = vmatprep.subr.bf16.mxu0 %v5667_v6 }
 0x734   : > { %3450 = vmatpush2.bf16.msra.mxu1 %v5664_v35  ;;  %v2662_v35 = vld [vmem:[%s6973_s20 + $0x198] sm:$0xff] }
 0x735   : > { %3503 = vmatpush2.bf16.msra.mxu0 %v5666_v5  ;;  %3451 = vmatprep.subr.bf16.mxu1 %v5657_v4  ;;  %v2666_v5 = vld [vmem:[%s6973_s20 + $0x1b8] sm:$0xff]  ;;  %v2657_v4 = vld [vmem:[%s6973_s20 + $0x170] sm:$0xff] }
 0x736   : > { %3504 = vmatprep.subr.bf16.mxu0 %v5659_v14  ;;  %v5647_v9 = vcombine.high %v2662_v35, %v2666_v5  ;;  %v5644_v14 = vcombine.low %v2661_v45, %v2665_v3  ;;  %v5646_v16 = vcombine.low %v2662_v35, %v2666_v5 }
 0x738   : > { %3452 = vmatpush2.bf16.msra.mxu1 %v5656_v50  ;;  %v2653_v50 = vld [vmem:[%s6973_s20 + $0x150] sm:$0xff] }
 0x739   : > { %3505 = vmatpush2.bf16.msra.mxu0 %v5658_v13  ;;  %3527 = vmatprep.subr.bf16.mxu1 %v5653_v18  ;;  %v2658_v13 = vld [vmem:[%s6973_s20 + $0x178] sm:$0xff]  ;;  %v5637_v39 = vcombine.high %v2653_v50, %v2657_v4 }
 0x73a   : > { %3580 = vmatprep.subr.bf16.mxu0 %v5655_v23  ;;  %v5639_v18 = vcombine.high %v2654_v12, %v2658_v13  ;;  %v2649_v23 = vld [vmem:[%s6973_s20 + $0x130] sm:$0xff] }
 0x79c   : > { %v2539_v24 = vpop.xlane.xlu0 %2538 }
 0x79d   : > { %v2549_v25 = vmul.f32 0.00390625, %v2539_v24  ;;  %v2646_v24 = vld [vmem:[%s6973_s20 + $0x118] sm:$0xff] }
 0x79f   : > { %v2553_v46 = vadd.f32 1e-12, %v2549_v25  ;;  %v2650_v25 = vld [vmem:[%s6973_s20 + $0x138] sm:$0xff] }
 0x7a0   : > { %v2542_v49 = vpop.xlane.xlu1 %2541  ;;  %v5631_v29 = vcombine.high %v2646_v24, %v2650_v25 }
 0x7a1   : > { %6464 = vrsqrt.f32 %v2553_v46  ;;  %v2550_v26 = vmul.f32 0.00390625, %v2542_v49  ;;  %v5638_v49 = vcombine.low %v2654_v12, %v2658_v13 }
 0x7a3   : > { %v2554_v28 = vadd.f32 1e-12, %v2550_v26 }
 0x7a5   : > { %6466 = vrsqrt.f32 %v2554_v28  ;;  %v5629_v28 = vcombine.high %v2645_v19, %v2649_v23 }
 0x7ac   : > { %v2545_v33 = vpop.xlane.xlu0 %2544 }
 0x7ad   : > { %v2551_v34 = vmul.f32 0.00390625, %v2545_v33  ;;  %v2637_v33 = vld [vmem:[%s6973_s20 + $0xd0] sm:$0xff] }
 0x7ae   : > { %v6465_v30 = vpop.eup %6464 }
 0x7af   : > { %v2555_v40 = vadd.f32 1e-12, %v2551_v34  ;;  %v2562_v42 = vmul.f32 %v6465_v30, %v7413_v37  ;;  %v2561_v54 = vmul.f32 %v6465_v30, %v7410_v47  ;;  %v7508_v37 = vrot.slane %v2503_v41, %v7166_v58  ;;  %v2638_v41 = vld [vmem:[%s6973_s20 + $0xd8] sm:$0xff] }
 0x7b0   : > { %v2548_v20 = vpop.xlane.xlu1 %2547 }
 0x7b1   : > { %6468 = vrsqrt.f32 %v2555_v40  ;;  %v2552_v51 = vmul.f32 0.00390625, %v2548_v20  ;;  %v2581_v56 = vmul.f32 %v7491_v38, %v2562_v42  ;;  %v2580_v27 = vmul.f32 %v7501_v43, %v2561_v54  ;;  %v2641_v40 = vld [vmem:[%s6973_s20 + $0xf0] sm:$0xff] }
 0x7b2   : > { %v6467_v55 = vpop.eup %6466  ;;  %v5628_v54 = vcombine.low %v2645_v19, %v2649_v23  ;;  %v5630_v20 = vcombine.low %v2646_v24, %v2650_v25  ;;  %v2733_v25 = vld [vmem:[%s6973_s20 + $0x3d0] sm:$0xff] }
 0x7b3   : > { %v2556_v47 = vadd.f32 1e-12, %v2552_v51  ;;  %v2564_v48 = vmul.f32 %v6467_v55, %v7423_v15  ;;  %v2563_v31 = vmul.f32 %v6467_v55, %v7420_v57  ;;  %v7517_v1 = vadd.f32 %v7505_v59, %v2581_v56 }
 0x7b4   : > { %v7523_v57 = vadd.f32 %v7508_v37, %v2580_v27  ;;  %v5621_v55 = vcombine.high %v2637_v33, %v2641_v40  ;;  %v5620_v27 = vcombine.low %v2637_v33, %v2641_v40  ;;  %v2725_v33 = vld [vmem:[%s6973_s20 + $0x390] sm:$0xff]  ;;  %v2730_v40 = vld [vmem:[%s6973_s20 + $0x3b8] sm:$0xff] }
 0x7b5   : > { %6470 = vrsqrt.f32 %v2556_v47  ;;  %v2583_v61 = vmul.f32 %v7491_v38, %v2564_v48  ;;  %v2582_v63 = vmul.f32 %v7501_v43, %v2563_v31 }
 0x7b7   : > { %v7520_v2 = vadd.f32 %v7505_v59, %v2583_v61  ;;  %v7526_v15 = vadd.f32 %v7508_v37, %v2582_v63  ;;  %v2630_v61 = vld [vmem:[%s6973_s20 + $0x98] sm:$0xff] }
 0x7b8   : > { %v2634_v63 = vld [vmem:[%s6973_s20 + $0xb8] sm:$0xff] }
 0x7b9   : > { %v7533_v6 = vpack.c.bf16 %v7520_v2, %v7517_v1  ;;  %v7537_v7 = vpack.c.bf16 %v7526_v15, %v7523_v57  ;;  %v5615_v5 = vcombine.high %v2630_v61, %v2634_v63  ;;  %v5614_v12 = vcombine.low %v2630_v61, %v2634_v63  ;;  %v2713_v61 = vld [vmem:[%s6973_s20 + $0x330] sm:$0xff]  ;;  %v2710_v63 = vld [vmem:[%s6973_s20 + $0x318] sm:$0xff] }
 0x7bb   : > { %3453 = vmatprep.mubr.bf16.mxu1 %v7533_v6  ;;  %3506 = vmatprep.mubr.bf16.mxu0 %v7533_v6 }
 0x7bc   : > { %3454 = vmatmul.mubr.bf16.vlgmr.msra.gmra.mxu1 %v7537_v7  ;;  %3507 = vmatmul.mubr.bf16.vlgmr.msra.gmra.mxu0 %v7537_v7 }
 0x7bd   : > { %3528 = vmatpush1.bf16.msra.mxu1 %v5652_v44  ;;  %3581 = vmatpush1.bf16.msra.mxu0 %v5654_v22  ;;  %v5636_v22 = vcombine.low %v2653_v50, %v2657_v4  ;;  %v2626_v50 = vld [vmem:[%s6973_s20 + $0x78] sm:$0xff] }
 0x7be   : > { %v6469_v17 = vpop.eup %6468  ;;  %3529 = vmatprep.subr.bf16.mxu1 %v5645_v32  ;;  %3582 = vmatprep.subr.bf16.mxu0 %v5647_v9  ;;  %v2625_v32 = vld [vmem:[%s6973_s20 + $0x70] sm:$0xff]  ;;  %v2622_v9 = vld [vmem:[%s6973_s20 + $0x58] sm:$0xff] }
 0x7bf   : > { %v2566_v46 = vmul.f32 %v6469_v17, %v7433_v60  ;;  %v2565_v44 = vmul.f32 %v6469_v17, %v7430_v0  ;;  %v2642_v60 = vld [vmem:[%s6973_s20 + $0xf8] sm:$0xff]  ;;  %v2617_v17 = vld [vmem:[%s6973_s20 + $0x30] sm:$0xff]  ;;  %v5606_v23 = vcombine.low %v2622_v9, %v2626_v50 }
 0x7c0   : > { %v5623_v56 = vcombine.high %v2638_v41, %v2642_v60  ;;  %v5622_v45 = vcombine.low %v2638_v41, %v2642_v60 }
 0x7c1   : > { %3530 = vmatpush1.bf16.msra.mxu1 %v5644_v14  ;;  %3583 = vmatpush1.bf16.msra.mxu0 %v5646_v16  ;;  %v2585_v30 = vmul.f32 %v7491_v38, %v2566_v46  ;;  %v2584_v0 = vmul.f32 %v7501_v43, %v2565_v44  ;;  %v5607_v14 = vcombine.high %v2622_v9, %v2626_v50  ;;  %v2613_v16 = vld [vmem:[%s6973_s20 + $0x10] sm:$0xff]  ;;  %v2734_v44 = vld [vmem:[%s6973_s20 + $0x3d8] sm:$0xff] }
 0x7c2   : > { %v6471_v26 = vpop.eup %6470  ;;  %3531 = vmatprep.subr.bf16.mxu1 %v5637_v39  ;;  %3584 = vmatprep.subr.bf16.mxu0 %v5639_v18  ;;  %v2614_v39 = vld [vmem:[%s6973_s20 + $0x18] sm:$0xff]  ;;  %v2737_v46 = vld [vmem:[%s6973_s20 + $0x3f0] sm:$0xff] }
 0x7c3   : > { %v2568_v34 = vmul.f32 %v6471_v26, %v7447_v11  ;;  %v2567_v42 = vmul.f32 %v6471_v26, %v7444_v10  ;;  %v7564_v10 = vadd.f32 %v7505_v59, %v2585_v30  ;;  %v7570_v48 = vadd.f32 %v7508_v37, %v2584_v0  ;;  %v2618_v18 = vld [vmem:[%s6973_s20 + $0x38] sm:$0xff]  ;;  %v2701_v9 = vld [vmem:[%s6973_s20 + $0x2d0] sm:$0xff] }
 0x7c4   : > { %v5599_v24 = vcombine.high %v2614_v39, %v2618_v18  ;;  %v5598_v26 = vcombine.low %v2614_v39, %v2618_v18  ;;  %v2726_v30 = vld [vmem:[%s6973_s20 + $0x398] sm:$0xff]  ;;  %v5716_v41 = vcombine.low %v2733_v25, %v2737_v46  ;;  %v2705_v50 = vld [vmem:[%s6973_s20 + $0x2f0] sm:$0xff] }
 0x7c5   : > { %3532 = vmatpush1.bf16.msra.mxu1 %v5636_v22  ;;  %3585 = vmatpush1.bf16.msra.mxu0 %v5638_v49  ;;  %v2587_v51 = vmul.f32 %v7491_v38, %v2568_v34  ;;  %v2586_v11 = vmul.f32 %v7501_v43, %v2567_v42  ;;  %v2629_v38 = vld [vmem:[%s6973_s20 + $0x90] sm:$0xff]  ;;  %v2738_v22 = vld [vmem:[%s6973_s20 + $0x3f8] sm:$0xff]  ;;  %v5596_v49 = vcombine.low %v2613_v16, %v2617_v17 }
 0x7c6   : > { %3533 = vmatprep.subr.bf16.mxu1 %v5629_v28  ;;  %3586 = vmatprep.subr.bf16.mxu0 %v5631_v29  ;;  %v2633_v43 = vld [vmem:[%s6973_s20 + $0xb0] sm:$0xff]  ;;  %v5717_v28 = vcombine.high %v2733_v25, %v2737_v46  ;;  %v5719_v29 = vcombine.high %v2734_v44, %v2738_v22  ;;  %v5718_v60 = vcombine.low %v2734_v44, %v2738_v22 }
 0x7c7   : > { %v7567_v47 = vadd.f32 %v7505_v59, %v2587_v51  ;;  %v7573_v31 = vadd.f32 %v7508_v37, %v2586_v11  ;;  %v2621_v37 = vld [vmem:[%s6973_s20 + $0x50] sm:$0xff]  ;;  %v5613_v35 = vcombine.high %v2629_v38, %v2633_v43  ;;  %v5612_v4 = vcombine.low %v2629_v38, %v2633_v43  ;;  %v2718_v51 = vld [vmem:[%s6973_s20 + $0x358] sm:$0xff] }
 0x7c8   : > { %v5605_v13 = vcombine.high %v2621_v37, %v2625_v32  ;;  %v5604_v19 = vcombine.low %v2621_v37, %v2625_v32  ;;  %v2729_v34 = vld [vmem:[%s6973_s20 + $0x3b0] sm:$0xff]  ;;  %v5711_v0 = vcombine.high %v2726_v30, %v2730_v40  ;;  %v2722_v11 = vld [vmem:[%s6973_s20 + $0x378] sm:$0xff] }
 0x7c9   : > { %3534 = vmatpush1.bf16.msra.mxu1 %v5628_v54  ;;  %3587 = vmatpush1.bf16.msra.mxu0 %v5630_v20  ;;  %v7581_v59 = vpack.c.bf16 %v7567_v47, %v7564_v10  ;;  %v7585_v3 = vpack.c.bf16 %v7573_v31, %v7570_v48  ;;  %v5709_v42 = vcombine.high %v2725_v33, %v2729_v34  ;;  %v2717_v54 = vld [vmem:[%s6973_s20 + $0x350] sm:$0xff] }
 0x7ca   : > { %3535 = vmatprep.subr.bf16.mxu1 %v5621_v55  ;;  %3588 = vmatprep.subr.bf16.mxu0 %v5623_v56  ;;  %v2721_v20 = vld [vmem:[%s6973_s20 + $0x370] sm:$0xff]  ;;  %v5708_v55 = vcombine.low %v2725_v33, %v2729_v34  ;;  %v5710_v56 = vcombine.low %v2726_v30, %v2730_v40 }
 0x7cb   : > { %3463 = vmatprep.mubr.bf16.mxu1 %v7581_v59  ;;  %3516 = vmatprep.mubr.bf16.mxu0 %v7581_v59  ;;  %v5701_v38 = vcombine.high %v2717_v54, %v2721_v20  ;;  %v2709_v43 = vld [vmem:[%s6973_s20 + $0x310] sm:$0xff]  ;;  %v5700_v37 = vcombine.low %v2717_v54, %v2721_v20 }
 0x7cc   : > { %3464 = vmatmul.mubr.bf16.gmra.mxu1 %v7585_v3  ;;  %3517 = vmatmul.mubr.bf16.gmra.mxu0 %v7585_v3  ;;  %v2693_v39 = vld [vmem:[%s6973_s20 + $0x290] sm:$0xff] }
 0x7cd   : > { %3536 = vmatpush1.bf16.msra.mxu1 %v5620_v27  ;;  %3589 = vmatpush1.bf16.msra.mxu0 %v5622_v45  ;;  %v5703_v27 = vcombine.high %v2718_v51, %v2722_v11  ;;  %v2714_v45 = vld [vmem:[%s6973_s20 + $0x338] sm:$0xff]  ;;  %v2697_v18 = vld [vmem:[%s6973_s20 + $0x2b0] sm:$0xff] }
 0x7ce   : > { %3559 = vmatprep.mubr.bf16.mxu1 %v7533_v6  ;;  %3612 = vmatprep.mubr.bf16.mxu0 %v7533_v6  ;;  %v5597_v6 = vcombine.high %v2613_v16, %v2617_v17  ;;  %v5695_v32 = vcombine.high %v2710_v63, %v2714_v45  ;;  %v5685_v16 = vcombine.high %v2701_v9, %v2705_v50  ;;  %v2685_v44 = vld [vmem:[%s6973_s20 + $0x250] sm:$0xff] }
 0x7cf   : > { %3537 = vmatprep.subr.bf16.mxu1 %v5613_v35  ;;  %3590 = vmatprep.subr.bf16.mxu0 %v5615_v5  ;;  %v5702_v35 = vcombine.low %v2718_v51, %v2722_v11  ;;  %v5693_v5 = vcombine.high %v2709_v43, %v2713_v61  ;;  %v5677_v25 = vcombine.high %v2693_v39, %v2697_v18  ;;  %v2689_v22 = vld [vmem:[%s6973_s20 + $0x270] sm:$0xff] }
 0x7d0   : > { %v5669_v33 = vcombine.high %v2685_v44, %v2689_v22  ;;  %v2677_v30 = vld [vmem:[%s6973_s20 + $0x210] sm:$0xff] }
 0x7d1   : > { %3538 = vmatpush1.bf16.msra.mxu1 %v5612_v4  ;;  %3591 = vmatpush1.bf16.msra.mxu0 %v5614_v12  ;;  %v2702_v4 = vld [vmem:[%s6973_s20 + $0x2d8] sm:$0xff]  ;;  %v2681_v40 = vld [vmem:[%s6973_s20 + $0x230] sm:$0xff] }
 0x7d2   : > { %3539 = vmatprep.subr.bf16.mxu1 %v5605_v13  ;;  %3592 = vmatprep.subr.bf16.mxu0 %v5607_v14  ;;  %v2706_v12 = vld [vmem:[%s6973_s20 + $0x2f8] sm:$0xff]  ;;  %v5692_v13 = vcombine.low %v2709_v43, %v2713_v61  ;;  %v5694_v14 = vcombine.low %v2710_v63, %v2714_v45  ;;  %v5661_v54 = vcombine.high %v2677_v30, %v2681_v40  ;;  %v6248_v43 = vld [vmem:[%s7022_s11 + $0x64] ss:$8 sps:$4 sm:$0xff]   ;;  %v6246_v63 = vld [vmem:[%s7022_s11 + $0x60] ss:$8 sps:$4 sm:$0xff]  }
 0x7d3   : > { %v5687_v17 = vcombine.high %v2702_v4, %v2706_v12  ;;  %v5660_v51 = vcombine.low %v2677_v30, %v2681_v40  ;;  %v6251_v61 = vld [vmem:[%s7022_s11 + $0x164] ss:$8 sps:$4 sm:$0xff]   ;;  %v6249_v45 = vld [vmem:[%s7022_s11 + $0x160] ss:$8 sps:$4 sm:$0xff]   ;;  %v6302_v40 = vld [vmem:[%s7022_s11 + $0xd4] ss:$8 sps:$4 sm:$0xff]  }
 0x7d4   : > { %v6297_v30 = vld [vmem:[%s7022_s11 + $0x1e0] ss:$8 sps:$4 sm:$0xff]  }
 0x7d5   : > { %3540 = vmatpush1.bf16.msra.mxu1 %v5604_v19  ;;  %3593 = vmatpush1.bf16.msra.mxu0 %v5606_v23  ;;  %v2694_v19 = vld [vmem:[%s6973_s20 + $0x298] sm:$0xff] }
 0x7d6   : > { %3541 = vmatprep.subr.bf16.mxu1 %v5597_v6  ;;  %3594 = vmatprep.subr.bf16.mxu0 %v5599_v24  ;;  %v2698_v23 = vld [vmem:[%s6973_s20 + $0x2b8] sm:$0xff]  ;;  %v5684_v6 = vcombine.low %v2701_v9, %v2705_v50  ;;  %v5686_v24 = vcombine.low %v2702_v4, %v2706_v12  ;;  %v6258_v9 = vld [vmem:[%s7022_s11 + $0x40] ss:$8 sps:$4 sm:$0xff]  }
 0x7d7   : > { %v5679_v46 = vcombine.high %v2694_v19, %v2698_v23  ;;  %v6261_v50 = vld [vmem:[%s7022_s11 + $0x140] ss:$8 sps:$4 sm:$0xff]   ;;  %v6266_v4 = vld [vmem:[%s7022_s11 + $0x34] ss:$8 sps:$4 sm:$0xff]  }
 0x7d8   : > { %v6269_v12 = vld [vmem:[%s7022_s11 + $0x134] ss:$8 sps:$4 sm:$0xff]  }
 0x7d9   : > { %3542 = vmatpush1.bf16.msra.mxu1 %v5596_v49  ;;  %3595 = vmatpush1.bf16.msra.mxu0 %v5598_v26  ;;  %v2686_v49 = vld [vmem:[%s6973_s20 + $0x258] sm:$0xff] }
 0x7da   : > { %3543 = vmatprep.subr.bf16.mxu1 %v5717_v28  ;;  %3596 = vmatprep.subr.bf16.mxu0 %v5719_v29  ;;  %v2690_v26 = vld [vmem:[%s6973_s20 + $0x278] sm:$0xff]  ;;  %v5676_v28 = vcombine.low %v2693_v39, %v2697_v18  ;;  %v5678_v29 = vcombine.low %v2694_v19, %v2698_v23  ;;  %v6273_v39 = vld [vmem:[%s7022_s11 + $0x120] ss:$8 sps:$4 sm:$0xff]  }
 0x7db   : > { %v5671_v34 = vcombine.high %v2686_v49, %v2690_v26  ;;  %v6278_v18 = vld [vmem:[%s7022_s11 + $0x14] ss:$8 sps:$4 sm:$0xff]   ;;  %v6276_v23 = vld [vmem:[%s7022_s11 + $0x10] ss:$8 sps:$4 sm:$0xff]  }
 0x7dc   : > { %v6281_v19 = vld [vmem:[%s7022_s11 + $0x114] ss:$8 sps:$4 sm:$0xff]  }
 0x7dd   : > { %3544 = vmatpush2.bf16.msra.mxu1 %v5716_v41  ;;  %3597 = vmatpush2.bf16.msra.mxu0 %v5718_v60  ;;  %v2678_v41 = vld [vmem:[%s6973_s20 + $0x218] sm:$0xff] }
 0x7de   : > { %3545 = vmatprep.subr.bf16.mxu1 %v5709_v42  ;;  %3598 = vmatprep.subr.bf16.mxu0 %v5711_v0  ;;  %v2682_v60 = vld [vmem:[%s6973_s20 + $0x238] sm:$0xff]  ;;  %v5668_v42 = vcombine.low %v2685_v44, %v2689_v22  ;;  %v5670_v0 = vcombine.low %v2686_v49, %v2690_v26  ;;  %v6285_v44 = vld [vmem:[%s7022_s11 + $0x100] ss:$8 sps:$4 sm:$0xff]   ;;  %s8257_s20 = sld [smem:[#allocation28_spill]] (!%p5848_p5) }
 0x7df   : > { %v5663_v20 = vcombine.high %v2678_v41, %v2682_v60  ;;  %v5662_v11 = vcombine.low %v2678_v41, %v2682_v60  ;;  %v6290_v22 = vld [vmem:[%s7022_s11 + $0xf4] ss:$8 sps:$4 sm:$0xff]   ;;  %v6288_v26 = vld [vmem:[%s7022_s11 + $0xf0] ss:$8 sps:$4 sm:$0xff]  }
 0x7e0   : > { %v6293_v49 = vld [vmem:[%s7022_s11 + $0x1f4] ss:$8 sps:$4 sm:$0xff]   ;;  %v6300_v60 = vld [vmem:[%s7022_s11 + $0xd0] ss:$8 sps:$4 sm:$0xff]  }
 0x7e1   : > { %3546 = vmatpush2.bf16.msra.mxu1 %v5708_v55  ;;  %3599 = vmatpush2.bf16.msra.mxu0 %v5710_v56  ;;  %v6242_v55 = vld [vmem:[%s7022_s11 + $0x74] ss:$8 sps:$4 sm:$0xff]  }
 0x7e2   : > { %3547 = vmatprep.subr.bf16.mxu1 %v5701_v38  ;;  %3600 = vmatprep.subr.bf16.mxu0 %v5703_v27  ;;  %v6245_v56 = vld [vmem:[%s7022_s11 + $0x174] ss:$8 sps:$4 sm:$0xff]   ;;  %v6240_v38 = vld [vmem:[%s7022_s11 + $0x70] ss:$8 sps:$4 sm:$0xff]  }
 0x7e3   : > { %v6243_v27 = vld [vmem:[%s7022_s11 + $0x170] ss:$8 sps:$4 sm:$0xff]   ;;  %v6305_v41 = vld [vmem:[%s7022_s11 + $0x1d4] ss:$8 sps:$4 sm:$0xff]  }
 0x7e5   : > { %3548 = vmatpush2.bf16.msra.mxu1 %v5700_v37  ;;  %3601 = vmatpush2.bf16.msra.mxu0 %v5702_v35  ;;  %v6254_v37 = vld [vmem:[%s7022_s11 + $0x54] ss:$8 sps:$4 sm:$0xff]  }
 0x7e6   : > { %3549 = vmatprep.subr.bf16.mxu1 %v5693_v5  ;;  %3602 = vmatprep.subr.bf16.mxu0 %v5695_v32  ;;  %v6257_v35 = vld [vmem:[%s7022_s11 + $0x154] ss:$8 sps:$4 sm:$0xff]   ;;  %v6255_v5 = vld [vmem:[%s7022_s11 + $0x150] ss:$8 sps:$4 sm:$0xff]   ;;  %v6263_v32 = vld [vmem:[%s7022_s11 + $0x144] ss:$8 sps:$4 sm:$0xff]  }
 0x7e9   : > { %3550 = vmatpush2.bf16.msra.mxu1 %v5692_v13  ;;  %3603 = vmatpush2.bf16.msra.mxu0 %v5694_v14  ;;  %v6264_v13 = vld [vmem:[%s7022_s11 + $0x30] ss:$8 sps:$4 sm:$0xff]  }
 0x7ea   : > { %3551 = vmatprep.subr.bf16.mxu1 %v5685_v16  ;;  %3604 = vmatprep.subr.bf16.mxu0 %v5687_v17  ;;  %v6267_v14 = vld [vmem:[%s7022_s11 + $0x130] ss:$8 sps:$4 sm:$0xff]   ;;  %v6275_v16 = vld [vmem:[%s7022_s11 + $0x124] ss:$8 sps:$4 sm:$0xff]   ;;  %v6270_v17 = vld [vmem:[%s7022_s11 + $0x20] ss:$8 sps:$4 sm:$0xff]  }
 0x7ed   : > { %3552 = vmatpush2.bf16.msra.mxu1 %v5684_v6  ;;  %3605 = vmatpush2.bf16.msra.mxu0 %v5686_v24  ;;  %v6279_v6 = vld [vmem:[%s7022_s11 + $0x110] ss:$8 sps:$4 sm:$0xff]   ;;  %v6284_v24 = vld [vmem:[%s7022_s11 + $0x4] ss:$8 sps:$4 sm:$0xff]  }
 0x7ee   : > { %3553 = vmatprep.subr.bf16.mxu1 %v5677_v25  ;;  %3606 = vmatprep.subr.bf16.mxu0 %v5679_v46  ;;  %v6287_v25 = vld [vmem:[%s7022_s11 + $0x104] ss:$8 sps:$4 sm:$0xff]   ;;  %v6282_v46 = vld [vmem:[%s7022_s11] ss:$8 sps:$4 sm:$0xff]  }
 0x7f1   : > { %3554 = vmatpush2.bf16.msra.mxu1 %v5676_v28  ;;  %3607 = vmatpush2.bf16.msra.mxu0 %v5678_v29  ;;  %v6291_v28 = vld [vmem:[%s7022_s11 + $0x1f0] ss:$8 sps:$4 sm:$0xff]   ;;  %v6296_v29 = vld [vmem:[%s7022_s11 + $0xe4] ss:$8 sps:$4 sm:$0xff]  }
 0x7f2   : > { %3555 = vmatprep.subr.bf16.mxu1 %v5669_v33  ;;  %3608 = vmatprep.subr.bf16.mxu0 %v5671_v34  ;;  %v6299_v33 = vld [vmem:[%s7022_s11 + $0x1e4] ss:$8 sps:$4 sm:$0xff]   ;;  %v6294_v34 = vld [vmem:[%s7022_s11 + $0xe0] ss:$8 sps:$4 sm:$0xff]  }
 0x7f5   : > { %3556 = vmatpush2.bf16.msra.mxu1 %v5668_v42  ;;  %3609 = vmatpush2.bf16.msra.mxu0 %v5670_v0  ;;  %v6303_v42 = vld [vmem:[%s7022_s11 + $0x1d0] ss:$8 sps:$4 sm:$0xff]   ;;  %v6308_v0 = vld [vmem:[%s7022_s11 + $0xc4] ss:$8 sps:$4 sm:$0xff]  }
 0x7f6   : > { %3557 = vmatprep.subr.bf16.mxu1 %v5661_v54  ;;  %3610 = vmatprep.subr.bf16.mxu0 %v5663_v20  ;;  %v6311_v54 = vld [vmem:[%s7022_s11 + $0x1c4] ss:$8 sps:$4 sm:$0xff]   ;;  %v6306_v20 = vld [vmem:[%s7022_s11 + $0xc0] ss:$8 sps:$4 sm:$0xff]  }
 0x7f9   : > { %3558 = vmatpush2.bf16.msra.mxu1 %v5660_v51  ;;  %3611 = vmatpush2.bf16.msra.mxu0 %v5662_v11  ;;  %v6309_v51 = vld [vmem:[%s7022_s11 + $0x1c0] ss:$8 sps:$4 sm:$0xff]   ;;  %v6314_v11 = vld [vmem:[%s7022_s11 + $0xb4] ss:$8 sps:$4 sm:$0xff]  }
 0x7fa   : > { %4717 = vmatprep.subr.bf16.mxu1 %v6242_v55  ;;  %4770 = vmatprep.subr.bf16.mxu0 %v6245_v56  ;;  %v6317_v55 = vld [vmem:[%s7022_s11 + $0x1b4] ss:$8 sps:$4 sm:$0xff]   ;;  %v6312_v56 = vld [vmem:[%s7022_s11 + $0xb0] ss:$8 sps:$4 sm:$0xff]  }
 0x7fc   : > { %3560 = vmatmul.mubr.bf16.vlgmr.msra.gmra.mxu1 %v7537_v7  ;;  %3613 = vmatmul.mubr.bf16.vlgmr.msra.gmra.mxu0 %v7537_v7  ;;  %v6252_v7 = vld [vmem:[%s7022_s11 + $0x50] ss:$8 sps:$4 sm:$0xff]  }
 0x7fd   : > { %3569 = vmatprep.mubr.bf16.mxu1 %v7581_v59  ;;  %3622 = vmatprep.mubr.bf16.mxu0 %v7581_v59  ;;  %v6260_v59 = vld [vmem:[%s7022_s11 + $0x44] ss:$8 sps:$4 sm:$0xff]  }
 0x7fe   : > { %4718 = vmatpush1.bf16.msra.mxu1 %v6240_v38  ;;  %4771 = vmatpush1.bf16.msra.mxu0 %v6243_v27  ;;  %v6315_v38 = vld [vmem:[%s7022_s11 + $0x1b0] ss:$8 sps:$4 sm:$0xff]   ;;  %v6320_v27 = vld [vmem:[%s7022_s11 + $0xa4] ss:$8 sps:$4 sm:$0xff]  }
 0x7ff   : > { %4719 = vmatprep.subr.bf16.mxu1 %v6248_v43  ;;  %4772 = vmatprep.subr.bf16.mxu0 %v6251_v61  ;;  %v6323_v43 = vld [vmem:[%s7022_s11 + $0x1a4] ss:$8 sps:$4 sm:$0xff]   ;;  %v6318_v61 = vld [vmem:[%s7022_s11 + $0xa0] ss:$8 sps:$4 sm:$0xff]  }
 0x802   : > { %4720 = vmatpush1.bf16.msra.mxu1 %v6246_v63  ;;  %4773 = vmatpush1.bf16.msra.mxu0 %v6249_v45  ;;  %v6321_v63 = vld [vmem:[%s7022_s11 + $0x1a0] ss:$8 sps:$4 sm:$0xff]   ;;  %v6326_v45 = vld [vmem:[%s7022_s11 + $0x94] ss:$8 sps:$4 sm:$0xff]  }
 0x803   : > { %4721 = vmatprep.subr.bf16.mxu1 %v6254_v37  ;;  %4774 = vmatprep.subr.bf16.mxu0 %v6257_v35  ;;  %v6329_v37 = vld [vmem:[%s7022_s11 + $0x194] ss:$8 sps:$4 sm:$0xff]   ;;  %v6324_v35 = vld [vmem:[%s7022_s11 + $0x90] ss:$8 sps:$4 sm:$0xff]  }
 0x804   : > { %3570 = vmatmul.mubr.bf16.gmra.mxu1 %v7585_v3  ;;  %3623 = vmatmul.mubr.bf16.gmra.mxu0 %v7585_v3  ;;  %v6272_v3 = vld [vmem:[%s7022_s11 + $0x24] ss:$8 sps:$4 sm:$0xff]  }
 0x806   : > { %4722 = vmatpush1.bf16.msra.mxu1 %v6252_v7  ;;  %4775 = vmatpush1.bf16.msra.mxu0 %v6255_v5  ;;  %v6327_v7 = vld [vmem:[%s7022_s11 + $0x190] ss:$8 sps:$4 sm:$0xff]   ;;  %v6332_v5 = vld [vmem:[%s7022_s11 + $0x84] ss:$8 sps:$4 sm:$0xff]  }
 0x807   : > { %4723 = vmatprep.subr.bf16.mxu1 %v6260_v59  ;;  %4776 = vmatprep.subr.bf16.mxu0 %v6263_v32  ;;  %v6335_v59 = vld [vmem:[%s7022_s11 + $0x184] ss:$8 sps:$4 sm:$0xff]   ;;  %v6330_v32 = vld [vmem:[%s7022_s11 + $0x80] ss:$8 sps:$4 sm:$0xff]  }
 0x80a   : > { %4724 = vmatpush1.bf16.msra.mxu1 %v6258_v9  ;;  %4777 = vmatpush1.bf16.msra.mxu0 %v6261_v50  ;;  %v6333_v9 = vld [vmem:[%s7022_s11 + $0x180] ss:$8 sps:$4 sm:$0xff]   ;;  %v6338_v50 = vld [vmem:[%s7022_s11 + $0x274] ss:$8 sps:$4 sm:$0xff]  }
 0x80b   : > { %4725 = vmatprep.subr.bf16.mxu1 %v6266_v4  ;;  %4778 = vmatprep.subr.bf16.mxu0 %v6269_v12  ;;  %v6341_v4 = vld [vmem:[%s7022_s11 + $0x374] ss:$8 sps:$4 sm:$0xff]   ;;  %v7706_v12 = vld [vmem:[%s7012_s6] sm:$0xff] }
 0x80e   : > { %4726 = vmatpush1.bf16.msra.mxu1 %v6264_v13  ;;  %4779 = vmatpush1.bf16.msra.mxu0 %v6267_v14  ;;  %v7710_v13 = vrot.slane %v7706_v12, %v7166_v58  ;;  %v7715_v14 = vrot.slane %v7706_v12, %v1099_v53 }
 0x80f   : > { %4727 = vmatprep.subr.bf16.mxu1 %v6272_v3  ;;  %4780 = vmatprep.subr.bf16.mxu0 %v6275_v16  ;;  %v7719_v3 = vrot.slane %v7706_v12, %v7175_v8  ;;  %v7724_v16 = vrot.slane %v7706_v12, %v1103_v62 }
 0x812   : > { %4728 = vmatpush1.bf16.msra.mxu1 %v6270_v17  ;;  %4781 = vmatpush1.bf16.msra.mxu0 %v6273_v39 }
 0x813   : > { %4729 = vmatprep.subr.bf16.mxu1 %v6278_v18  ;;  %4782 = vmatprep.subr.bf16.mxu0 %v6281_v19 }
 0x816   : > { %4730 = vmatpush1.bf16.msra.mxu1 %v6276_v23  ;;  %4783 = vmatpush1.bf16.msra.mxu0 %v6279_v6 }
 0x817   : > { %4731 = vmatprep.subr.bf16.mxu1 %v6284_v24  ;;  %4784 = vmatprep.subr.bf16.mxu0 %v6287_v25 }
 0x81a   : > { %4732 = vmatpush1.bf16.msra.mxu1 %v6282_v46  ;;  %4785 = vmatpush1.bf16.msra.mxu0 %v6285_v44 }
 0x81b   : > { %4733 = vmatprep.subr.bf16.mxu1 %v6290_v22  ;;  %4786 = vmatprep.subr.bf16.mxu0 %v6293_v49 }
 0x81e   : > { %4734 = vmatpush2.bf16.msra.mxu1 %v6288_v26  ;;  %4787 = vmatpush2.bf16.msra.mxu0 %v6291_v28 }
 0x81f   : > { %4735 = vmatprep.subr.bf16.mxu1 %v6296_v29  ;;  %4788 = vmatprep.subr.bf16.mxu0 %v6299_v33 }
 0x822   : > { %4736 = vmatpush2.bf16.msra.mxu1 %v6294_v34  ;;  %4789 = vmatpush2.bf16.msra.mxu0 %v6297_v30 }
 0x823   : > { %4737 = vmatprep.subr.bf16.mxu1 %v6302_v40  ;;  %4790 = vmatprep.subr.bf16.mxu0 %v6305_v41 }
 0x826   : > { %4738 = vmatpush2.bf16.msra.mxu1 %v6300_v60  ;;  %4791 = vmatpush2.bf16.msra.mxu0 %v6303_v42 }
 0x827   : > { %4739 = vmatprep.subr.bf16.mxu1 %v6308_v0  ;;  %4792 = vmatprep.subr.bf16.mxu0 %v6311_v54 }
 0x82a   : > { %4740 = vmatpush2.bf16.msra.mxu1 %v6306_v20  ;;  %4793 = vmatpush2.bf16.msra.mxu0 %v6309_v51 }
 0x82b   : > { %4741 = vmatprep.subr.bf16.mxu1 %v6314_v11  ;;  %4794 = vmatprep.subr.bf16.mxu0 %v6317_v55 }
 0x82e   : > { %4742 = vmatpush2.bf16.msra.mxu1 %v6312_v56  ;;  %4795 = vmatpush2.bf16.msra.mxu0 %v6315_v38 }
 0x82f   : > { %4743 = vmatprep.subr.bf16.mxu1 %v6320_v27  ;;  %4796 = vmatprep.subr.bf16.mxu0 %v6323_v43 }
 0x832   : > { %4744 = vmatpush2.bf16.msra.mxu1 %v6318_v61  ;;  %4797 = vmatpush2.bf16.msra.mxu0 %v6321_v63 }
 0x833   : > { %4745 = vmatprep.subr.bf16.mxu1 %v6326_v45  ;;  %4798 = vmatprep.subr.bf16.mxu0 %v6329_v37 }
 0x836   : > { %4746 = vmatpush2.bf16.msra.mxu1 %v6324_v35  ;;  %4799 = vmatpush2.bf16.msra.mxu0 %v6327_v7 }
 0x837   : > { %4747 = vmatprep.subr.bf16.mxu1 %v6332_v5  ;;  %4800 = vmatprep.subr.bf16.mxu0 %v6335_v59 }
 0x83a   : > { %4748 = vmatpush2.bf16.msra.mxu1 %v6330_v32  ;;  %4801 = vmatpush2.bf16.msra.mxu0 %v6333_v9 }
 0x83b   : > { %4823 = vmatprep.subr.bf16.mxu1 %v6338_v50  ;;  %4876 = vmatprep.subr.bf16.mxu0 %v6341_v4 }
 0x87c   : > { %v3455_v17 = vpop.f32.mrf.mxu1  ;;  %v3508_v39 = vpop.f32.mrf.mxu0 }
 0x87d   : > { %v7727_v18 = vadd.f32 %v3455_v17, %v7710_v13  ;;  %v7730_v19 = vadd.f32 %v3508_v39, %v7715_v14 }
 0x87e   : > { %v3457_v23 = vpop.f32.mrf.mxu1  ;;  %v3510_v53 = vpop.f32.mrf.mxu0 }
 0x87f   : > { %v3633_v6 = vmul.f32 %v7727_v18, %v7727_v18  ;;  %v3635_v24 = vmul.f32 %v7730_v19, %v7730_v19  ;;  %v7737_v25 = vadd.f32 %v3457_v23, %v7719_v3  ;;  %v7740_v62 = vadd.f32 %v3510_v53, %v7724_v16 }
 0x880   : > { %v3459_v46 = vpop.f32.mrf.mxu1  ;;  %v3512_v44 = vpop.f32.mrf.mxu0 }
 0x881   : > { %v3665_v22 = vmul.f32 %v3633_v6, %v7727_v18  ;;  %v3667_v49 = vmul.f32 %v3635_v24, %v7730_v19  ;;  %v3634_v26 = vmul.f32 %v7737_v25, %v7737_v25  ;;  %v3636_v28 = vmul.f32 %v7740_v62, %v7740_v62 }
 0x882   : > { %v7749_v29 = vadd.f32 %v3459_v46, %v7710_v13  ;;  %v7752_v33 = vadd.f32 %v3512_v44, %v7715_v14  ;;  %v3461_v34 = vpop.f32.mrf.mxu1  ;;  %v3514_v30 = vpop.f32.mrf.mxu0 }
 0x883   : > { %v3697_v40 = vmul.f32 0.044715, %v3665_v22  ;;  %v3699_v41 = vmul.f32 0.044715, %v3667_v49  ;;  %v3666_v60 = vmul.f32 %v3634_v26, %v7737_v25  ;;  %v3668_v42 = vmul.f32 %v3636_v28, %v7740_v62 }
 0x884   : > { %v3641_v0 = vmul.f32 %v7749_v29, %v7749_v29  ;;  %v3643_v54 = vmul.f32 %v7752_v33, %v7752_v33  ;;  %v7761_v20 = vadd.f32 %v3461_v34, %v7719_v3  ;;  %v7764_v51 = vadd.f32 %v3514_v30, %v7724_v16 }
 0x885   : > { %v3729_v11 = vadd.f32 %v3697_v40, %v7727_v18  ;;  %v3731_v55 = vadd.f32 %v3699_v41, %v7730_v19  ;;  %v3698_v56 = vmul.f32 0.044715, %v3666_v60  ;;  %v3700_v38 = vmul.f32 0.044715, %v3668_v42 }
 0x886   : > { %v3673_v27 = vmul.f32 %v3641_v0, %v7749_v29  ;;  %v3675_v43 = vmul.f32 %v3643_v54, %v7752_v33  ;;  %v3642_v61 = vmul.f32 %v7761_v20, %v7761_v20  ;;  %v3644_v63 = vmul.f32 %v7764_v51, %v7764_v51 }
 0x887   : > { %v3761_v45 = vmul.f32 0.7978846, %v3729_v11  ;;  %v3763_v37 = vmul.f32 0.7978846, %v3731_v55  ;;  %v3730_v35 = vadd.f32 %v3698_v56, %v7737_v25  ;;  %v3732_v7 = vadd.f32 %v3700_v38, %v7740_v62 }
 0x888   : > { %v3705_v5 = vmul.f32 0.044715, %v3673_v27  ;;  %v3707_v59 = vmul.f32 0.044715, %v3675_v43  ;;  %v3674_v32 = vmul.f32 %v3642_v61, %v7761_v20  ;;  %v3676_v9 = vmul.f32 %v3644_v63, %v7764_v51 }
 0x889   : > { %v3762_v50 = vmul.f32 0.7978846, %v3730_v35  ;;  %v3764_v4 = vmul.f32 0.7978846, %v3732_v7  ;;  %6472 = vtanh.f32 %v3761_v45 }
 0x88a   : > { %v3737_v17 = vadd.f32 %v3705_v5, %v7749_v29  ;;  %v3739_v39 = vadd.f32 %v3707_v59, %v7752_v33  ;;  %v3706_v23 = vmul.f32 0.044715, %v3674_v32  ;;  %6474 = vtanh.f32 %v3763_v37 }
 0x88b   : > { %v3708_v53 = vmul.f32 0.044715, %v3676_v9  ;;  %6476 = vtanh.f32 %v3762_v50 }
 0x88c   : > { %v3769_v6 = vmul.f32 0.7978846, %v3737_v17  ;;  %v3771_v24 = vmul.f32 0.7978846, %v3739_v39  ;;  %v3738_v46 = vadd.f32 %v3706_v23, %v7761_v20  ;;  %v3465_v44 = vpop.f32.mrf.mxu1  ;;  %v3518_v22 = vpop.f32.mrf.mxu0  ;;  %6478 = vtanh.f32 %v3764_v4 }
 0x88d   : > { %v3740_v49 = vadd.f32 %v3708_v53, %v7764_v51  ;;  %v7783_v26 = vadd.f32 %v3465_v44, %v7710_v13  ;;  %v7786_v28 = vadd.f32 %v3518_v22, %v7715_v14 }
 0x88e   : > { %6480 = vtanh.f32 %v3769_v6  ;;  %v3770_v34 = vmul.f32 0.7978846, %v3738_v46  ;;  %v3467_v30 = vpop.f32.mrf.mxu1  ;;  %v3520_v40 = vpop.f32.mrf.mxu0 }
 0x88f   : > { %6482 = vtanh.f32 %v3771_v24  ;;  %v3772_v41 = vmul.f32 0.7978846, %v3740_v49  ;;  %v3649_v60 = vmul.f32 %v7783_v26, %v7783_v26  ;;  %v3651_v42 = vmul.f32 %v7786_v28, %v7786_v28 }
 0x890   : > { %6484 = vtanh.f32 %v3770_v34  ;;  %v7793_v0 = vadd.f32 %v3467_v30, %v7719_v3  ;;  %v7796_v54 = vadd.f32 %v3520_v40, %v7724_v16  ;;  %v3469_v11 = vpop.f32.mrf.mxu1  ;;  %v3522_v55 = vpop.f32.mrf.mxu0 }
 0x891   : > { %6486 = vtanh.f32 %v3772_v41  ;;  %v3681_v56 = vmul.f32 %v3649_v60, %v7783_v26  ;;  %v3683_v38 = vmul.f32 %v3651_v42, %v7786_v28  ;;  %v7801_v27 = vadd.f32 %v3469_v11, %v7710_v13 }
 0x892   : > { %v3650_v43 = vmul.f32 %v7793_v0, %v7793_v0  ;;  %v3652_v61 = vmul.f32 %v7796_v54, %v7796_v54  ;;  %v7808_v63 = vadd.f32 %v3522_v55, %v7715_v14  ;;  %v3471_v45 = vpop.f32.mrf.mxu1  ;;  %v3524_v37 = vpop.f32.mrf.mxu0 }
 0x893   : > { %v3713_v35 = vmul.f32 0.044715, %v3681_v56  ;;  %v3715_v7 = vmul.f32 0.044715, %v3683_v38  ;;  %v3657_v5 = vmul.f32 %v7801_v27, %v7801_v27  ;;  %v7813_v59 = vadd.f32 %v3471_v45, %v7719_v3 }
 0x894   : > { %v3682_v13 = vmul.f32 %v3650_v43, %v7793_v0  ;;  %v3684_v32 = vmul.f32 %v3652_v61, %v7796_v54  ;;  %v3659_v9 = vmul.f32 %v7808_v63, %v7808_v63  ;;  %v7820_v14 = vadd.f32 %v3524_v37, %v7724_v16 }
 0x895   : > { %v3745_v50 = vadd.f32 %v3713_v35, %v7783_v26  ;;  %v3747_v4 = vadd.f32 %v3715_v7, %v7786_v28  ;;  %v3689_v17 = vmul.f32 %v3657_v5, %v7801_v27  ;;  %v3658_v3 = vmul.f32 %v7813_v59, %v7813_v59 }
 0x896   : > { %v3714_v39 = vmul.f32 0.044715, %v3682_v13  ;;  %v3716_v23 = vmul.f32 0.044715, %v3684_v32  ;;  %v3691_v53 = vmul.f32 %v3659_v9, %v7808_v63  ;;  %v6473_v6 = vpop.eup %6472  ;;  %v3660_v30 = vmul.f32 %v7820_v14, %v7820_v14 }
 0x897   : > { %v3777_v24 = vmul.f32 0.7978846, %v3745_v50  ;;  %v3779_v46 = vmul.f32 0.7978846, %v3747_v4  ;;  %v3690_v44 = vmul.f32 %v3658_v3, %v7813_v59  ;;  %v6475_v16 = vpop.eup %6474  ;;  %v3721_v34 = vmul.f32 0.044715, %v3689_v17 }
 0x898   : > { %v3746_v22 = vadd.f32 %v3714_v39, %v7793_v0  ;;  %v3748_v49 = vadd.f32 %v3716_v23, %v7796_v54  ;;  %v6477_v40 = vpop.eup %6476  ;;  %v3723_v41 = vmul.f32 0.044715, %v3691_v53  ;;  %v3825_v11 = vadd.f32 1.0, %v6473_v6 }
 0x899   : > { %v3722_v60 = vmul.f32 0.044715, %v3690_v44  ;;  %v6479_v42 = vpop.eup %6478  ;;  %6488 = vtanh.f32 %v3777_v24  ;;  %v3753_v43 = vadd.f32 %v3721_v34, %v7801_v27  ;;  %v3827_v35 = vadd.f32 1.0, %v6475_v16 }
 0x89a   : > { %v3778_v55 = vmul.f32 0.7978846, %v3746_v22  ;;  %v3780_v56 = vmul.f32 0.7978846, %v3748_v49  ;;  %6490 = vtanh.f32 %v3779_v46  ;;  %v3755_v61 = vadd.f32 %v3723_v41, %v7808_v63 }
 0x89b   : > { %v6481_v38 = vpop.eup %6480  ;;  %v3754_v45 = vadd.f32 %v3722_v60, %v7813_v59  ;;  %v3692_v5 = vmul.f32 %v3660_v30, %v7820_v14  ;;  %v3785_v9 = vmul.f32 0.7978846, %v3753_v43  ;;  %v3826_v23 = vadd.f32 1.0, %v6477_v40 }
 0x89c   : > { %v6483_v37 = vpop.eup %6482  ;;  %v3833_v7 = vadd.f32 1.0, %v6481_v38  ;;  %6492 = vtanh.f32 %v3778_v55  ;;  %v3787_v50 = vmul.f32 0.7978846, %v3755_v61  ;;  %v3857_v53 = vmul.f32 0.5, %v3825_v11 }
 0x89d   : > { %v6485_v13 = vpop.eup %6484  ;;  %v3835_v32 = vadd.f32 1.0, %v6483_v37  ;;  %6494 = vtanh.f32 %v3780_v56  ;;  %v3786_v3 = vmul.f32 0.7978846, %v3754_v45  ;;  %v3724_v39 = vmul.f32 0.044715, %v3692_v5 }
 0x89e   : > { %v6487_v4 = vpop.eup %6486  ;;  %v3865_v17 = vmul.f32 0.5, %v3833_v7  ;;  %6496 = vtanh.f32 %v3785_v9  ;;  %v3834_v6 = vadd.f32 1.0, %v6485_v13  ;;  %v3828_v24 = vadd.f32 1.0, %v6479_v42  ;;  %v6344_v37 = vld [vmem:[%s7022_s11 + $0x264] ss:$8 sps:$4 sm:$0xff]  }
 0x89f   : > { %v3867_v46 = vmul.f32 0.5, %v3835_v32  ;;  %6498 = vtanh.f32 %v3787_v50  ;;  %v3756_v44 = vadd.f32 %v3724_v39, %v7820_v14  ;;  %v3858_v16 = vmul.f32 0.5, %v3826_v23  ;;  %v6347_v5 = vld [vmem:[%s7022_s11 + $0x364] ss:$8 sps:$4 sm:$0xff]   ;;  %v6345_v32 = vld [vmem:[%s7022_s11 + $0x360] ss:$8 sps:$4 sm:$0xff]  }
 0x8a0   : > { %6500 = vtanh.f32 %v3786_v3  ;;  %v3866_v22 = vmul.f32 0.5, %v3834_v6  ;;  %v3836_v49 = vadd.f32 1.0, %v6487_v4  ;;  %v3859_v34 = vmul.f32 0.5, %v3827_v35  ;;  %v6339_v35 = vld [vmem:[%s7022_s11 + $0x370] ss:$8 sps:$4 sm:$0xff]  }
 0x8a1   : > { %v3897_v30 = vmul.f32 %v3865_v17, %v7749_v29  ;;  %v3788_v41 = vmul.f32 0.7978846, %v3756_v44  ;;  %v3860_v60 = vmul.f32 0.5, %v3828_v24  ;;  %v3890_v40 = vmul.f32 %v3858_v16, %v7737_v25  ;;  %v6336_v29 = vld [vmem:[%s7022_s11 + $0x270] ss:$8 sps:$4 sm:$0xff]  }
 0x8a2   : > { %v3898_v42 = vmul.f32 %v3866_v22, %v7761_v20  ;;  %v3868_v11 = vmul.f32 0.5, %v3836_v49  ;;  %v3889_v55 = vmul.f32 %v3857_v53, %v7727_v18  ;;  %v3899_v56 = vmul.f32 %v3867_v46, %v7752_v33  ;;  %v6353_v4 = vld [vmem:[%s7022_s11 + $0x354] ss:$8 sps:$4 sm:$0xff]   ;;  %v6348_v39 = vld [vmem:[%s7022_s11 + $0x250] ss:$8 sps:$4 sm:$0xff]  }
 0x8a3   : > { %6502 = vtanh.f32 %v3788_v41  ;;  %v3892_v43 = vmul.f32 %v3860_v60, %v7740_v62  ;;  %v3891_v45 = vmul.f32 %v3859_v34, %v7730_v19  ;;  %v6350_v19 = vld [vmem:[%s7022_s11 + $0x254] ss:$8 sps:$4 sm:$0xff]   ;;  %v6356_v6 = vld [vmem:[%s7022_s11 + $0x244] ss:$8 sps:$4 sm:$0xff]   ;;  %v6351_v44 = vld [vmem:[%s7022_s11 + $0x350] ss:$8 sps:$4 sm:$0xff]  }
 0x8a4   : > { %v3922_v38 = vpack.c.bf16 %v3898_v42, %v3890_v40  ;;  %v3900_v61 = vmul.f32 %v3868_v11, %v7764_v51  ;;  %v3921_v25 = vpack.c.bf16 %v3897_v30, %v3889_v55  ;;  %v6342_v51 = vld [vmem:[%s7022_s11 + $0x260] ss:$8 sps:$4 sm:$0xff]   ;;  %v6359_v30 = vld [vmem:[%s7022_s11 + $0x344] ss:$8 sps:$4 sm:$0xff]  }
 0x8a5   : > { %v3923_v7 = vpack.c.bf16 %v3899_v56, %v3891_v45  ;;  %v6354_v40 = vld [vmem:[%s7022_s11 + $0x240] ss:$8 sps:$4 sm:$0xff]  }
 0x8a6   : > { %v6489_v20 = vpop.eup %6488  ;;  %4749 = vmatprep.mubr.bf16.mxu1 %v3922_v38  ;;  %v3924_v18 = vpack.c.bf16 %v3900_v61, %v3892_v43  ;;  %v6362_v38 = vld [vmem:[%s7022_s11 + $0x234] ss:$8 sps:$4 sm:$0xff]   ;;  %v6357_v61 = vld [vmem:[%s7022_s11 + $0x340] ss:$8 sps:$4 sm:$0xff]  }
 0x8a7   : > { %v6491_v33 = vpop.eup %6490  ;;  %4750 = vmatmul.mubr.bf16.vlgmr.msra.gmra.mxu1 %v3921_v25  ;;  %v3841_v17 = vadd.f32 1.0, %v6489_v20  ;;  %v6365_v20 = vld [vmem:[%s7022_s11 + $0x334] ss:$8 sps:$4 sm:$0xff]  }
 0x8a8   : > { %4802 = vmatprep.mubr.bf16.mxu0 %v3924_v18  ;;  %4824 = vmatpush1.bf16.msra.mxu1 %v6336_v29  ;;  %v3843_v34 = vadd.f32 1.0, %v6491_v33  ;;  %v6360_v33 = vld [vmem:[%s7022_s11 + $0x230] ss:$8 sps:$4 sm:$0xff]  }
 0x8a9   : > { %v6493_v62 = vpop.eup %6492  ;;  %4803 = vmatmul.mubr.bf16.vlgmr.msra.gmra.mxu0 %v3923_v7  ;;  %4825 = vmatprep.subr.bf16.mxu1 %v6344_v37  ;;  %v3873_v41 = vmul.f32 0.5, %v3841_v17 }
 0x8aa   : > { %v6495_v13 = vpop.eup %6494  ;;  %4877 = vmatpush1.bf16.msra.mxu0 %v6339_v35  ;;  %v3842_v9 = vadd.f32 1.0, %v6493_v62  ;;  %v3875_v25 = vmul.f32 0.5, %v3843_v34  ;;  %v6368_v62 = vld [vmem:[%s7022_s11 + $0x224] ss:$8 sps:$4 sm:$0xff]  }
 0x8ab   : > { %v6497_v50 = vpop.eup %6496  ;;  %4878 = vmatprep.subr.bf16.mxu0 %v6347_v5  ;;  %v3844_v24 = vadd.f32 1.0, %v6495_v13  ;;  %v3905_v18 = vmul.f32 %v3873_v41, %v7783_v26 }
 0x8ac   : > { %v6499_v3 = vpop.eup %6498  ;;  %4826 = vmatpush1.bf16.msra.mxu1 %v6342_v51  ;;  %v3849_v23 = vadd.f32 1.0, %v6497_v50  ;;  %v3874_v22 = vmul.f32 0.5, %v3842_v9  ;;  %v3907_v26 = vmul.f32 %v3875_v25, %v7786_v28  ;;  %v2771_v51 = vsub.s32 7, %v7156_v52  ;;  %v6374_v28 = vld [vmem:[%s7022_s11 + $0x214] ss:$8 sps:$4 sm:$0xff]  }
 0x8ad   : > { %v6501_v53 = vpop.eup %6500  ;;  %4827 = vmatprep.subr.bf16.mxu1 %v6350_v19  ;;  %v3851_v46 = vadd.f32 1.0, %v6499_v3  ;;  %v3876_v56 = vmul.f32 0.5, %v3844_v24  ;;  %v7889_v50 = vrot.slane %v7706_v12, %v1111_v21 }
 0x8ae   : > { %4879 = vmatpush1.bf16.msra.mxu0 %v6345_v32  ;;  %v3850_v16 = vadd.f32 1.0, %v6501_v53  ;;  %v3881_v49 = vmul.f32 0.5, %v3849_v23  ;;  %v3906_v29 = vmul.f32 %v3874_v22, %v7793_v0  ;;  %v6371_v32 = vld [vmem:[%s7022_s11 + $0x324] ss:$8 sps:$4 sm:$0xff]   ;;  %v6375_v22 = vld [vmem:[%s7022_s11 + $0x310] ss:$8 sps:$4 sm:$0xff]  }
 0x8af   : > { %4880 = vmatprep.subr.bf16.mxu0 %v6353_v4  ;;  %v3883_v11 = vmul.f32 0.5, %v3851_v46  ;;  %v3908_v0 = vmul.f32 %v3876_v56, %v7796_v54  ;;  %v6366_v54 = vld [vmem:[%s7022_s11 + $0x220] ss:$8 sps:$4 sm:$0xff]   ;;  %v7892_v4 = vrot.slane %v7706_v12, %v2771_v51  ;;  %v6389_v51 = vld [vmem:[%s7022_s11 + $0x3f4] ss:$8 sps:$4 sm:$0xff]  }
 0x8b0   : > { %v6503_v60 = vpop.eup %6502  ;;  %4828 = vmatpush1.bf16.msra.mxu1 %v6348_v39  ;;  %v3882_v42 = vmul.f32 0.5, %v3850_v16  ;;  %v3913_v43 = vmul.f32 %v3881_v49, %v7801_v27  ;;  %v2767_v27 = vsub.s32 6, %v7156_v52  ;;  %v6377_v52 = vld [vmem:[%s7022_s11 + $0x314] ss:$8 sps:$4 sm:$0xff]   ;;  %v6380_v16 = vld [vmem:[%s7022_s11 + $0x204] ss:$8 sps:$4 sm:$0xff]  }
 0x8b1   : > { %4829 = vmatprep.subr.bf16.mxu1 %v6356_v6  ;;  %v3852_v55 = vadd.f32 1.0, %v6503_v60  ;;  %v3915_v7 = vmul.f32 %v3883_v11, %v7808_v63  ;;  %v6363_v63 = vld [vmem:[%s7022_s11 + $0x330] ss:$8 sps:$4 sm:$0xff]  }
 0x8b2   : > { %4881 = vmatpush1.bf16.msra.mxu0 %v6351_v44  ;;  %v3914_v45 = vmul.f32 %v3882_v42, %v7813_v59  ;;  %v3929_v5 = vpack.c.bf16 %v3913_v43, %v3905_v18  ;;  %v7883_v9 = vrot.slane %v7706_v12, %v2767_v27  ;;  %v6372_v6 = vld [vmem:[%s7022_s11 + $0x210] ss:$8 sps:$4 sm:$0xff]   ;;  %v6383_v42 = vld [vmem:[%s7022_s11 + $0x304] ss:$8 sps:$4 sm:$0xff]   ;;  %v6378_v43 = vld [vmem:[%s7022_s11 + $0x200] ss:$8 sps:$4 sm:$0xff]  }
 0x8b3   : > { %4882 = vmatprep.subr.bf16.mxu0 %v6359_v30  ;;  %v3884_v37 = vmul.f32 0.5, %v3852_v55  ;;  %v3931_v19 = vpack.c.bf16 %v3915_v7, %v3907_v26  ;;  %v6381_v7 = vld [vmem:[%s7022_s11 + $0x300] ss:$8 sps:$4 sm:$0xff]  }
 0x8b4   : > { %4830 = vmatpush1.bf16.msra.mxu1 %v6354_v40  ;;  %v3930_v35 = vpack.c.bf16 %v3914_v45, %v3906_v29 }
 0x8b5   : > { %v3916_v59 = vmul.f32 %v3884_v37, %v7820_v14  ;;  %4831 = vmatprep.subr.bf16.mxu1 %v6362_v38  ;;  %v7880_v14 = vrot.slane %v7706_v12, %v1107_v36  ;;  %v6369_v36 = vld [vmem:[%s7022_s11 + $0x320] ss:$8 sps:$4 sm:$0xff]   ;;  %v6386_v37 = vld [vmem:[%s7022_s11 + $0x2f4] ss:$8 sps:$4 sm:$0xff]  }
 0x8b6   : > { %4883 = vmatpush1.bf16.msra.mxu0 %v6357_v61  ;;  %4759 = vmatprep.mubr.bf16.mxu1 %v3930_v35 }
 0x8b7   : > { %v3932_v13 = vpack.c.bf16 %v3916_v59, %v3908_v0  ;;  %4884 = vmatprep.subr.bf16.mxu0 %v6365_v20  ;;  %4760 = vmatmul.mubr.bf16.gmra.mxu1 %v3929_v5 }
 0x8b8   : > { %4832 = vmatpush1.bf16.msra.mxu1 %v6360_v33 }
 0x8b9   : > { %4812 = vmatprep.mubr.bf16.mxu0 %v3932_v13  ;;  %4833 = vmatprep.subr.bf16.mxu1 %v6368_v62 }
 0x8ba   : > { %4813 = vmatmul.mubr.bf16.gmra.mxu0 %v3931_v19 }
 0x8bb   : > { %4885 = vmatpush1.bf16.msra.mxu0 %v6363_v63 }
 0x8bc   : > { %v3561_v17 = vpop.f32.mrf.mxu1  ;;  %v3614_v3 = vpop.f32.mrf.mxu0  ;;  %4886 = vmatprep.subr.bf16.mxu0 %v6371_v32  ;;  %4834 = vmatpush1.bf16.msra.mxu1 %v6366_v54  ;;  %v6384_v32 = vld [vmem:[%s7022_s11 + $0x2f0] ss:$8 sps:$4 sm:$0xff]  }
 0x8bd   : > { %v7896_v39 = vadd.f32 %v3561_v17, %v7880_v14  ;;  %v7899_v23 = vadd.f32 %v3614_v3, %v7883_v9  ;;  %4835 = vmatprep.subr.bf16.mxu1 %v6374_v28 }
 0x8be   : > { %v3563_v21 = vpop.f32.mrf.mxu1  ;;  %v3616_v53 = vpop.f32.mrf.mxu0 }
 0x8bf   : > { %v3637_v12 = vmul.f32 %v7896_v39, %v7896_v39  ;;  %v3639_v24 = vmul.f32 %v7899_v23, %v7899_v23  ;;  %v7908_v46 = vadd.f32 %v3563_v21, %v7889_v50  ;;  %v7911_v44 = vadd.f32 %v3616_v53, %v7892_v4  ;;  %4887 = vmatpush1.bf16.msra.mxu0 %v6369_v36  ;;  %v6392_v21 = vld [vmem:[%s7022_s11 + $0x2e4] ss:$8 sps:$4 sm:$0xff]  }
 0x8c0   : > { %v3565_v49 = vpop.f32.mrf.mxu1  ;;  %v3618_v34 = vpop.f32.mrf.mxu0  ;;  %4888 = vmatprep.subr.bf16.mxu0 %v6377_v52  ;;  %4836 = vmatpush1.bf16.msra.mxu1 %v6372_v6 }
 0x8c1   : > { %v3669_v30 = vmul.f32 %v3637_v12, %v7896_v39  ;;  %v3671_v41 = vmul.f32 %v3639_v24, %v7899_v23  ;;  %v3638_v60 = vmul.f32 %v7908_v46, %v7908_v46  ;;  %v3640_v40 = vmul.f32 %v7911_v44, %v7911_v44  ;;  %4837 = vmatprep.subr.bf16.mxu1 %v6380_v16 }
 0x8c2   : > { %v7923_v11 = vadd.f32 %v3565_v49, %v7880_v14  ;;  %v7926_v55 = vadd.f32 %v3618_v34, %v7883_v9  ;;  %v3567_v56 = vpop.f32.mrf.mxu1  ;;  %v3620_v38 = vpop.f32.mrf.mxu0 }
 0x8c3   : > { %v3701_v61 = vmul.f32 0.044715, %v3669_v30  ;;  %v3703_v29 = vmul.f32 0.044715, %v3671_v41  ;;  %v3670_v45 = vmul.f32 %v3638_v60, %v7908_v46  ;;  %v3672_v25 = vmul.f32 %v3640_v40, %v7911_v44  ;;  %4889 = vmatpush1.bf16.msra.mxu0 %v6375_v22  ;;  %v6387_v22 = vld [vmem:[%s7022_s11 + $0x3f0] ss:$8 sps:$4 sm:$0xff]  }
 0x8c4   : > { %v3645_v20 = vmul.f32 %v7923_v11, %v7923_v11  ;;  %v3647_v18 = vmul.f32 %v7926_v55, %v7926_v55  ;;  %v7937_v35 = vadd.f32 %v3567_v56, %v7889_v50  ;;  %v7940_v33 = vadd.f32 %v3620_v38, %v7892_v4  ;;  %v3571_v27 = vpop.f32.mrf.mxu1  ;;  %v3624_v0 = vpop.f32.mrf.mxu0  ;;  %4890 = vmatprep.subr.bf16.mxu0 %v6383_v42  ;;  %v6395_v41 = vld [vmem:[%s7022_s11 + $0x3e4] ss:$8 sps:$4 sm:$0xff]   ;;  %v6390_v56 = vld [vmem:[%s7022_s11 + $0x2e0] ss:$8 sps:$4 sm:$0xff]  }
 0x8c5   : > { %v3733_v59 = vadd.f32 %v3701_v61, %v7896_v39  ;;  %v3735_v5 = vadd.f32 %v3703_v29, %v7899_v23  ;;  %v3702_v62 = vmul.f32 0.044715, %v3670_v45  ;;  %v3704_v26 = vmul.f32 0.044715, %v3672_v25  ;;  %4838 = vmatpush1.bf16.msra.mxu1 %v6378_v43  ;;  %v6398_v45 = vld [vmem:[%s7022_s11 + $0x2d4] ss:$8 sps:$4 sm:$0xff]  }
 0x8c6   : > { %v3677_v13 = vmul.f32 %v3645_v20, %v7923_v11  ;;  %v3679_v63 = vmul.f32 %v3647_v18, %v7926_v55  ;;  %v3646_v19 = vmul.f32 %v7937_v35, %v7937_v35  ;;  %v3648_v54 = vmul.f32 %v7940_v33, %v7940_v33  ;;  %v3573_v52 = vpop.f32.mrf.mxu1  ;;  %4839 = vmatprep.subr.bf16.mxu1 %v6386_v37  ;;  %v3626_v16 = vpop.f32.mrf.mxu0 }
 0x8c7   : > { %v3765_v28 = vmul.f32 0.7978846, %v3733_v59  ;;  %v3767_v36 = vmul.f32 0.7978846, %v3735_v5  ;;  %v3734_v17 = vadd.f32 %v3702_v62, %v7908_v46  ;;  %v3736_v3 = vadd.f32 %v3704_v26, %v7911_v44  ;;  %4891 = vmatpush1.bf16.msra.mxu0 %v6381_v7  ;;  %v6393_v7 = vld [vmem:[%s7022_s11 + $0x3e0] ss:$8 sps:$4 sm:$0xff]  }
 0x8c8   : > { %v3709_v53 = vmul.f32 0.044715, %v3677_v13  ;;  %v3711_v6 = vmul.f32 0.044715, %v3679_v63  ;;  %v3678_v12 = vmul.f32 %v3646_v19, %v7937_v35  ;;  %v3680_v24 = vmul.f32 %v3648_v54, %v7940_v33  ;;  %4892 = vmatprep.subr.bf16.mxu0 %v6389_v51  ;;  %v3575_v29 = vpop.f32.mrf.mxu1  ;;  %v3628_v18 = vpop.f32.mrf.mxu0  ;;  %v6401_v62 = vld [vmem:[%s7022_s11 + $0x3d4] ss:$8 sps:$4 sm:$0xff]  }
 0x8c9   : > { %6504 = vtanh.f32 %v3765_v28  ;;  %v3766_v49 = vmul.f32 0.7978846, %v3734_v17  ;;  %v3768_v34 = vmul.f32 0.7978846, %v3736_v3  ;;  %v7960_v30 = vadd.f32 %v3571_v27, %v7880_v14  ;;  %4840 = vmatpush2.bf16.msra.mxu1 %v6384_v32  ;;  %v6396_v63 = vld [vmem:[%s7022_s11 + $0x2d0] ss:$8 sps:$4 sm:$0xff]  }
 0x8ca   : > { %6506 = vtanh.f32 %v3767_v36  ;;  %v3741_v60 = vadd.f32 %v3709_v53, %v7923_v11  ;;  %v3743_v40 = vadd.f32 %v3711_v6, %v7926_v55  ;;  %v3710_v42 = vmul.f32 0.044715, %v3678_v12  ;;  %4841 = vmatprep.subr.bf16.mxu1 %v6392_v21  ;;  %v3577_v28 = vpop.f32.mrf.mxu1  ;;  %v6404_v36 = vld [vmem:[%s7022_s11 + $0x2c4] ss:$8 sps:$4 sm:$0xff]   ;;  %v6399_v21 = vld [vmem:[%s7022_s11 + $0x3d0] ss:$8 sps:$4 sm:$0xff]  }
 0x8cb   : > { %6508 = vtanh.f32 %v3766_v49  ;;  %v3712_v38 = vmul.f32 0.044715, %v3680_v24  ;;  %v3653_v43 = vmul.f32 %v7960_v30, %v7960_v30  ;;  %v7969_v61 = vadd.f32 %v3624_v0, %v7883_v9  ;;  %4893 = vmatpush2.bf16.msra.mxu0 %v6387_v22  ;;  %v6407_v24 = vld [vmem:[%s7022_s11 + $0x3c4] ss:$8 sps:$4 sm:$0xff]  }
 0x8cc   : > { %6510 = vtanh.f32 %v3768_v34  ;;  %v3773_v25 = vmul.f32 0.7978846, %v3741_v60  ;;  %v3775_v37 = vmul.f32 0.7978846, %v3743_v40  ;;  %v3742_v20 = vadd.f32 %v3710_v42, %v7937_v35  ;;  %4894 = vmatprep.subr.bf16.mxu0 %v6395_v41  ;;  %v6402_v41 = vld [vmem:[%s7022_s11 + $0x2c0] ss:$8 sps:$4 sm:$0xff]  }
 0x8cd   : > { %v3744_v27 = vadd.f32 %v3712_v38, %v7940_v33  ;;  %v3685_v59 = vmul.f32 %v3653_v43, %v7960_v30  ;;  %v3655_v0 = vmul.f32 %v7969_v61, %v7969_v61  ;;  %v7979_v5 = vadd.f32 %v3573_v52, %v7889_v50  ;;  %4842 = vmatpush2.bf16.msra.mxu1 %v6390_v56  ;;  %v3630_v52 = vpop.f32.mrf.mxu0  ;;  %v6405_v56 = vld [vmem:[%s7022_s11 + $0x3c0] ss:$8 sps:$4 sm:$0xff]   ;;  %v6410_v38 = vld [vmem:[%s7022_s11 + $0x2b4] ss:$8 sps:$4 sm:$0xff]  }
 0x8ce   : > { %6512 = vtanh.f32 %v3773_v25  ;;  %v3774_v26 = vmul.f32 0.7978846, %v3742_v20  ;;  %v7983_v51 = vadd.f32 %v3626_v16, %v7892_v4  ;;  %v7986_v13 = vadd.f32 %v3575_v29, %v7880_v14  ;;  %4843 = vmatprep.subr.bf16.mxu1 %v6398_v45 }
 0x8cf   : > { %6514 = vtanh.f32 %v3775_v37  ;;  %v3776_v19 = vmul.f32 0.7978846, %v3744_v27  ;;  %v3717_v54 = vmul.f32 0.044715, %v3685_v59  ;;  %v3687_v32 = vmul.f32 %v3655_v0, %v7969_v61  ;;  %4895 = vmatpush2.bf16.msra.mxu0 %v6393_v7 }
 0x8d0   : > { %6516 = vtanh.f32 %v3774_v26  ;;  %v3654_v17 = vmul.f32 %v7979_v5, %v7979_v5  ;;  %v3656_v14 = vmul.f32 %v7983_v51, %v7983_v51  ;;  %v3661_v3 = vmul.f32 %v7986_v13, %v7986_v13  ;;  %4896 = vmatprep.subr.bf16.mxu0 %v6401_v62  ;;  %v6408_v62 = vld [vmem:[%s7022_s11 + $0x2b0] ss:$8 sps:$4 sm:$0xff]  }
 0x8d1   : > { %6518 = vtanh.f32 %v3776_v19  ;;  %v3749_v53 = vadd.f32 %v3717_v54, %v7960_v30  ;;  %v3719_v6 = vmul.f32 0.044715, %v3687_v32  ;;  %v8000_v12 = vadd.f32 %v3628_v18, %v7883_v9  ;;  %4844 = vmatpush2.bf16.msra.mxu1 %v6396_v63  ;;  %v6416_v54 = vld [vmem:[%s7022_s11 + $0x2a4] ss:$8 sps:$4 sm:$0xff]  }
 0x8d2   : > { %v3686_v16 = vmul.f32 %v3654_v17, %v7979_v5  ;;  %v3688_v22 = vmul.f32 %v3656_v14, %v7983_v51  ;;  %v3693_v49 = vmul.f32 %v3661_v3, %v7986_v13  ;;  %v8007_v34 = vadd.f32 %v3577_v28, %v7889_v50  ;;  %4845 = vmatprep.subr.bf16.mxu1 %v6404_v36  ;;  %v6411_v17 = vld [vmem:[%s7022_s11 + $0x3b0] ss:$8 sps:$4 sm:$0xff]  }
 0x8d3   : > { %v3781_v60 = vmul.f32 0.7978846, %v3749_v53  ;;  %v3751_v40 = vadd.f32 %v3719_v6, %v7969_v61  ;;  %v3663_v9 = vmul.f32 %v8000_v12, %v8000_v12  ;;  %v8014_v42 = vadd.f32 %v3630_v52, %v7892_v4  ;;  %4897 = vmatpush2.bf16.msra.mxu0 %v6399_v21  ;;  %v6413_v4 = vld [vmem:[%s7022_s11 + $0x3b4] ss:$8 sps:$4 sm:$0xff]   ;;  %v6419_v53 = vld [vmem:[%s7022_s11 + $0x3a4] ss:$8 sps:$4 sm:$0xff]  }
 0x8d4   : > { %v3718_v43 = vmul.f32 0.044715, %v3686_v16  ;;  %v3720_v29 = vmul.f32 0.044715, %v3688_v22  ;;  %v3725_v50 = vmul.f32 0.044715, %v3693_v49  ;;  %v3662_v45 = vmul.f32 %v8007_v34, %v8007_v34  ;;  %4898 = vmatprep.subr.bf16.mxu0 %v6407_v24 }
 0x8d5   : > { %v3783_v25 = vmul.f32 0.7978846, %v3751_v40  ;;  %v3695_v37 = vmul.f32 %v3663_v9, %v8000_v12  ;;  %v3664_v20 = vmul.f32 %v8014_v42, %v8014_v42  ;;  %4846 = vmatpush2.bf16.msra.mxu1 %v6402_v41  ;;  %6520 = vtanh.f32 %v3781_v60  ;;  %v6414_v24 = vld [vmem:[%s7022_s11 + $0x2a0] ss:$8 sps:$4 sm:$0xff]   ;;  %v6422_v60 = vld [vmem:[%s7022_s11 + $0x294] ss:$8 sps:$4 sm:$0xff]  }
 0x8d6   : > { %v6505_v18 = vpop.eup %6504  ;;  %v3750_v7 = vadd.f32 %v3718_v43, %v7979_v5  ;;  %v3752_v27 = vadd.f32 %v3720_v29, %v7983_v51  ;;  %v3757_v59 = vadd.f32 %v3725_v50, %v7986_v13  ;;  %v3694_v0 = vmul.f32 %v3662_v45, %v8007_v34  ;;  %4847 = vmatprep.subr.bf16.mxu1 %v6410_v38  ;;  %v6417_v38 = vld [vmem:[%s7022_s11 + $0x3a0] ss:$8 sps:$4 sm:$0xff]   ;;  %v6420_v43 = vld [vmem:[%s7022_s11 + $0x290] ss:$8 sps:$4 sm:$0xff]  }
 0x8d7   : > { %v6507_v26 = vpop.eup %6506  ;;  %v3727_v63 = vmul.f32 0.044715, %v3695_v37  ;;  %v3696_v19 = vmul.f32 %v3664_v20, %v8014_v42  ;;  %4899 = vmatpush2.bf16.msra.mxu0 %v6405_v56  ;;  %6522 = vtanh.f32 %v3783_v25  ;;  %v3829_v50 = vadd.f32 1.0, %v6505_v18  ;;  %v6425_v37 = vld [vmem:[%s7022_s11 + $0x394] ss:$8 sps:$4 sm:$0xff]  }
 0x8d8   : > { %v6509_v32 = vpop.eup %6508  ;;  %v3782_v28 = vmul.f32 0.7978846, %v3750_v7  ;;  %v3784_v36 = vmul.f32 0.7978846, %v3752_v27  ;;  %v3789_v3 = vmul.f32 0.7978846, %v3757_v59  ;;  %4900 = vmatprep.subr.bf16.mxu0 %v6413_v4 }
 0x8d9   : > { %v6511_v14 = vpop.eup %6510  ;;  %v3759_v52 = vadd.f32 %v3727_v63, %v8000_v12  ;;  %v3726_v21 = vmul.f32 0.044715, %v3694_v0  ;;  %v3728_v6 = vmul.f32 0.044715, %v3696_v19  ;;  %4848 = vmatpush2.bf16.msra.mxu1 %v6408_v62  ;;  %v3830_v16 = vadd.f32 1.0, %v6509_v32 }
 0x8da   : > { %6524 = vtanh.f32 %v3782_v28  ;;  %4849 = vmatprep.subr.bf16.mxu1 %v6416_v54  ;;  %v3832_v59 = vadd.f32 1.0, %v6511_v14  ;;  %v3831_v0 = vadd.f32 1.0, %v6507_v26  ;;  %v6428_v18 = vld [vmem:[%s7022_s11 + $0x284] ss:$8 sps:$4 sm:$0xff]   ;;  %v6423_v19 = vld [vmem:[%s7022_s11 + $0x390] ss:$8 sps:$4 sm:$0xff]  }
 0x8db   : > { %v6513_v22 = vpop.eup %6512  ;;  %6526 = vtanh.f32 %v3784_v36  ;;  %v3791_v49 = vmul.f32 0.7978846, %v3759_v52  ;;  %v3758_v41 = vadd.f32 %v3726_v21, %v8007_v34  ;;  %v3760_v56 = vadd.f32 %v3728_v6, %v8014_v42  ;;  %4901 = vmatpush2.bf16.msra.mxu0 %v6411_v17  ;;  %v6431_v17 = vld [vmem:[%s7022_s11 + $0x384] ss:$8 sps:$4 sm:$0xff]   ;;  %v6426_v14 = vld [vmem:[%s7022_s11 + $0x280] ss:$8 sps:$4 sm:$0xff]  }
 0x8dc   : > { %v6515_v40 = vpop.eup %6514  ;;  %v3837_v9 = vadd.f32 1.0, %v6513_v22  ;;  %6528 = vtanh.f32 %v3789_v3  ;;  %4902 = vmatprep.subr.bf16.mxu0 %v6419_v53  ;;  %v3862_v27 = vmul.f32 0.5, %v3830_v16  ;;  %v3864_v32 = vmul.f32 0.5, %v3832_v59  ;;  %v6429_v16 = vld [vmem:[%s7022_s11 + $0x380] ss:$8 sps:$4 sm:$0xff]  }
 0x8dd   : > { %v6517_v29 = vpop.eup %6516  ;;  %v3839_v45 = vadd.f32 1.0, %v6515_v40  ;;  %6530 = vtanh.f32 %v3791_v49  ;;  %v3790_v25 = vmul.f32 0.7978846, %v3758_v41  ;;  %v3792_v4 = vmul.f32 0.7978846, %v3760_v56  ;;  %4850 = vmatpush2.bf16.msra.mxu1 %v6414_v24 }
 0x8de   : > { %v6519_v20 = vpop.eup %6518  ;;  %v3838_v7 = vadd.f32 1.0, %v6517_v29  ;;  %v3869_v62 = vmul.f32 0.5, %v3837_v9  ;;  %4851 = vmatprep.subr.bf16.mxu1 %v6422_v60  ;;  %v3861_v28 = vmul.f32 0.5, %v3829_v50  ;;  %v3894_v26 = vmul.f32 %v3862_v27, %v7908_v46 }
 0x8df   : > { %6532 = vtanh.f32 %v3790_v25  ;;  %v3840_v63 = vadd.f32 1.0, %v6519_v20  ;;  %4903 = vmatpush2.bf16.msra.mxu0 %v6417_v38  ;;  %v3871_v36 = vmul.f32 0.5, %v3839_v45  ;;  %v3863_v21 = vmul.f32 0.5, %v3831_v0 }
 0x8e0   : > { %6534 = vtanh.f32 %v3792_v4  ;;  %v3870_v54 = vmul.f32 0.5, %v3838_v7  ;;  %4904 = vmatprep.subr.bf16.mxu0 %v6425_v37  ;;  %v3901_v53 = vmul.f32 %v3869_v62, %v7923_v11  ;;  %v3896_v6 = vmul.f32 %v3864_v32, %v7911_v44 }
 0x8e1   : > { %v3872_v3 = vmul.f32 0.5, %v3840_v63  ;;  %4852 = vmatpush2.bf16.msra.mxu1 %v6420_v43  ;;  %v3893_v41 = vmul.f32 %v3861_v28, %v7896_v39  ;;  %v3903_v60 = vmul.f32 %v3871_v36, %v7926_v55  ;;  %v3895_v11 = vmul.f32 %v3863_v21, %v7899_v23 }
 0x8e2   : > { %v3902_v52 = vmul.f32 %v3870_v54, %v7937_v35  ;;  %4853 = vmatprep.subr.bf16.mxu1 %v6428_v18  ;;  %v6521_v49 = vpop.eup %6520 }
 0x8e3   : > { %v3904_v24 = vmul.f32 %v3872_v3, %v7940_v33  ;;  %4905 = vmatpush2.bf16.msra.mxu0 %v6423_v19  ;;  %v3925_v9 = vpack.c.bf16 %v3901_v53, %v3893_v41  ;;  %v3927_v56 = vpack.c.bf16 %v3903_v60, %v3895_v11  ;;  %v3845_v29 = vadd.f32 1.0, %v6521_v49 }
 0x8e4   : > { %v3926_v22 = vpack.c.bf16 %v3902_v52, %v3894_v26  ;;  %4906 = vmatprep.subr.bf16.mxu0 %v6431_v17  ;;  %v6523_v40 = vpop.eup %6522 }
 0x8e5   : > { %v3928_v46 = vpack.c.bf16 %v3904_v24, %v3896_v6  ;;  %4854 = vmatpush2.bf16.msra.mxu1 %v6426_v14  ;;  %v3847_v50 = vadd.f32 1.0, %v6523_v40  ;;  %v3877_v0 = vmul.f32 0.5, %v3845_v29 }
 0x8e6   : > { %4855 = vmatprep.mubr.bf16.mxu1 %v3926_v22 }
 0x8e7   : > { %v6525_v35 = vpop.eup %6524  ;;  %4908 = vmatprep.mubr.bf16.mxu0 %v3928_v46  ;;  %4907 = vmatpush2.bf16.msra.mxu0 %v6429_v16  ;;  %v3879_v18 = vmul.f32 0.5, %v3847_v50  ;;  %v3909_v3 = vmul.f32 %v3877_v0, %v7960_v30 }
 0x8e8   : > { %v6527_v44 = vpop.eup %6526  ;;  %4856 = vmatmul.mubr.bf16.vlgmr.msra.gmra.mxu1 %v3925_v9  ;;  %v3846_v38 = vadd.f32 1.0, %v6525_v35 }
 0x8e9   : > { %v6529_v33 = vpop.eup %6528  ;;  %v3848_v39 = vadd.f32 1.0, %v6527_v44  ;;  %v3911_v26 = vmul.f32 %v3879_v18, %v7969_v61  ;;  %v4065_v61 = vld [vmem:[%s832_s5] sm:$0x3]  ;;  %s8258_s5 = smov (!%p5848_p5), %s8257_s20 }
 0x8ea   : > { %v6531_v43 = vpop.eup %6530  ;;  %v3853_v55 = vadd.f32 1.0, %v6529_v33  ;;  %4909 = vmatmul.mubr.bf16.vlgmr.msra.gmra.mxu0 %v3927_v56  ;;  %v3878_v23 = vmul.f32 0.5, %v3846_v38  ;;  %v4070_v49 = vrot.slane %v4065_v61, %v7166_v58  ;;  %v4074_v60 = vrot.slane %v4065_v61, %v7175_v8 }
 0x8eb   : > { %v3855_v45 = vadd.f32 1.0, %v6531_v43  ;;  %v3880_v59 = vmul.f32 0.5, %v3848_v39 }
 0x8ec   : > { %v6533_v25 = vpop.eup %6532  ;;  %v3885_v37 = vmul.f32 0.5, %v3853_v55  ;;  %v3910_v54 = vmul.f32 %v3878_v23, %v7979_v5 }
 0x8ed   : > { %v6535_v20 = vpop.eup %6534  ;;  %v3854_v4 = vadd.f32 1.0, %v6533_v25  ;;  %v3887_v7 = vmul.f32 0.5, %v3855_v45  ;;  %v3912_v36 = vmul.f32 %v3880_v59, %v7983_v51 }
 0x8ee   : > { %v3856_v27 = vadd.f32 1.0, %v6535_v20  ;;  %v3917_v19 = vmul.f32 %v3885_v37, %v7986_v13 }
 0x8ef   : > { %v3886_v62 = vmul.f32 0.5, %v3854_v4  ;;  %v3919_v28 = vmul.f32 %v3887_v7, %v8000_v12 }
 0x8f0   : > { %v3888_v63 = vmul.f32 0.5, %v3856_v27  ;;  %v3933_v21 = vpack.c.bf16 %v3917_v19, %v3909_v3 }
 0x8f1   : > { %v3918_v32 = vmul.f32 %v3886_v62, %v8007_v34  ;;  %v3935_v13 = vpack.c.bf16 %v3919_v28, %v3911_v26 }
 0x8f2   : > { %v3920_v17 = vmul.f32 %v3888_v63, %v8014_v42 }
 0x8f3   : > { %v3934_v14 = vpack.c.bf16 %v3918_v32, %v3910_v54 }
 0x8f4   : > { %v3936_v52 = vpack.c.bf16 %v3920_v17, %v3912_v36 }
 0x8f5   : > { %4865 = vmatprep.mubr.bf16.mxu1 %v3934_v14 }
 0x8f6   : > { %4918 = vmatprep.mubr.bf16.mxu0 %v3936_v52  ;;  %4866 = vmatmul.mubr.bf16.gmra.mxu1 %v3933_v21 }
 0x8f7   : > { %4919 = vmatmul.mubr.bf16.gmra.mxu0 %v3935_v13 }
 0x967   : > { %v4751_v5 = vpop.f32.mrf.mxu1 }
 0x968   : > { %v4752_v40 = vadd.f32 %v4751_v5, %v4070_v49 }
 0x969   : > { %v4804_v34 = vpop.f32.mrf.mxu0  ;;  %v4753_v12 = vpop.f32.mrf.mxu1 }
 0x96a   : > { %v4754_v11 = vadd.f32 %v4753_v12, %v4074_v60  ;;  %v4805_v44 = vadd.f32 %v4804_v34, %v4752_v40 }
 0x96b   : > { %v4806_v53 = vpop.f32.mrf.mxu0  ;;  %v4755_v51 = vpop.f32.mrf.mxu1 }
 0x96c   : > { %v4756_v33 = vadd.f32 %v4755_v51, %v4070_v49  ;;  %v4807_v43 = vadd.f32 %v4806_v53, %v4754_v11 }
 0x96d   : > { %v4808_v6 = vpop.f32.mrf.mxu0  ;;  %v4757_v42 = vpop.f32.mrf.mxu1 }
 0x96e   : > { %v4758_v39 = vadd.f32 %v4757_v42, %v4074_v60  ;;  %v4809_v45 = vadd.f32 %v4808_v6, %v4756_v33 }
 0x96f   : > { %v4810_v24 = vpop.f32.mrf.mxu0 }
 0x970   : > { %v4811_v23 = vadd.f32 %v4810_v24, %v4758_v39 }
 0x977   : > { %v4761_v30 = vpop.f32.mrf.mxu1 }
 0x978   : > { %v4762_v54 = vadd.f32 %v4761_v30, %v4070_v49 }
 0x979   : > { %v4763_v22 = vpop.f32.mrf.mxu1 }
 0x97a   : > { %v4814_v16 = vpop.f32.mrf.mxu0  ;;  %v4764_v17 = vadd.f32 %v4763_v22, %v4074_v60 }
 0x97b   : > { %v4765_v46 = vpop.f32.mrf.mxu1  ;;  %v4815_v26 = vadd.f32 %v4814_v16, %v4762_v54 }
 0x97c   : > { %v4816_v41 = vpop.f32.mrf.mxu0  ;;  %v4766_v52 = vadd.f32 %v4765_v46, %v4070_v49 }
 0x97d   : > { %v4767_v9 = vpop.f32.mrf.mxu1  ;;  %v4817_v5 = vadd.f32 %v4816_v41, %v4764_v17 }
 0x97e   : > { %v4818_v35 = vpop.f32.mrf.mxu0 }
 0x97f   : > { %v4819_v53 = vadd.f32 %v4818_v35, %v4766_v52 }
 0x980   : > { %v4820_v56 = vpop.f32.mrf.mxu0 }
 0x9a8   : > { %v4857_v38 = vpop.f32.mrf.mxu1 }
 0x9a9   : > { %v4858_v29 = vadd.f32 %v4857_v38, %v4805_v44 }
 0x9aa   : > { %v4910_v55 = vpop.f32.mrf.mxu0  ;;  %v4859_v50 = vpop.f32.mrf.mxu1 }
 0x9ab   : > { %v4911_v25 = vadd.f32 %v4910_v55, %v4858_v29  ;;  %v4860_v37 = vadd.f32 %v4859_v50, %v4807_v43 }
 0x9ac   : > { %v4912_v20 = vpop.f32.mrf.mxu0  ;;  %v4861_v4 = vpop.f32.mrf.mxu1 }
 0x9ad   : > { %v4913_v7 = vadd.f32 %v4912_v20, %v4860_v37  ;;  %v4862_v27 = vadd.f32 %v4861_v4, %v4809_v45  ;;  %v4929_v62 = vadd.f32 %v4911_v25, %v7523_v57  ;;  %v4768_v57 = vadd.f32 %v4767_v9, %v4074_v60 }
 0x9ae   : > { %v4914_v59 = vpop.f32.mrf.mxu0  ;;  %v4863_v0 = vpop.f32.mrf.mxu1 }
 0x9af   : > { %v4930_v18 = vadd.f32 %v4913_v7, %v7517_v1  ;;  %v4915_v63 = vadd.f32 %v4914_v59, %v4862_v27  ;;  %v4864_v19 = vadd.f32 %v4863_v0, %v4811_v23  ;;  %v4821_v30 = vadd.f32 %v4820_v56, %v4768_v57 }
 0x9b0   : > { %v4916_v32 = vpop.f32.mrf.mxu0 }
 0x9b1   : > { %v4917_v28 = vadd.f32 %v4916_v32, %v4864_v19  ;;  %v4939_v36 = vadd.f32 %v4930_v18, %v4929_v62  ;;  %v4931_v3 = vadd.f32 %v4915_v63, %v7526_v15 }
 0x9b3   : > { %v4932_v14 = vadd.f32 %v4917_v28, %v7520_v2  ;;  %4940 = vadd.xlane.f32.xlu0 %v4939_v36 }
 0x9b5   : > { %v4942_v13 = vadd.f32 %v4932_v14, %v4931_v3 }
 0x9b6   : > { %v4867_v21 = vpop.f32.mrf.mxu1 }
 0x9b7   : > { %v4868_v34 = vadd.f32 %v4867_v21, %v4815_v26  ;;  %v4920_v1 = vpop.f32.mrf.mxu0  ;;  %4943 = vadd.xlane.f32.xlu1 %v4942_v13  ;;  %v4937_v21 = vld [vmem:[%s836_s13] sm:$0x3] }
 0x9b8   : > { %v4869_v12 = vpop.f32.mrf.mxu1 }
 0x9b9   : > { %v4921_v51 = vadd.f32 %v4920_v1, %v4868_v34  ;;  %v4870_v6 = vadd.f32 %v4869_v12, %v4817_v5  ;;  %v4922_v42 = vpop.f32.mrf.mxu0  ;;  %v4938_v5 = vld [vmem:[%s840_s30] sm:$0x3]  ;;  %v5007_v34 = vrot.slane %v4937_v21, %v7166_v58  ;;  %v5011_v1 = vrot.slane %v4937_v21, %v7175_v8 }
 0x9ba   : > { %v4871_v24 = vpop.f32.mrf.mxu1 }
 0x9bb   : > { %v4923_v15 = vadd.f32 %v4922_v42, %v4870_v6  ;;  %v4872_v61 = vadd.f32 %v4871_v24, %v4819_v53  ;;  %v4924_v2 = vpop.f32.mrf.mxu0  ;;  %v4933_v16 = vadd.f32 %v4921_v51, %v7570_v48  ;;  %v5026_v6 = vrot.slane %v4938_v5, %v7166_v58 }
 0x9bc   : > { %v4873_v22 = vpop.f32.mrf.mxu1  ;;  %v5030_v42 = vrot.slane %v4938_v5, %v7175_v8 }
 0x9bd   : > { %v4934_v49 = vadd.f32 %v4923_v15, %v7564_v10  ;;  %v4925_v41 = vadd.f32 %v4924_v2, %v4872_v61  ;;  %v4874_v60 = vadd.f32 %v4873_v22, %v4821_v30  ;;  %v4926_v46 = vpop.f32.mrf.mxu0 }
 0x9bf   : > { %v4927_v40 = vadd.f32 %v4926_v46, %v4874_v60  ;;  %v4945_v11 = vadd.f32 %v4934_v49, %v4933_v16  ;;  %v4935_v35 = vadd.f32 %v4925_v41, %v7573_v31 }
 0x9c1   : > { %v4936_v9 = vadd.f32 %v4927_v40, %v7567_v47  ;;  %4946 = vadd.xlane.f32.xlu0 %v4945_v11 }
 0x9c3   : > { %v4948_v44 = vadd.f32 %v4936_v9, %v4935_v35 }
 0x9c5   : > { %4949 = vadd.xlane.f32.xlu1 %v4948_v44 }
 0xa3c   : > { %v4941_v33 = vpop.xlane.xlu0 %4940 }
 0xa3d   : > { %v4951_v56 = vmul.f32 0.00390625, %v4941_v33 }
 0xa3f   : > { %v4955_v38 = vsub.f32 %v4929_v62, %v4951_v56  ;;  %v4956_v43 = vsub.f32 %v4930_v18, %v4951_v56 }
 0xa40   : > { %v4944_v39 = vpop.xlane.xlu1 %4943 }
 0xa41   : > { %v4952_v48 = vmul.f32 0.00390625, %v4944_v39  ;;  %v4963_v29 = vmul.f32 %v4955_v38, %v4955_v38  ;;  %v4964_v10 = vmul.f32 %v4956_v43, %v4956_v43 }
 0xa43   : > { %v4957_v55 = vsub.f32 %v4931_v3, %v4952_v48  ;;  %v4958_v50 = vsub.f32 %v4932_v14, %v4952_v48  ;;  %v4971_v45 = vadd.f32 %v4964_v10, %v4963_v29 }
 0xa45   : > { %4972 = vadd.xlane.f32.xlu0 %v4971_v45  ;;  %v4965_v25 = vmul.f32 %v4957_v55, %v4957_v55  ;;  %v4966_v37 = vmul.f32 %v4958_v50, %v4958_v50 }
 0xa47   : > { %v4974_v31 = vadd.f32 %v4966_v37, %v4965_v25 }
 0xa49   : > { %4975 = vadd.xlane.f32.xlu1 %v4974_v31 }
 0xa4a   : > { %v4947_v20 = vpop.xlane.xlu0 %4946 }
 0xa4b   : > { %v4953_v47 = vmul.f32 0.00390625, %v4947_v20 }
 0xa4d   : > { %v4959_v4 = vsub.f32 %v4933_v16, %v4953_v47  ;;  %v4960_v23 = vsub.f32 %v4934_v49, %v4953_v47 }
 0xa4e   : > { %v4950_v7 = vpop.xlane.xlu1 %4949 }
 0xa4f   : > { %v4954_v27 = vmul.f32 0.00390625, %v4950_v7  ;;  %v4967_v59 = vmul.f32 %v4959_v4, %v4959_v4  ;;  %v4968_v0 = vmul.f32 %v4960_v23, %v4960_v23 }
 0xa51   : > { %v4961_v62 = vsub.f32 %v4935_v35, %v4954_v27  ;;  %v4962_v18 = vsub.f32 %v4936_v9, %v4954_v27  ;;  %v4977_v63 = vadd.f32 %v4968_v0, %v4967_v59 }
 0xa53   : > { %4978 = vadd.xlane.f32.xlu0 %v4977_v63  ;;  %v4969_v19 = vmul.f32 %v4961_v62, %v4961_v62  ;;  %v4970_v54 = vmul.f32 %v4962_v18, %v4962_v18 }
 0xa55   : > { %v4980_v32 = vadd.f32 %v4970_v54, %v4969_v19 }
 0xa57   : > { %4981 = vadd.xlane.f32.xlu1 %v4980_v32 }
 0xace   : > { %v4973_v28 = vpop.xlane.xlu0 %4972 }
 0xacf   : > { %v4983_v36 = vmul.f32 0.00390625, %v4973_v28 }
 0xad1   : > { %v4987_v17 = vadd.f32 1e-12, %v4983_v36 }
 0xad2   : > { %v4976_v3 = vpop.xlane.xlu1 %4975 }
 0xad3   : > { %6536 = vrsqrt.f32 %v4987_v17  ;;  %v4984_v14 = vmul.f32 0.00390625, %v4976_v3 }
 0xad5   : > { %v4988_v26 = vadd.f32 1e-12, %v4984_v14 }
 0xad7   : > { %6538 = vrsqrt.f32 %v4988_v26 }
 0xadc   : > { %v4979_v52 = vpop.xlane.xlu0 %4978 }
 0xadd   : > { %v4985_v13 = vmul.f32 0.00390625, %v4979_v52 }
 0xadf   : > { %v4989_v57 = vadd.f32 1e-12, %v4985_v13 }
 0xae0   : > { %v4982_v12 = vpop.xlane.xlu1 %4981  ;;  %v6537_v53 = vpop.eup %6536 }
 0xae1   : > { %6540 = vrsqrt.f32 %v4989_v57  ;;  %v4986_v51 = vmul.f32 0.00390625, %v4982_v12  ;;  %v4995_v24 = vmul.f32 %v6537_v53, %v4955_v38  ;;  %v4996_v30 = vmul.f32 %v6537_v53, %v4956_v43 }
 0xae3   : > { %v4990_v15 = vadd.f32 1e-12, %v4986_v51  ;;  %v5014_v61 = vmul.f32 %v5007_v34, %v4995_v24  ;;  %v5015_v2 = vmul.f32 %v5011_v1, %v4996_v30 }
 0xae4   : > { %v6539_v22 = vpop.eup %6538 }
 0xae5   : > { %6542 = vrsqrt.f32 %v4990_v15  ;;  %v8091_v16 = vadd.f32 %v5026_v6, %v5014_v61  ;;  %v5034_v49 = vadd.f32 %v5030_v42, %v5015_v2  ;;  %v4997_v41 = vmul.f32 %v6539_v22, %v4957_v55 }
 0xae6   : > { %v4998_v60 = vmul.f32 %v6539_v22, %v4958_v50 }
 0xae7   : > { %5041 = vst [vmem:[#allocation2 + $0x30] sm:$0xff] %v8091_v16  ;;  %5042 = vst [vmem:[#allocation2] sm:$0xff] %v5034_v49  ;;  %v5016_v46 = vmul.f32 %v5007_v34, %v4997_v41 }
 0xae8   : > { %v5017_v40 = vmul.f32 %v5011_v1, %v4998_v60 }
 0xae9   : > { %v8094_v58 = vadd.f32 %v5026_v6, %v5016_v46 }
 0xaea   : > { %v5036_v8 = vadd.f32 %v5030_v42, %v5017_v40 }
 0xaeb   : > { %5043 = vst [vmem:[#allocation2 + $0x18] sm:$0xff] %v8094_v58 }
 0xaec   : > { %5044 = vst [vmem:[#allocation2 + $0x10] sm:$0xff] %v5036_v8 }
 0xaee   : > { %v6541_v11 = vpop.eup %6540 }
 0xaef   : > { %v4999_v35 = vmul.f32 %v6541_v11, %v4959_v4  ;;  %v5000_v9 = vmul.f32 %v6541_v11, %v4960_v23 }
 0xaf1   : > { %v5018_v44 = vmul.f32 %v5007_v34, %v4999_v35  ;;  %v5019_v33 = vmul.f32 %v5011_v1, %v5000_v9 }
 0xaf2   : > { %v6543_v56 = vpop.eup %6542 }
 0xaf3   : > { %v8097_v38 = vadd.f32 %v5026_v6, %v5018_v44  ;;  %v5038_v43 = vadd.f32 %v5030_v42, %v5019_v33  ;;  %v5001_v39 = vmul.f32 %v6543_v56, %v4961_v62  ;;  %v5002_v48 = vmul.f32 %v6543_v56, %v4962_v18 }
 0xaf5   : > { %5045 = vst [vmem:[#allocation2 + $0x8] sm:$0xff] %v8097_v38  ;;  %5046 = vst [vmem:[#allocation2 + $0x20] sm:$0xff] %v5038_v43  ;;  %v5020_v29 = vmul.f32 %v5007_v34, %v5001_v39  ;;  %v5021_v10 = vmul.f32 %v5011_v1, %v5002_v48  ;;  %5052 = sbr.rel (%p5848_p5) target bundleno = 3047 (0xbe7), region = 116 }
 0xaf7   : > { %v5039_v55 = vadd.f32 %v5026_v6, %v5020_v29  ;;  %v5040_v50 = vadd.f32 %v5030_v42, %v5021_v10 }
 0xaf9   : > { %5047 = vst [vmem:[#allocation2 + $0x28] sm:$0xff] %v5039_v55  ;;  %5048 = vst [vmem:[#allocation2 + $0x38] sm:$0xff] %v5040_v50 }
 0xafa   : > { %v6552_v45 = vld [vmem:[%s8255_s17 + $0x78] sm:$0xff]   ;;  %v5054_v37 = vpack.c.bf16 %v5036_v8, %v5034_v49  ;;  %v5056_v31 = vpack.c.bf16 %v5040_v50, %v5038_v43  ;;  %v6554_v20 = vld [vmem:[%s8255_s17 + $0x70] sm:$0xff]   ;;  %v6556_v4 = vld [vmem:[%s8255_s17 + $0x68] sm:$0xff]   ;;  %v5053_v28 = vpack.c.bf16 %v8094_v58, %v8091_v16  ;;  %v5055_v36 = vpack.c.bf16 %v5039_v55, %v8097_v38 }
 0xafb   : > { %v6553_v25 = vld [vmem:[%s8255_s17 + $0x38] sm:$0xff]   ;;  %5887 = vmatprep.subr.bf16.mxu0 %v6552_v45  ;;  %5963 = vmatprep.subr.bf16.mxu1 %v6552_v45  ;;  %v6555_v47 = vld [vmem:[%s8255_s17 + $0x30] sm:$0xff]   ;;  %v6557_v23 = vld [vmem:[%s8255_s17 + $0x28] sm:$0xff]  }
 0xafc   : > { %5888 = vmatpush3.bf16.msra.mxu0 %v6553_v25  ;;  %5971 = vmatpush3.bf16.msra.mxu1 %v6553_v25  ;;  %v6558_v7 = vld [vmem:[%s8255_s17 + $0x60] sm:$0xff]   ;;  %v6560_v59 = vld [vmem:[%s8255_s17 + $0x58] sm:$0xff]   ;;  %v6562_v62 = vld [vmem:[%s8255_s17 + $0x50] sm:$0xff]  }
 0xafd   : > { %5889 = vmatprep.subr.bf16.mxu0 %v6554_v20  ;;  %5964 = vmatprep.subr.bf16.mxu1 %v6554_v20  ;;  %v6559_v27 = vld [vmem:[%s8255_s17 + $0x20] sm:$0xff]   ;;  %v6561_v0 = vld [vmem:[%s8255_s17 + $0x18] sm:$0xff]   ;;  %v6563_v18 = vld [vmem:[%s8255_s17 + $0x10] sm:$0xff]  }
 0xafe   : > { %5224 = vmatprep.mubr.bf16.mxu0 %v5054_v37  ;;  %5232 = vmatprep.mubr.bf16.mxu1 %v5056_v31  ;;  %v6564_v63 = vld [vmem:[%s8255_s17 + $0x48] sm:$0xff]   ;;  %v6566_v54 = vld [vmem:[%s8255_s17 + $0x40] sm:$0xff]  }
 0xaff   : > { %v6565_v19 = vld [vmem:[%s8255_s17 + $0x8] sm:$0xff]   ;;  %v6567_v32 = vld [vmem:[%s8255_s17] sm:$0xff]  }
 0xb00   : > { %5890 = vmatpush3.bf16.msra.mxu0 %v6555_v47  ;;  %5972 = vmatpush3.bf16.msra.mxu1 %v6555_v47  ;;  %v5849_v14 = vld [vmem:[%s8256_s7] ss:$0 sm:$0xff] }
 0xb01   : > { %5891 = vmatprep.subr.bf16.mxu0 %v6556_v4  ;;  %5965 = vmatprep.subr.bf16.mxu1 %v6556_v4 }
 0xb04   : > { %5892 = vmatpush3.bf16.msra.mxu0 %v6557_v23  ;;  %5973 = vmatpush3.bf16.msra.mxu1 %v6557_v23 }
 0xb05   : > { %5893 = vmatprep.subr.bf16.mxu0 %v6558_v7  ;;  %5966 = vmatprep.subr.bf16.mxu1 %v6558_v7 }
 0xb08   : > { %5894 = vmatpush3.bf16.msra.mxu0 %v6559_v27  ;;  %5974 = vmatpush3.bf16.msra.mxu1 %v6559_v27 }
 0xb09   : > { %5895 = vmatprep.subr.bf16.mxu0 %v6560_v59  ;;  %5967 = vmatprep.subr.bf16.mxu1 %v6560_v59 }
 0xb0c   : > { %5896 = vmatpush3.bf16.msra.mxu0 %v6561_v0  ;;  %5975 = vmatpush3.bf16.msra.mxu1 %v6561_v0 }
 0xb0d   : > { %5897 = vmatprep.subr.bf16.mxu0 %v6562_v62  ;;  %5968 = vmatprep.subr.bf16.mxu1 %v6562_v62 }
 0xb10   : > { %5898 = vmatpush3.bf16.msra.mxu0 %v6563_v18  ;;  %5976 = vmatpush3.bf16.msra.mxu1 %v6563_v18 }
 0xb11   : > { %5899 = vmatprep.subr.bf16.mxu0 %v6564_v63  ;;  %5969 = vmatprep.subr.bf16.mxu1 %v6564_v63 }
 0xb14   : > { %5900 = vmatpush3.bf16.msra.mxu0 %v6565_v19  ;;  %5977 = vmatpush3.bf16.msra.mxu1 %v6565_v19 }
 0xb15   : > { %5901 = vmatprep.subr.bf16.mxu0 %v6566_v54  ;;  %5970 = vmatprep.subr.bf16.mxu1 %v6566_v54 }
 0xb18   : > { %5902 = vmatpush3.bf16.msra.mxu0 %v6567_v32  ;;  %5978 = vmatpush3.bf16.msra.mxu1 %v6567_v32 }
 0xb1b   : > { %5225 = vmatmul.mubr.bf16.vlgmr.msra.gmra.mxu0 %v5053_v28  ;;  %5233 = vmatmul.mubr.bf16.vlgmr.msra.gmra.mxu1 %v5055_v36 }
 0xbdb   : > { %v5903_v17 = vpop.f32.mrf.mxu0  ;;  %v5909_v3 = vpop.f32.mrf.mxu1 }
 0xbdd   : > { %v5904_v26 = vpop.f32.mrf.mxu0  ;;  %v5910_v52 = vpop.f32.mrf.mxu1 }
 0xbde   : > { %v5905_v21 = vadd.f32 %v5904_v26, %v5903_v17  ;;  %v5911_v13 = vadd.f32 %v5910_v52, %v5909_v3 }
 0xbdf   : > { %v5906_v5 = vpop.f32.mrf.mxu0  ;;  %v5912_v57 = vpop.f32.mrf.mxu1 }
 0xbe0   : > { %v5227_v34 = vadd.f32 %v5905_v21, %v5849_v14  ;;  %v5235_v1 = vadd.f32 %v5911_v13, %v5849_v14 }
 0xbe1   : > { %v5907_v12 = vpop.f32.mrf.mxu0  ;;  %v5913_v53 = vpop.f32.mrf.mxu1 }
 0xbe2   : > { %5241 = vst [vmem:[%s8257_s20] sm:$0xff] %v5227_v34  ;;  %v5908_v51 = vadd.f32 %v5907_v12, %v5906_v5  ;;  %v5914_v6 = vadd.f32 %v5913_v53, %v5912_v57 }
 0xbe3   : > { %5243 = vst [vmem:[%s8258_s5 + $0x10] sm:$0xff] %v5235_v1 }
 0xbe4   : > { %v5230_v42 = vadd.f32 %v5908_v51, %v5849_v14  ;;  %v5238_v24 = vadd.f32 %v5914_v6, %v5849_v14 }
 0xbe6   : > { %5242 = vst [vmem:[%s8258_s5 + $0x8] sm:$0xff] %v5230_v42  ;;  %5244 = vst [vmem:[%s8258_s5 + $0x18] sm:$0xff] %v5238_v24 }
 0xbe7 PF: > { %s8259_s21 = sld [smem:[#allocation12_spill]] }
 0xbe8   : > { %s8260_s0 = sld [smem:[#allocation10_spill]] }
 0xbe9   : > { %s8261_s30 = sld [smem:[#allocation11_spill]] }
 0xbea   : > { %s8262_s20 = sld [smem:[#allocation13_spill]] }
 0xbed   : > { %p32_p6 = scmp.ge.s32.totalorder %s8259_s21, 4  }
 0xbef   :  { %34 = sbr.rel (!%p32_p6) target bundleno = 21 (0x15), region = 191 }
 0xbf4   :  { %5256 = vsyncpa [#allocation4], 1 }
 0xbf5   :  { %5258 = vsyncpa [#allocation4 + $0x1], 1 }
 0xbf6   :  { %5259 = vsyncpa [#allocation6], 1 }
 0xbf7   :  { %5261 = vsyncpa [#allocation6 + $0x1], 1 }

</bundles_post_ra>
